<compile_context>
chip_gen: v5e
topology: v5e:2x2
jax: 0.10.0
libtpu: 0.0.40
codegen_flags: <defaults>
</compile_context>

<pallas_src>
import functools
import math

import jax
import jax.numpy as jnp
from jax import lax
from jax.experimental import pallas as pl
from jax.experimental.pallas import tpu as pltpu

# ----------------------------- config -----------------------------------
B = 2            # batch
L0 = 16          # input sequence length
D_MODEL = 32
N_HEADS = 4
E_HEAD = D_MODEL // N_HEADS
D_FF = 64
N_ATTN_LAYERS = 2                      # -> 1 distil conv layer between them
LN_EPS = 1e-5
BN_EPS = 1e-5
L_POOL = (L0 + 2 - 3) // 2 + 1         # MaxPool1d(k=3, s=2, p=1) output length (= L0//2)

# ------------------ vector-slab row layout (width = 3*D_MODEL) -------------
ROW_BQKV = 0            # rows 0..1   : per-layer [bq*scale | bk | bv]   (width 3D)
ROW_BO = 2              # rows 2..3   : per-layer out-projection bias    (width D)
ROW_B1 = 4              # rows 4..5   : per-layer FFN conv1 bias         (width F)
ROW_B2 = 6              # rows 6..7   : per-layer FFN conv2 bias         (width D)
ROW_LN = 8              # rows 8..15  : per-layer [ln1_g, ln1_b, ln2_g, ln2_b]
ROW_CONV_BIAS = 16      # folded conv bias:  cb*bn_scale + bn_shift
ROW_NORM_G = 17         # final Encoder LayerNorm gamma
ROW_NORM_B = 18         # final Encoder LayerNorm beta
N_VEC_ROWS = 19


# ----------------------------- fused kernel -------------------------------
def fused_encoder_kernel(
    x_ref,        # (B*L0, D)   batch folded along sublanes
    wqkv_ref,     # (2, D, 3D)  per-layer [Wq*scale | Wk | Wv]
    wo_ref,       # (2, D, D)
    w1_ref,       # (2, D, F)
    w2_ref,       # (2, F, D)
    cw_ref,       # (D, 3D)     conv taps [W_{t-1} | W_t | W_{t+1}], BN scale folded
    vecs_ref,     # (N_VEC_ROWS, 3D) all bias / LN / folded-BN vectors (zero padded)
    o_ref,        # (B*L_POOL, D)
):
    f32 = jnp.float32
    D, F, H, E = D_MODEL, D_FF, N_HEADS, E_HEAD
    V = vecs_ref[...]                                        # tiny, load once

    def vrow(r, width=D):
        return V[r:r + 1, :width]                            # (1, width), static slice

    def layer_norm(z, g_row, b_row):
        mu = jnp.mean(z, axis=-1, keepdims=True)
        var = jnp.mean((z - mu) ** 2, axis=-1, keepdims=True)
        return (z - mu) * lax.rsqrt(var + LN_EPS) * vrow(g_row) + vrow(b_row)

    def encoder_layer(x, layer, Lc):
        # ---- fused QKV projection: one (B*Lc, D)@(D, 3D) matmul ----
        qkv = (jnp.dot(x, wqkv_ref[layer], preferred_element_type=f32)
               + vrow(ROW_BQKV + layer, 3 * D))
        ctx_rows = []
        for b in range(B):                                   # unrolled (B = 2)
            r0 = b * Lc
            heads = []
            for h in range(H):                               # unrolled (H = 4)
                c0 = h * E
                q = qkv[r0:r0 + Lc, c0:c0 + E]
                k = qkv[r0:r0 + Lc, D + c0:D + c0 + E]
                v = qkv[r0:r0 + Lc, 2 * D + c0:2 * D + c0 + E]
                s = lax.dot_general(q, k, (((1,), (1,)), ((), ())),
                                    preferred_element_type=f32)        # (Lc, Lc)
                e = jnp.exp(s - jnp.max(s, axis=-1, keepdims=True))
                a = e * pl.reciprocal(jnp.sum(e, axis=-1, keepdims=True), approx=True)
                heads.append(jnp.dot(a, v, preferred_element_type=f32))  # (Lc, E)
            ctx_rows.append(jnp.concatenate(heads, axis=-1))              # (Lc, D)
        ctx = jnp.concatenate(ctx_rows, axis=0)                           # (B*Lc, D)
        # ---- single full-width output projection (instead of per-head matmuls) ----
        attn = (jnp.dot(ctx, wo_ref[layer], preferred_element_type=f32)
                + vrow(ROW_BO + layer))
        x1 = layer_norm(x + attn, ROW_LN + 4 * layer, ROW_LN + 4 * layer + 1)
        # ---- FFN (Conv1d k=1 -> relu -> Conv1d k=1) ----
        y = jnp.dot(x1, w1_ref[layer], preferred_element_type=f32) + vrow(ROW_B1 + layer, F)
        y = jnp.maximum(y, 0.0)
        y = jnp.dot(y, w2_ref[layer], preferred_element_type=f32) + vrow(ROW_B2 + layer)
        return layer_norm(x1 + y, ROW_LN + 4 * layer + 2, ROW_LN + 4 * layer + 3)

    x = x_ref[...]                                           # (B*L0, D)
    x = encoder_layer(x, 0, L0)

    # ---- distil ConvLayer: circular Conv1d(k=3,p=1) -> BN(eval, folded) -> ELU -> maxpool
    R0 = B * L0
    # one wide matmul computes all three taps; roll (XLU) commuted after the matmul
    P = jnp.dot(x, cw_ref[...], preferred_element_type=f32)  # (R0, 3D)
    row = lax.broadcasted_iota(jnp.int32, (R0, 1), 0)
    first = (row % L0) == 0                                  # first row of each batch block
    last = (row % L0) == (L0 - 1)                            # last row of each batch block
    Pm, Pc, Pp = P[:, :D], P[:, D:2 * D], P[:, 2 * D:]
    # circular shift WITHIN each batch block of L0 rows (wrap fixed at block edges)
    prev_tap = jnp.where(first, pltpu.roll(Pm, R0 - (L0 - 1), axis=0),
                         pltpu.roll(Pm, 1, axis=0))
    next_tap = jnp.where(last, pltpu.roll(Pp, L0 - 1, axis=0),
                         pltpu.roll(Pp, R0 - 1, axis=0))
    y = prev_tap + Pc + next_tap + vrow(ROW_CONV_BIAS)       # conv + folded eval-BN
    y = jnp.where(y > 0, y, jnp.exp(jnp.minimum(y, 0.0)) - 1.0)  # ELU(alpha=1)

    # MaxPool1d(k=3, s=2, p=1): edge-clamped 3-way max, then even-row selection matmul.
    ym1 = jnp.where(first, y, pltpu.roll(y, 1, axis=0))      # y[t-1], clamped at block start
    yp1 = pltpu.roll(y, R0 - 1, axis=0)                      # y[t+1]; wrapped rows are odd -> never selected
    win = jnp.maximum(jnp.maximum(ym1, y), yp1)              # (R0, D)
    # selector built in-kernel: pooled row r picks input row 2r (holds because L_POOL = L0//2,
    # so batch offsets cancel: b*L0 + 2*i == 2*(b*L_POOL + i))
    Rp = B * L_POOL
    rsel = lax.broadcasted_iota(jnp.int32, (Rp, R0), 0)
    csel = lax.broadcasted_iota(jnp.int32, (Rp, R0), 1)
    sel = (csel == 2 * rsel).astype(f32)
    x = jnp.dot(sel, win, preferred_element_type=f32)        # (Rp, D)

    x = encoder_layer(x, 1, L_POOL)
    x = layer_norm(x, ROW_NORM_G, ROW_NORM_B)                # Encoder.norm
    o_ref[...] = x.astype(o_ref.dtype)


# ----------------------------- parameter packing ---------------------------
def pack_params(params):
    """Pack raw (PyTorch-layout) params into a handful of VMEM-friendly slabs."""
    D, F = D_MODEL, D_FF
    scale = 1.0 / math.sqrt(E_HEAD)
    W3 = 3 * D

    def pad_row(v):
        v = jnp.asarray(v, jnp.float32).reshape(-1)
        return jnp.pad(v, (0, W3 - v.shape[0]))

    wqkv, wo, w1, w2 = [], [], [], []
    vec_rows = [None] * N_VEC_ROWS
    for li, p in enumerate(params["attn_layers"]):
        # softmax scale folded into the Q columns and Q bias
        wqkv.append(jnp.concatenate([p["wq"] * scale, p["wk"], p["wv"]], axis=-1))
        wo.append(p["wo"])
        w1.append(p["w1"])
        w2.append(p["w2"])
        vec_rows[ROW_BQKV + li] = pad_row(
            jnp.concatenate([p["bq"] * scale, p["bk"], p["bv"]]))
        vec_rows[ROW_BO + li] = pad_row(p["bo"])
        vec_rows[ROW_B1 + li] = pad_row(p["b1"])
        vec_rows[ROW_B2 + li] = pad_row(p["b2"])
        vec_rows[ROW_LN + 4 * li + 0] = pad_row(p["ln1_g"])
        vec_rows[ROW_LN + 4 * li + 1] = pad_row(p["ln1_b"])
        vec_rows[ROW_LN + 4 * li + 2] = pad_row(p["ln2_g"])
        vec_rows[ROW_LN + 4 * li + 3] = pad_row(p["ln2_b"])

    cp = params["conv_layers"][0]
    bn_scale = cp["bn_g"] / jnp.sqrt(cp["bn_var"] + BN_EPS)
    bn_shift = cp["bn_b"] - cp["bn_mean"] * bn_scale
    # conv taps concatenated along output columns; eval-BN scale folded in
    cw = jnp.concatenate([cp["w"][0], cp["w"][1], cp["w"][2]], axis=-1)   # (D, 3D)
    cw = cw * jnp.tile(bn_scale, 3)[None, :]
    vec_rows[ROW_CONV_BIAS] = pad_row(cp["b"] * bn_scale + bn_shift)
    vec_rows[ROW_NORM_G] = pad_row(params["norm_g"])
    vec_rows[ROW_NORM_B] = pad_row(params["norm_b"])

    vecs = jnp.stack(vec_rows, axis=0)                                    # (19, 96)
    return (jnp.stack(wqkv), jnp.stack(wo), jnp.stack(w1), jnp.stack(w2), cw, vecs)


def _zeros_index_map(i, *, ndim):
    return (0,) * ndim


# ----------------------------- forward wrapper -----------------------------
def encoder_forward(x, params):
    Bn, L, D = x.shape
    assert (Bn, L, D) == (B, L0, D_MODEL)
    packed = pack_params(params)
    x2 = x.reshape(Bn * L, D)                  # fold batch along sublanes (host-side, free)

    specs = [x2] + list(packed)
    in_specs = [
        pl.BlockSpec(a.shape, functools.partial(_zeros_index_map, ndim=a.ndim))
        for a in specs
    ]

    out = pl.pallas_call(
        fused_encoder_kernel,
        out_shape=jax.ShapeDtypeStruct((Bn * L_POOL, D_MODEL), x.dtype),
        grid=(1,),                             # single step: batch folded, no per-step overhead
        in_specs=in_specs,
        out_specs=pl.BlockSpec((Bn * L_POOL, D_MODEL),
                               functools.partial(_zeros_index_map, ndim=2)),
        compiler_params=pltpu.CompilerParams(dimension_semantics=("arbitrary",)),
    )(x2, *packed)

    out = out.reshape(Bn, L_POOL, D_MODEL)
    # FullAttention(output_attention=False) -> attn entries are None
    return out, [None] * N_ATTN_LAYERS


# ----------------------------- param init ----------------------------------
def _uniform(key, shape, fan_in):
    bound = 1.0 / math.sqrt(fan_in)
    return jax.random.uniform(key, shape, jnp.float32, -bound, bound)


def init_params(key):
    D, F = D_MODEL, D_FF
    attn_layers = []
    for _ in range(N_ATTN_LAYERS):
        keys = jax.random.split(key, 13)
        key = keys[0]
        p = {
            "wq": _uniform(keys[1], (D, D), D), "bq": _uniform(keys[2], (D,), D),
            "wk": _uniform(keys[3], (D, D), D), "bk": _uniform(keys[4], (D,), D),
            "wv": _uniform(keys[5], (D, D), D), "bv": _uniform(keys[6], (D,), D),
            "wo": _uniform(keys[7], (D, D), D), "bo": _uniform(keys[8], (D,), D),
            "w1": _uniform(keys[9], (D, F), D), "b1": _uniform(keys[10], (F,), D),
            "w2": _uniform(keys[11], (F, D), F), "b2": _uniform(keys[12], (D,), F),
            "ln1_g": jnp.ones((D,), jnp.float32), "ln1_b": jnp.zeros((D,), jnp.float32),
            "ln2_g": jnp.ones((D,), jnp.float32), "ln2_b": jnp.zeros((D,), jnp.float32),
        }
        attn_layers.append(p)

    conv_layers = []
    for _ in range(N_ATTN_LAYERS - 1):
        keys = jax.random.split(key, 3)
        key = keys[0]
        # stored as (tap, c_in, c_out); taps 0/1/2 = positions t-1 / t / t+1
        # (a PyTorch Conv1d state_dict stores (c_out, c_in, k); import needs permute(2,1,0))
        p = {
            "w": _uniform(keys[1], (3, D, D), 3 * D),
            "b": _uniform(keys[2], (D,), 3 * D),
            "bn_g": jnp.ones((D,), jnp.float32),
            "bn_b": jnp.zeros((D,), jnp.float32),
            "bn_mean": jnp.zeros((D,), jnp.float32),   # eval-mode running stats
            "bn_var": jnp.ones((D,), jnp.float32),
        }
        conv_layers.append(p)

    return {
        "attn_layers": attn_layers,
        "conv_layers": conv_layers,
        "norm_g": jnp.ones((D_MODEL,), jnp.float32),
        "norm_b": jnp.zeros((D_MODEL,), jnp.float32),
    }


# ----------------------------- main ----------------------------------------
if __name__ == "__main__":
    root = jax.random.PRNGKey(0)
    k_x, k_p = jax.random.split(root)
    x = jax.random.normal(k_x, (B, L0, D_MODEL), jnp.float32)
    params = init_params(k_p)

    out, attns = jax.jit(encoder_forward)(x, params)
    out = jax.block_until_ready(out)

    expected_L = (L0 + 2 - 3) // 2 + 1   # one distil conv halves the seq length
    assert out.shape == (B, expected_L, D_MODEL), out.shape
    assert len(attns) == N_ATTN_LAYERS
    assert bool(jnp.all(jnp.isfinite(out)))
    print("KERNEL_OK")
</pallas_src>

<mosaic_0001>
module attributes {stable_mosaic.version = 11 : i64} {
  func.func @fused_encoder_kernel(%arg0: i32, %arg1: memref<32x32xf32, #tpu.memory_space<vmem>>, %arg2: memref<2x32x96xf32, #tpu.memory_space<vmem>>, %arg3: memref<2x32x32xf32, #tpu.memory_space<vmem>>, %arg4: memref<2x32x64xf32, #tpu.memory_space<vmem>>, %arg5: memref<2x64x32xf32, #tpu.memory_space<vmem>>, %arg6: memref<32x96xf32, #tpu.memory_space<vmem>>, %arg7: memref<19x96xf32, #tpu.memory_space<vmem>>, %arg8: memref<16x32xf32, #tpu.memory_space<vmem>>) attributes {dimension_semantics = [#tpu.dimension_semantics<arbitrary>], iteration_bounds = array<i64: 1>, scalar_prefetch = 0 : i64, scratch_operands = 0 : i64, tpu.core_type = #tpu.core_type<tc>, window_params = [{pipeline_mode = #tpu.pipeline_mode<synchronous>, transform_indices = @transform_0, window_bounds = array<i64: 32, 32>}, {pipeline_mode = #tpu.pipeline_mode<synchronous>, transform_indices = @transform_1, window_bounds = array<i64: 2, 32, 96>}, {pipeline_mode = #tpu.pipeline_mode<synchronous>, transform_indices = @transform_2, window_bounds = array<i64: 2, 32, 32>}, {pipeline_mode = #tpu.pipeline_mode<synchronous>, transform_indices = @transform_3, window_bounds = array<i64: 2, 32, 64>}, {pipeline_mode = #tpu.pipeline_mode<synchronous>, transform_indices = @transform_4, window_bounds = array<i64: 2, 64, 32>}, {pipeline_mode = #tpu.pipeline_mode<synchronous>, transform_indices = @transform_5, window_bounds = array<i64: 32, 96>}, {pipeline_mode = #tpu.pipeline_mode<synchronous>, transform_indices = @transform_6, window_bounds = array<i64: 19, 96>}, {pipeline_mode = #tpu.pipeline_mode<synchronous>, transform_indices = @transform_7, window_bounds = array<i64: 16, 32>}]} {
    %c0 = arith.constant 0 : index
    %c0_0 = arith.constant 0 : index
    %0 = vector.load %arg7[%c0, %c0_0] : memref<19x96xf32, #tpu.memory_space<vmem>>, vector<19x96xf32>
    %c0_1 = arith.constant 0 : index
    %c0_2 = arith.constant 0 : index
    %1 = vector.load %arg1[%c0_1, %c0_2] : memref<32x32xf32, #tpu.memory_space<vmem>>, vector<32x32xf32>
    %c0_3 = arith.constant 0 : index
    %c0_4 = arith.constant 0 : index
    %c0_5 = arith.constant 0 : index
    %2 = vector.load %arg2[%c0_3, %c0_4, %c0_5] : memref<2x32x96xf32, #tpu.memory_space<vmem>>, vector<1x32x96xf32>
    %3 = vector.shape_cast %2 : vector<1x32x96xf32> to vector<32x96xf32>
    %cst = arith.constant dense<0.000000e+00> : vector<32x96xf32>
    %4 = tpu.matmul %1, %3, %cst {dimension_numbers = #tpu.dot_dimension_numbers<[1], [0], [0], [1], [0, 0, 1, 1], [], []>} : vector<32x32xf32>, vector<32x96xf32>, vector<32x96xf32> -> vector<32x96xf32>
    %5 = vector.extract_strided_slice %0 {offsets = [0, 0], sizes = [1, 96], strides = [1, 1]} : vector<19x96xf32> to vector<1x96xf32>
    %6 = vector.broadcast %5 : vector<1x96xf32> to vector<32x96xf32>
    %7 = arith.addf %4, %6 : vector<32x96xf32>
    %8 = vector.extract_strided_slice %7 {offsets = [0, 0], sizes = [16, 8], strides = [1, 1]} : vector<32x96xf32> to vector<16x8xf32>
    %9 = vector.extract_strided_slice %7 {offsets = [0, 32], sizes = [16, 8], strides = [1, 1]} : vector<32x96xf32> to vector<16x8xf32>
    %10 = vector.extract_strided_slice %7 {offsets = [0, 64], sizes = [16, 8], strides = [1, 1]} : vector<32x96xf32> to vector<16x8xf32>
    %cst_6 = arith.constant dense<0.000000e+00> : vector<16x16xf32>
    %11 = tpu.matmul %8, %9, %cst_6 {dimension_numbers = #tpu.dot_dimension_numbers<[1], [1], [0], [0], [0, 0, 1, 0], [], []>} : vector<16x8xf32>, vector<16x8xf32>, vector<16x16xf32> -> vector<16x16xf32>
    %cst_7 = arith.constant dense<0xFF800000> : vector<16xf32>
    %12 = vector.multi_reduction <maximumf>, %11, %cst_7 [1] : vector<16x16xf32> to vector<16xf32>
    %13 = vector.shape_cast %12 : vector<16xf32> to vector<16x1xf32>
    %14 = vector.broadcast %13 : vector<16x1xf32> to vector<16x16xf32>
    %15 = arith.subf %11, %14 : vector<16x16xf32>
    %16 = math.exp %15 : vector<16x16xf32>
    %cst_8 = arith.constant dense<0.000000e+00> : vector<16xf32>
    %17 = vector.multi_reduction <add>, %16, %cst_8 [1] : vector<16x16xf32> to vector<16xf32>
    %18 = vector.shape_cast %17 : vector<16xf32> to vector<16x1xf32>
    %19 = tpu.reciprocal %18 {approx = true} : vector<16x1xf32> -> vector<16x1xf32>
    %20 = vector.broadcast %19 : vector<16x1xf32> to vector<16x16xf32>
    %21 = arith.mulf %16, %20 : vector<16x16xf32>
    %cst_9 = arith.constant dense<0.000000e+00> : vector<16x8xf32>
    %22 = tpu.matmul %21, %10, %cst_9 {dimension_numbers = #tpu.dot_dimension_numbers<[1], [0], [0], [1], [0, 0, 1, 1], [], []>} : vector<16x16xf32>, vector<16x8xf32>, vector<16x8xf32> -> vector<16x8xf32>
    %23 = vector.extract_strided_slice %7 {offsets = [0, 8], sizes = [16, 8], strides = [1, 1]} : vector<32x96xf32> to vector<16x8xf32>
    %24 = vector.extract_strided_slice %7 {offsets = [0, 40], sizes = [16, 8], strides = [1, 1]} : vector<32x96xf32> to vector<16x8xf32>
    %25 = vector.extract_strided_slice %7 {offsets = [0, 72], sizes = [16, 8], strides = [1, 1]} : vector<32x96xf32> to vector<16x8xf32>
    %cst_10 = arith.constant dense<0.000000e+00> : vector<16x16xf32>
    %26 = tpu.matmul %23, %24, %cst_10 {dimension_numbers = #tpu.dot_dimension_numbers<[1], [1], [0], [0], [0, 0, 1, 0], [], []>} : vector<16x8xf32>, vector<16x8xf32>, vector<16x16xf32> -> vector<16x16xf32>
    %cst_11 = arith.constant dense<0xFF800000> : vector<16xf32>
    %27 = vector.multi_reduction <maximumf>, %26, %cst_11 [1] : vector<16x16xf32> to vector<16xf32>
    %28 = vector.shape_cast %27 : vector<16xf32> to vector<16x1xf32>
    %29 = vector.broadcast %28 : vector<16x1xf32> to vector<16x16xf32>
    %30 = arith.subf %26, %29 : vector<16x16xf32>
    %31 = math.exp %30 : vector<16x16xf32>
    %cst_12 = arith.constant dense<0.000000e+00> : vector<16xf32>
    %32 = vector.multi_reduction <add>, %31, %cst_12 [1] : vector<16x16xf32> to vector<16xf32>
    %33 = vector.shape_cast %32 : vector<16xf32> to vector<16x1xf32>
    %34 = tpu.reciprocal %33 {approx = true} : vector<16x1xf32> -> vector<16x1xf32>
    %35 = vector.broadcast %34 : vector<16x1xf32> to vector<16x16xf32>
    %36 = arith.mulf %31, %35 : vector<16x16xf32>
    %cst_13 = arith.constant dense<0.000000e+00> : vector<16x8xf32>
    %37 = tpu.matmul %36, %25, %cst_13 {dimension_numbers = #tpu.dot_dimension_numbers<[1], [0], [0], [1], [0, 0, 1, 1], [], []>} : vector<16x16xf32>, vector<16x8xf32>, vector<16x8xf32> -> vector<16x8xf32>
    %38 = vector.extract_strided_slice %7 {offsets = [0, 16], sizes = [16, 8], strides = [1, 1]} : vector<32x96xf32> to vector<16x8xf32>
    %39 = vector.extract_strided_slice %7 {offsets = [0, 48], sizes = [16, 8], strides = [1, 1]} : vector<32x96xf32> to vector<16x8xf32>
    %40 = vector.extract_strided_slice %7 {offsets = [0, 80], sizes = [16, 8], strides = [1, 1]} : vector<32x96xf32> to vector<16x8xf32>
    %cst_14 = arith.constant dense<0.000000e+00> : vector<16x16xf32>
    %41 = tpu.matmul %38, %39, %cst_14 {dimension_numbers = #tpu.dot_dimension_numbers<[1], [1], [0], [0], [0, 0, 1, 0], [], []>} : vector<16x8xf32>, vector<16x8xf32>, vector<16x16xf32> -> vector<16x16xf32>
    %cst_15 = arith.constant dense<0xFF800000> : vector<16xf32>
    %42 = vector.multi_reduction <maximumf>, %41, %cst_15 [1] : vector<16x16xf32> to vector<16xf32>
    %43 = vector.shape_cast %42 : vector<16xf32> to vector<16x1xf32>
    %44 = vector.broadcast %43 : vector<16x1xf32> to vector<16x16xf32>
    %45 = arith.subf %41, %44 : vector<16x16xf32>
    %46 = math.exp %45 : vector<16x16xf32>
    %cst_16 = arith.constant dense<0.000000e+00> : vector<16xf32>
    %47 = vector.multi_reduction <add>, %46, %cst_16 [1] : vector<16x16xf32> to vector<16xf32>
    %48 = vector.shape_cast %47 : vector<16xf32> to vector<16x1xf32>
    %49 = tpu.reciprocal %48 {approx = true} : vector<16x1xf32> -> vector<16x1xf32>
    %50 = vector.broadcast %49 : vector<16x1xf32> to vector<16x16xf32>
    %51 = arith.mulf %46, %50 : vector<16x16xf32>
    %cst_17 = arith.constant dense<0.000000e+00> : vector<16x8xf32>
    %52 = tpu.matmul %51, %40, %cst_17 {dimension_numbers = #tpu.dot_dimension_numbers<[1], [0], [0], [1], [0, 0, 1, 1], [], []>} : vector<16x16xf32>, vector<16x8xf32>, vector<16x8xf32> -> vector<16x8xf32>
    %53 = vector.extract_strided_slice %7 {offsets = [0, 24], sizes = [16, 8], strides = [1, 1]} : vector<32x96xf32> to vector<16x8xf32>
    %54 = vector.extract_strided_slice %7 {offsets = [0, 56], sizes = [16, 8], strides = [1, 1]} : vector<32x96xf32> to vector<16x8xf32>
    %55 = vector.extract_strided_slice %7 {offsets = [0, 88], sizes = [16, 8], strides = [1, 1]} : vector<32x96xf32> to vector<16x8xf32>
    %cst_18 = arith.constant dense<0.000000e+00> : vector<16x16xf32>
    %56 = tpu.matmul %53, %54, %cst_18 {dimension_numbers = #tpu.dot_dimension_numbers<[1], [1], [0], [0], [0, 0, 1, 0], [], []>} : vector<16x8xf32>, vector<16x8xf32>, vector<16x16xf32> -> vector<16x16xf32>
    %cst_19 = arith.constant dense<0xFF800000> : vector<16xf32>
    %57 = vector.multi_reduction <maximumf>, %56, %cst_19 [1] : vector<16x16xf32> to vector<16xf32>
    %58 = vector.shape_cast %57 : vector<16xf32> to vector<16x1xf32>
    %59 = vector.broadcast %58 : vector<16x1xf32> to vector<16x16xf32>
    %60 = arith.subf %56, %59 : vector<16x16xf32>
    %61 = math.exp %60 : vector<16x16xf32>
    %cst_20 = arith.constant dense<0.000000e+00> : vector<16xf32>
    %62 = vector.multi_reduction <add>, %61, %cst_20 [1] : vector<16x16xf32> to vector<16xf32>
    %63 = vector.shape_cast %62 : vector<16xf32> to vector<16x1xf32>
    %64 = tpu.reciprocal %63 {approx = true} : vector<16x1xf32> -> vector<16x1xf32>
    %65 = vector.broadcast %64 : vector<16x1xf32> to vector<16x16xf32>
    %66 = arith.mulf %61, %65 : vector<16x16xf32>
    %cst_21 = arith.constant dense<0.000000e+00> : vector<16x8xf32>
    %67 = tpu.matmul %66, %55, %cst_21 {dimension_numbers = #tpu.dot_dimension_numbers<[1], [0], [0], [1], [0, 0, 1, 1], [], []>} : vector<16x16xf32>, vector<16x8xf32>, vector<16x8xf32> -> vector<16x8xf32>
    %68 = tpu.concatenate %22, %37, %52, %67 in 1 : vector<16x8xf32>, vector<16x8xf32>, vector<16x8xf32>, vector<16x8xf32> -> vector<16x32xf32>
    %69 = vector.extract_strided_slice %7 {offsets = [16, 0], sizes = [16, 8], strides = [1, 1]} : vector<32x96xf32> to vector<16x8xf32>
    %70 = vector.extract_strided_slice %7 {offsets = [16, 32], sizes = [16, 8], strides = [1, 1]} : vector<32x96xf32> to vector<16x8xf32>
    %71 = vector.extract_strided_slice %7 {offsets = [16, 64], sizes = [16, 8], strides = [1, 1]} : vector<32x96xf32> to vector<16x8xf32>
    %cst_22 = arith.constant dense<0.000000e+00> : vector<16x16xf32>
    %72 = tpu.matmul %69, %70, %cst_22 {dimension_numbers = #tpu.dot_dimension_numbers<[1], [1], [0], [0], [0, 0, 1, 0], [], []>} : vector<16x8xf32>, vector<16x8xf32>, vector<16x16xf32> -> vector<16x16xf32>
    %cst_23 = arith.constant dense<0xFF800000> : vector<16xf32>
    %73 = vector.multi_reduction <maximumf>, %72, %cst_23 [1] : vector<16x16xf32> to vector<16xf32>
    %74 = vector.shape_cast %73 : vector<16xf32> to vector<16x1xf32>
    %75 = vector.broadcast %74 : vector<16x1xf32> to vector<16x16xf32>
    %76 = arith.subf %72, %75 : vector<16x16xf32>
    %77 = math.exp %76 : vector<16x16xf32>
    %cst_24 = arith.constant dense<0.000000e+00> : vector<16xf32>
    %78 = vector.multi_reduction <add>, %77, %cst_24 [1] : vector<16x16xf32> to vector<16xf32>
    %79 = vector.shape_cast %78 : vector<16xf32> to vector<16x1xf32>
    %80 = tpu.reciprocal %79 {approx = true} : vector<16x1xf32> -> vector<16x1xf32>
    %81 = vector.broadcast %80 : vector<16x1xf32> to vector<16x16xf32>
    %82 = arith.mulf %77, %81 : vector<16x16xf32>
    %cst_25 = arith.constant dense<0.000000e+00> : vector<16x8xf32>
    %83 = tpu.matmul %82, %71, %cst_25 {dimension_numbers = #tpu.dot_dimension_numbers<[1], [0], [0], [1], [0, 0, 1, 1], [], []>} : vector<16x16xf32>, vector<16x8xf32>, vector<16x8xf32> -> vector<16x8xf32>
    %84 = vector.extract_strided_slice %7 {offsets = [16, 8], sizes = [16, 8], strides = [1, 1]} : vector<32x96xf32> to vector<16x8xf32>
    %85 = vector.extract_strided_slice %7 {offsets = [16, 40], sizes = [16, 8], strides = [1, 1]} : vector<32x96xf32> to vector<16x8xf32>
    %86 = vector.extract_strided_slice %7 {offsets = [16, 72], sizes = [16, 8], strides = [1, 1]} : vector<32x96xf32> to vector<16x8xf32>
    %cst_26 = arith.constant dense<0.000000e+00> : vector<16x16xf32>
    %87 = tpu.matmul %84, %85, %cst_26 {dimension_numbers = #tpu.dot_dimension_numbers<[1], [1], [0], [0], [0, 0, 1, 0], [], []>} : vector<16x8xf32>, vector<16x8xf32>, vector<16x16xf32> -> vector<16x16xf32>
    %cst_27 = arith.constant dense<0xFF800000> : vector<16xf32>
    %88 = vector.multi_reduction <maximumf>, %87, %cst_27 [1] : vector<16x16xf32> to vector<16xf32>
    %89 = vector.shape_cast %88 : vector<16xf32> to vector<16x1xf32>
    %90 = vector.broadcast %89 : vector<16x1xf32> to vector<16x16xf32>
    %91 = arith.subf %87, %90 : vector<16x16xf32>
    %92 = math.exp %91 : vector<16x16xf32>
    %cst_28 = arith.constant dense<0.000000e+00> : vector<16xf32>
    %93 = vector.multi_reduction <add>, %92, %cst_28 [1] : vector<16x16xf32> to vector<16xf32>
    %94 = vector.shape_cast %93 : vector<16xf32> to vector<16x1xf32>
    %95 = tpu.reciprocal %94 {approx = true} : vector<16x1xf32> -> vector<16x1xf32>
    %96 = vector.broadcast %95 : vector<16x1xf32> to vector<16x16xf32>
    %97 = arith.mulf %92, %96 : vector<16x16xf32>
    %cst_29 = arith.constant dense<0.000000e+00> : vector<16x8xf32>
    %98 = tpu.matmul %97, %86, %cst_29 {dimension_numbers = #tpu.dot_dimension_numbers<[1], [0], [0], [1], [0, 0, 1, 1], [], []>} : vector<16x16xf32>, vector<16x8xf32>, vector<16x8xf32> -> vector<16x8xf32>
    %99 = vector.extract_strided_slice %7 {offsets = [16, 16], sizes = [16, 8], strides = [1, 1]} : vector<32x96xf32> to vector<16x8xf32>
    %100 = vector.extract_strided_slice %7 {offsets = [16, 48], sizes = [16, 8], strides = [1, 1]} : vector<32x96xf32> to vector<16x8xf32>
    %101 = vector.extract_strided_slice %7 {offsets = [16, 80], sizes = [16, 8], strides = [1, 1]} : vector<32x96xf32> to vector<16x8xf32>
    %cst_30 = arith.constant dense<0.000000e+00> : vector<16x16xf32>
    %102 = tpu.matmul %99, %100, %cst_30 {dimension_numbers = #tpu.dot_dimension_numbers<[1], [1], [0], [0], [0, 0, 1, 0], [], []>} : vector<16x8xf32>, vector<16x8xf32>, vector<16x16xf32> -> vector<16x16xf32>
    %cst_31 = arith.constant dense<0xFF800000> : vector<16xf32>
    %103 = vector.multi_reduction <maximumf>, %102, %cst_31 [1] : vector<16x16xf32> to vector<16xf32>
    %104 = vector.shape_cast %103 : vector<16xf32> to vector<16x1xf32>
    %105 = vector.broadcast %104 : vector<16x1xf32> to vector<16x16xf32>
    %106 = arith.subf %102, %105 : vector<16x16xf32>
    %107 = math.exp %106 : vector<16x16xf32>
    %cst_32 = arith.constant dense<0.000000e+00> : vector<16xf32>
    %108 = vector.multi_reduction <add>, %107, %cst_32 [1] : vector<16x16xf32> to vector<16xf32>
    %109 = vector.shape_cast %108 : vector<16xf32> to vector<16x1xf32>
    %110 = tpu.reciprocal %109 {approx = true} : vector<16x1xf32> -> vector<16x1xf32>
    %111 = vector.broadcast %110 : vector<16x1xf32> to vector<16x16xf32>
    %112 = arith.mulf %107, %111 : vector<16x16xf32>
    %cst_33 = arith.constant dense<0.000000e+00> : vector<16x8xf32>
    %113 = tpu.matmul %112, %101, %cst_33 {dimension_numbers = #tpu.dot_dimension_numbers<[1], [0], [0], [1], [0, 0, 1, 1], [], []>} : vector<16x16xf32>, vector<16x8xf32>, vector<16x8xf32> -> vector<16x8xf32>
    %114 = vector.extract_strided_slice %7 {offsets = [16, 24], sizes = [16, 8], strides = [1, 1]} : vector<32x96xf32> to vector<16x8xf32>
    %115 = vector.extract_strided_slice %7 {offsets = [16, 56], sizes = [16, 8], strides = [1, 1]} : vector<32x96xf32> to vector<16x8xf32>
    %116 = vector.extract_strided_slice %7 {offsets = [16, 88], sizes = [16, 8], strides = [1, 1]} : vector<32x96xf32> to vector<16x8xf32>
    %cst_34 = arith.constant dense<0.000000e+00> : vector<16x16xf32>
    %117 = tpu.matmul %114, %115, %cst_34 {dimension_numbers = #tpu.dot_dimension_numbers<[1], [1], [0], [0], [0, 0, 1, 0], [], []>} : vector<16x8xf32>, vector<16x8xf32>, vector<16x16xf32> -> vector<16x16xf32>
    %cst_35 = arith.constant dense<0xFF800000> : vector<16xf32>
    %118 = vector.multi_reduction <maximumf>, %117, %cst_35 [1] : vector<16x16xf32> to vector<16xf32>
    %119 = vector.shape_cast %118 : vector<16xf32> to vector<16x1xf32>
    %120 = vector.broadcast %119 : vector<16x1xf32> to vector<16x16xf32>
    %121 = arith.subf %117, %120 : vector<16x16xf32>
    %122 = math.exp %121 : vector<16x16xf32>
    %cst_36 = arith.constant dense<0.000000e+00> : vector<16xf32>
    %123 = vector.multi_reduction <add>, %122, %cst_36 [1] : vector<16x16xf32> to vector<16xf32>
    %124 = vector.shape_cast %123 : vector<16xf32> to vector<16x1xf32>
    %125 = tpu.reciprocal %124 {approx = true} : vector<16x1xf32> -> vector<16x1xf32>
    %126 = vector.broadcast %125 : vector<16x1xf32> to vector<16x16xf32>
    %127 = arith.mulf %122, %126 : vector<16x16xf32>
    %cst_37 = arith.constant dense<0.000000e+00> : vector<16x8xf32>
    %128 = tpu.matmul %127, %116, %cst_37 {dimension_numbers = #tpu.dot_dimension_numbers<[1], [0], [0], [1], [0, 0, 1, 1], [], []>} : vector<16x16xf32>, vector<16x8xf32>, vector<16x8xf32> -> vector<16x8xf32>
    %129 = tpu.concatenate %83, %98, %113, %128 in 1 : vector<16x8xf32>, vector<16x8xf32>, vector<16x8xf32>, vector<16x8xf32> -> vector<16x32xf32>
    %130 = tpu.concatenate %68, %129 in 0 : vector<16x32xf32>, vector<16x32xf32> -> vector<32x32xf32>
    %c0_38 = arith.constant 0 : index
    %c0_39 = arith.constant 0 : index
    %c0_40 = arith.constant 0 : index
    %131 = vector.load %arg3[%c0_38, %c0_39, %c0_40] : memref<2x32x32xf32, #tpu.memory_space<vmem>>, vector<1x32x32xf32>
    %132 = vector.shape_cast %131 : vector<1x32x32xf32> to vector<32x32xf32>
    %cst_41 = arith.constant dense<0.000000e+00> : vector<32x32xf32>
    %133 = tpu.matmul %130, %132, %cst_41 {dimension_numbers = #tpu.dot_dimension_numbers<[1], [0], [0], [1], [0, 0, 1, 1], [], []>} : vector<32x32xf32>, vector<32x32xf32>, vector<32x32xf32> -> vector<32x32xf32>
    %134 = vector.extract_strided_slice %0 {offsets = [2, 0], sizes = [1, 32], strides = [1, 1]} : vector<19x96xf32> to vector<1x32xf32>
    %135 = vector.broadcast %134 : vector<1x32xf32> to vector<32x32xf32>
    %136 = arith.addf %133, %135 : vector<32x32xf32>
    %137 = arith.addf %1, %136 : vector<32x32xf32>
    %cst_42 = arith.constant dense<0.000000e+00> : vector<32xf32>
    %138 = vector.multi_reduction <add>, %137, %cst_42 [1] : vector<32x32xf32> to vector<32xf32>
    %139 = vector.shape_cast %138 : vector<32xf32> to vector<32x1xf32>
    %cst_43 = arith.constant 3.200000e+01 : f32
    %140 = vector.broadcast %cst_43 : f32 to vector<32x1xf32>
    %141 = arith.divf %139, %140 : vector<32x1xf32>
    %142 = vector.broadcast %141 : vector<32x1xf32> to vector<32x32xf32>
    %143 = arith.subf %137, %142 : vector<32x32xf32>
    %144 = arith.mulf %143, %143 : vector<32x32xf32>
    %cst_44 = arith.constant dense<0.000000e+00> : vector<32xf32>
    %145 = vector.multi_reduction <add>, %144, %cst_44 [1] : vector<32x32xf32> to vector<32xf32>
    %146 = vector.shape_cast %145 : vector<32xf32> to vector<32x1xf32>
    %cst_45 = arith.constant 3.200000e+01 : f32
    %147 = vector.broadcast %cst_45 : f32 to vector<32x1xf32>
    %148 = arith.divf %146, %147 : vector<32x1xf32>
    %149 = vector.broadcast %141 : vector<32x1xf32> to vector<32x32xf32>
    %150 = arith.subf %137, %149 : vector<32x32xf32>
    %cst_46 = arith.constant 9.99999974E-6 : f32
    %151 = vector.broadcast %cst_46 : f32 to vector<32x1xf32>
    %152 = arith.addf %148, %151 : vector<32x1xf32>
    %153 = math.rsqrt %152 : vector<32x1xf32>
    %154 = vector.broadcast %153 : vector<32x1xf32> to vector<32x32xf32>
    %155 = arith.mulf %150, %154 : vector<32x32xf32>
    %156 = vector.extract_strided_slice %0 {offsets = [8, 0], sizes = [1, 32], strides = [1, 1]} : vector<19x96xf32> to vector<1x32xf32>
    %157 = vector.broadcast %156 : vector<1x32xf32> to vector<32x32xf32>
    %158 = arith.mulf %155, %157 : vector<32x32xf32>
    %159 = vector.extract_strided_slice %0 {offsets = [9, 0], sizes = [1, 32], strides = [1, 1]} : vector<19x96xf32> to vector<1x32xf32>
    %160 = vector.broadcast %159 : vector<1x32xf32> to vector<32x32xf32>
    %161 = arith.addf %158, %160 : vector<32x32xf32>
    %c0_47 = arith.constant 0 : index
    %c0_48 = arith.constant 0 : index
    %c0_49 = arith.constant 0 : index
    %162 = vector.load %arg4[%c0_47, %c0_48, %c0_49] : memref<2x32x64xf32, #tpu.memory_space<vmem>>, vector<1x32x64xf32>
    %163 = vector.shape_cast %162 : vector<1x32x64xf32> to vector<32x64xf32>
    %cst_50 = arith.constant dense<0.000000e+00> : vector<32x64xf32>
    %164 = tpu.matmul %161, %163, %cst_50 {dimension_numbers = #tpu.dot_dimension_numbers<[1], [0], [0], [1], [0, 0, 1, 1], [], []>} : vector<32x32xf32>, vector<32x64xf32>, vector<32x64xf32> -> vector<32x64xf32>
    %165 = vector.extract_strided_slice %0 {offsets = [4, 0], sizes = [1, 64], strides = [1, 1]} : vector<19x96xf32> to vector<1x64xf32>
    %166 = vector.broadcast %165 : vector<1x64xf32> to vector<32x64xf32>
    %167 = arith.addf %164, %166 : vector<32x64xf32>
    %cst_51 = arith.constant 0.000000e+00 : f32
    %168 = vector.broadcast %cst_51 : f32 to vector<32x64xf32>
    %169 = arith.maximumf %167, %168 : vector<32x64xf32>
    %c0_52 = arith.constant 0 : index
    %c0_53 = arith.constant 0 : index
    %c0_54 = arith.constant 0 : index
    %170 = vector.load %arg5[%c0_52, %c0_53, %c0_54] : memref<2x64x32xf32, #tpu.memory_space<vmem>>, vector<1x64x32xf32>
    %171 = vector.shape_cast %170 : vector<1x64x32xf32> to vector<64x32xf32>
    %cst_55 = arith.constant dense<0.000000e+00> : vector<32x32xf32>
    %172 = tpu.matmul %169, %171, %cst_55 {dimension_numbers = #tpu.dot_dimension_numbers<[1], [0], [0], [1], [0, 0, 1, 1], [], []>} : vector<32x64xf32>, vector<64x32xf32>, vector<32x32xf32> -> vector<32x32xf32>
    %173 = vector.extract_strided_slice %0 {offsets = [6, 0], sizes = [1, 32], strides = [1, 1]} : vector<19x96xf32> to vector<1x32xf32>
    %174 = vector.broadcast %173 : vector<1x32xf32> to vector<32x32xf32>
    %175 = arith.addf %172, %174 : vector<32x32xf32>
    %176 = arith.addf %161, %175 : vector<32x32xf32>
    %cst_56 = arith.constant dense<0.000000e+00> : vector<32xf32>
    %177 = vector.multi_reduction <add>, %176, %cst_56 [1] : vector<32x32xf32> to vector<32xf32>
    %178 = vector.shape_cast %177 : vector<32xf32> to vector<32x1xf32>
    %cst_57 = arith.constant 3.200000e+01 : f32
    %179 = vector.broadcast %cst_57 : f32 to vector<32x1xf32>
    %180 = arith.divf %178, %179 : vector<32x1xf32>
    %181 = vector.broadcast %180 : vector<32x1xf32> to vector<32x32xf32>
    %182 = arith.subf %176, %181 : vector<32x32xf32>
    %183 = arith.mulf %182, %182 : vector<32x32xf32>
    %cst_58 = arith.constant dense<0.000000e+00> : vector<32xf32>
    %184 = vector.multi_reduction <add>, %183, %cst_58 [1] : vector<32x32xf32> to vector<32xf32>
    %185 = vector.shape_cast %184 : vector<32xf32> to vector<32x1xf32>
    %cst_59 = arith.constant 3.200000e+01 : f32
    %186 = vector.broadcast %cst_59 : f32 to vector<32x1xf32>
    %187 = arith.divf %185, %186 : vector<32x1xf32>
    %188 = vector.broadcast %180 : vector<32x1xf32> to vector<32x32xf32>
    %189 = arith.subf %176, %188 : vector<32x32xf32>
    %cst_60 = arith.constant 9.99999974E-6 : f32
    %190 = vector.broadcast %cst_60 : f32 to vector<32x1xf32>
    %191 = arith.addf %187, %190 : vector<32x1xf32>
    %192 = math.rsqrt %191 : vector<32x1xf32>
    %193 = vector.broadcast %192 : vector<32x1xf32> to vector<32x32xf32>
    %194 = arith.mulf %189, %193 : vector<32x32xf32>
    %195 = vector.extract_strided_slice %0 {offsets = [10, 0], sizes = [1, 32], strides = [1, 1]} : vector<19x96xf32> to vector<1x32xf32>
    %196 = vector.broadcast %195 : vector<1x32xf32> to vector<32x32xf32>
    %197 = arith.mulf %194, %196 : vector<32x32xf32>
    %198 = vector.extract_strided_slice %0 {offsets = [11, 0], sizes = [1, 32], strides = [1, 1]} : vector<19x96xf32> to vector<1x32xf32>
    %199 = vector.broadcast %198 : vector<1x32xf32> to vector<32x32xf32>
    %200 = arith.addf %197, %199 : vector<32x32xf32>
    %c0_61 = arith.constant 0 : index
    %c0_62 = arith.constant 0 : index
    %201 = vector.load %arg6[%c0_61, %c0_62] : memref<32x96xf32, #tpu.memory_space<vmem>>, vector<32x96xf32>
    %cst_63 = arith.constant dense<0.000000e+00> : vector<32x96xf32>
    %202 = tpu.matmul %200, %201, %cst_63 {dimension_numbers = #tpu.dot_dimension_numbers<[1], [0], [0], [1], [0, 0, 1, 1], [], []>} : vector<32x32xf32>, vector<32x96xf32>, vector<32x96xf32> -> vector<32x96xf32>
    %203 = tpu.iota {dimensions = array<i32: 0>} : vector<32x1xi32>
    %c16_i32 = arith.constant 16 : i32
    %c0_i32 = arith.constant 0 : i32
    %204 = arith.cmpi eq, %c16_i32, %c0_i32 : i32
    %c1_i32 = arith.constant 1 : i32
    %205 = arith.select %204, %c1_i32, %c16_i32 : i32
    %206 = vector.broadcast %205 : i32 to vector<32x1xi32>
    %207 = arith.remsi %203, %206 : vector<32x1xi32>
    %c0_i32_64 = arith.constant 0 : i32
    %208 = vector.broadcast %c0_i32_64 : i32 to vector<32x1xi32>
    %209 = arith.cmpi ne, %207, %208 : vector<32x1xi32>
    %c0_i32_65 = arith.constant 0 : i32
    %210 = vector.broadcast %c0_i32_65 : i32 to vector<32x1xi32>
    %211 = arith.cmpi slt, %207, %210 : vector<32x1xi32>
    %c0_i32_66 = arith.constant 0 : i32
    %212 = arith.cmpi slt, %205, %c0_i32_66 : i32
    %213 = vector.broadcast %212 : i1 to vector<32x1xi1>
    %214 = vector.broadcast %213 : vector<32x1xi1> to vector<32x1xi1>
    %215 = arith.xori %211, %214 : vector<32x1xi1>
    %216 = arith.andi %215, %209 : vector<32x1xi1>
    %217 = vector.broadcast %205 : i32 to vector<32x1xi32>
    %218 = arith.addi %207, %217 : vector<32x1xi32>
    %219 = arith.select %216, %218, %207 : vector<32x1xi1>, vector<32x1xi32>
    %c0_i32_67 = arith.constant 0 : i32
    %220 = vector.broadcast %c0_i32_67 : i32 to vector<32x1xi32>
    %221 = arith.cmpi eq, %219, %220 : vector<32x1xi32>
    %c16_i32_68 = arith.constant 16 : i32
    %c0_i32_69 = arith.constant 0 : i32
    %222 = arith.cmpi eq, %c16_i32_68, %c0_i32_69 : i32
    %c1_i32_70 = arith.constant 1 : i32
    %223 = arith.select %222, %c1_i32_70, %c16_i32_68 : i32
    %224 = vector.broadcast %223 : i32 to vector<32x1xi32>
    %225 = arith.remsi %203, %224 : vector<32x1xi32>
    %c0_i32_71 = arith.constant 0 : i32
    %226 = vector.broadcast %c0_i32_71 : i32 to vector<32x1xi32>
    %227 = arith.cmpi ne, %225, %226 : vector<32x1xi32>
    %c0_i32_72 = arith.constant 0 : i32
    %228 = vector.broadcast %c0_i32_72 : i32 to vector<32x1xi32>
    %229 = arith.cmpi slt, %225, %228 : vector<32x1xi32>
    %c0_i32_73 = arith.constant 0 : i32
    %230 = arith.cmpi slt, %223, %c0_i32_73 : i32
    %231 = vector.broadcast %230 : i1 to vector<32x1xi1>
    %232 = vector.broadcast %231 : vector<32x1xi1> to vector<32x1xi1>
    %233 = arith.xori %229, %232 : vector<32x1xi1>
    %234 = arith.andi %233, %227 : vector<32x1xi1>
    %235 = vector.broadcast %223 : i32 to vector<32x1xi32>
    %236 = arith.addi %225, %235 : vector<32x1xi32>
    %237 = arith.select %234, %236, %225 : vector<32x1xi1>, vector<32x1xi32>
    %c15_i32 = arith.constant 15 : i32
    %238 = vector.broadcast %c15_i32 : i32 to vector<32x1xi32>
    %239 = arith.cmpi eq, %237, %238 : vector<32x1xi32>
    %240 = vector.extract_strided_slice %202 {offsets = [0, 0], sizes = [32, 32], strides = [1, 1]} : vector<32x96xf32> to vector<32x32xf32>
    %241 = vector.extract_strided_slice %202 {offsets = [0, 32], sizes = [32, 32], strides = [1, 1]} : vector<32x96xf32> to vector<32x32xf32>
    %242 = vector.extract_strided_slice %202 {offsets = [0, 64], sizes = [32, 32], strides = [1, 1]} : vector<32x96xf32> to vector<32x32xf32>
    %c17_i32 = arith.constant 17 : i32
    %243 = tpu.dynamic_rotate %240 by %c17_i32 dim 0 : vector<32x32xf32>, i32 -> vector<32x32xf32>
    %c1_i32_74 = arith.constant 1 : i32
    %244 = tpu.dynamic_rotate %240 by %c1_i32_74 dim 0 : vector<32x32xf32>, i32 -> vector<32x32xf32>
    %245 = vector.shape_cast %221 : vector<32x1xi1> to vector<32x1xi1>
    %246 = vector.broadcast %245 : vector<32x1xi1> to vector<32x32xi1>
    %247 = arith.select %246, %243, %244 : vector<32x32xi1>, vector<32x32xf32>
    %c15_i32_75 = arith.constant 15 : i32
    %248 = tpu.dynamic_rotate %242 by %c15_i32_75 dim 0 : vector<32x32xf32>, i32 -> vector<32x32xf32>
    %c31_i32 = arith.constant 31 : i32
    %249 = tpu.dynamic_rotate %242 by %c31_i32 dim 0 : vector<32x32xf32>, i32 -> vector<32x32xf32>
    %250 = vector.shape_cast %239 : vector<32x1xi1> to vector<32x1xi1>
    %251 = vector.broadcast %250 : vector<32x1xi1> to vector<32x32xi1>
    %252 = arith.select %251, %248, %249 : vector<32x32xi1>, vector<32x32xf32>
    %253 = arith.addf %247, %241 : vector<32x32xf32>
    %254 = arith.addf %253, %252 : vector<32x32xf32>
    %255 = vector.extract_strided_slice %0 {offsets = [16, 0], sizes = [1, 32], strides = [1, 1]} : vector<19x96xf32> to vector<1x32xf32>
    %256 = vector.broadcast %255 : vector<1x32xf32> to vector<32x32xf32>
    %257 = arith.addf %254, %256 : vector<32x32xf32>
    %cst_76 = arith.constant 0.000000e+00 : f32
    %258 = vector.broadcast %cst_76 : f32 to vector<32x32xf32>
    %259 = arith.cmpf ogt, %257, %258 : vector<32x32xf32>
    %cst_77 = arith.constant 0.000000e+00 : f32
    %260 = vector.broadcast %cst_77 : f32 to vector<32x32xf32>
    %261 = arith.minimumf %257, %260 : vector<32x32xf32>
    %262 = math.exp %261 : vector<32x32xf32>
    %cst_78 = arith.constant 1.000000e+00 : f32
    %263 = vector.broadcast %cst_78 : f32 to vector<32x32xf32>
    %264 = arith.subf %262, %263 : vector<32x32xf32>
    %265 = arith.select %259, %257, %264 : vector<32x32xi1>, vector<32x32xf32>
    %c1_i32_79 = arith.constant 1 : i32
    %266 = tpu.dynamic_rotate %265 by %c1_i32_79 dim 0 : vector<32x32xf32>, i32 -> vector<32x32xf32>
    %267 = vector.shape_cast %221 : vector<32x1xi1> to vector<32x1xi1>
    %268 = vector.broadcast %267 : vector<32x1xi1> to vector<32x32xi1>
    %269 = arith.select %268, %265, %266 : vector<32x32xi1>, vector<32x32xf32>
    %c31_i32_80 = arith.constant 31 : i32
    %270 = tpu.dynamic_rotate %265 by %c31_i32_80 dim 0 : vector<32x32xf32>, i32 -> vector<32x32xf32>
    %271 = arith.maximumf %269, %265 : vector<32x32xf32>
    %272 = arith.maximumf %271, %270 : vector<32x32xf32>
    %273 = tpu.iota {dimensions = array<i32: 0>} : vector<16x32xi32>
    %274 = tpu.iota {dimensions = array<i32: 1>} : vector<16x32xi32>
    %c2_i32 = arith.constant 2 : i32
    %275 = vector.broadcast %c2_i32 : i32 to vector<16x32xi32>
    %276 = arith.muli %275, %273 : vector<16x32xi32>
    %277 = arith.cmpi eq, %274, %276 : vector<16x32xi32>
    %278 = arith.extui %277 : vector<16x32xi1> to vector<16x32xi32>
    %279 = arith.sitofp %278 : vector<16x32xi32> to vector<16x32xf32>
    %cst_81 = arith.constant dense<0.000000e+00> : vector<16x32xf32>
    %280 = tpu.matmul %279, %272, %cst_81 {dimension_numbers = #tpu.dot_dimension_numbers<[1], [0], [0], [1], [0, 0, 1, 1], [], []>} : vector<16x32xf32>, vector<32x32xf32>, vector<16x32xf32> -> vector<16x32xf32>
    %c1 = arith.constant 1 : index
    %c0_82 = arith.constant 0 : index
    %c0_83 = arith.constant 0 : index
    %281 = vector.load %arg2[%c1, %c0_82, %c0_83] : memref<2x32x96xf32, #tpu.memory_space<vmem>>, vector<1x32x96xf32>
    %282 = vector.shape_cast %281 : vector<1x32x96xf32> to vector<32x96xf32>
    %cst_84 = arith.constant dense<0.000000e+00> : vector<16x96xf32>
    %283 = tpu.matmul %280, %282, %cst_84 {dimension_numbers = #tpu.dot_dimension_numbers<[1], [0], [0], [1], [0, 0, 1, 1], [], []>} : vector<16x32xf32>, vector<32x96xf32>, vector<16x96xf32> -> vector<16x96xf32>
    %284 = vector.extract_strided_slice %0 {offsets = [1, 0], sizes = [1, 96], strides = [1, 1]} : vector<19x96xf32> to vector<1x96xf32>
    %285 = vector.broadcast %284 : vector<1x96xf32> to vector<16x96xf32>
    %286 = arith.addf %283, %285 : vector<16x96xf32>
    %287 = vector.extract_strided_slice %286 {offsets = [0, 0], sizes = [8, 8], strides = [1, 1]} : vector<16x96xf32> to vector<8x8xf32>
    %288 = vector.extract_strided_slice %286 {offsets = [0, 32], sizes = [8, 8], strides = [1, 1]} : vector<16x96xf32> to vector<8x8xf32>
    %289 = vector.extract_strided_slice %286 {offsets = [0, 64], sizes = [8, 8], strides = [1, 1]} : vector<16x96xf32> to vector<8x8xf32>
    %cst_85 = arith.constant dense<0.000000e+00> : vector<8x8xf32>
    %290 = tpu.matmul %287, %288, %cst_85 {dimension_numbers = #tpu.dot_dimension_numbers<[1], [1], [0], [0], [0, 0, 1, 0], [], []>} : vector<8x8xf32>, vector<8x8xf32>, vector<8x8xf32> -> vector<8x8xf32>
    %cst_86 = arith.constant dense<0xFF800000> : vector<8xf32>
    %291 = vector.multi_reduction <maximumf>, %290, %cst_86 [1] : vector<8x8xf32> to vector<8xf32>
    %292 = vector.shape_cast %291 : vector<8xf32> to vector<8x1xf32>
    %293 = vector.broadcast %292 : vector<8x1xf32> to vector<8x8xf32>
    %294 = arith.subf %290, %293 : vector<8x8xf32>
    %295 = math.exp %294 : vector<8x8xf32>
    %cst_87 = arith.constant dense<0.000000e+00> : vector<8xf32>
    %296 = vector.multi_reduction <add>, %295, %cst_87 [1] : vector<8x8xf32> to vector<8xf32>
    %297 = vector.shape_cast %296 : vector<8xf32> to vector<8x1xf32>
    %298 = tpu.reciprocal %297 {approx = true} : vector<8x1xf32> -> vector<8x1xf32>
    %299 = vector.broadcast %298 : vector<8x1xf32> to vector<8x8xf32>
    %300 = arith.mulf %295, %299 : vector<8x8xf32>
    %cst_88 = arith.constant dense<0.000000e+00> : vector<8x8xf32>
    %301 = tpu.matmul %300, %289, %cst_88 {dimension_numbers = #tpu.dot_dimension_numbers<[1], [0], [0], [1], [0, 0, 1, 1], [], []>} : vector<8x8xf32>, vector<8x8xf32>, vector<8x8xf32> -> vector<8x8xf32>
    %302 = vector.extract_strided_slice %286 {offsets = [0, 8], sizes = [8, 8], strides = [1, 1]} : vector<16x96xf32> to vector<8x8xf32>
    %303 = vector.extract_strided_slice %286 {offsets = [0, 40], sizes = [8, 8], strides = [1, 1]} : vector<16x96xf32> to vector<8x8xf32>
    %304 = vector.extract_strided_slice %286 {offsets = [0, 72], sizes = [8, 8], strides = [1, 1]} : vector<16x96xf32> to vector<8x8xf32>
    %cst_89 = arith.constant dense<0.000000e+00> : vector<8x8xf32>
    %305 = tpu.matmul %302, %303, %cst_89 {dimension_numbers = #tpu.dot_dimension_numbers<[1], [1], [0], [0], [0, 0, 1, 0], [], []>} : vector<8x8xf32>, vector<8x8xf32>, vector<8x8xf32> -> vector<8x8xf32>
    %cst_90 = arith.constant dense<0xFF800000> : vector<8xf32>
    %306 = vector.multi_reduction <maximumf>, %305, %cst_90 [1] : vector<8x8xf32> to vector<8xf32>
    %307 = vector.shape_cast %306 : vector<8xf32> to vector<8x1xf32>
    %308 = vector.broadcast %307 : vector<8x1xf32> to vector<8x8xf32>
    %309 = arith.subf %305, %308 : vector<8x8xf32>
    %310 = math.exp %309 : vector<8x8xf32>
    %cst_91 = arith.constant dense<0.000000e+00> : vector<8xf32>
    %311 = vector.multi_reduction <add>, %310, %cst_91 [1] : vector<8x8xf32> to vector<8xf32>
    %312 = vector.shape_cast %311 : vector<8xf32> to vector<8x1xf32>
    %313 = tpu.reciprocal %312 {approx = true} : vector<8x1xf32> -> vector<8x1xf32>
    %314 = vector.broadcast %313 : vector<8x1xf32> to vector<8x8xf32>
    %315 = arith.mulf %310, %314 : vector<8x8xf32>
    %cst_92 = arith.constant dense<0.000000e+00> : vector<8x8xf32>
    %316 = tpu.matmul %315, %304, %cst_92 {dimension_numbers = #tpu.dot_dimension_numbers<[1], [0], [0], [1], [0, 0, 1, 1], [], []>} : vector<8x8xf32>, vector<8x8xf32>, vector<8x8xf32> -> vector<8x8xf32>
    %317 = vector.extract_strided_slice %286 {offsets = [0, 16], sizes = [8, 8], strides = [1, 1]} : vector<16x96xf32> to vector<8x8xf32>
    %318 = vector.extract_strided_slice %286 {offsets = [0, 48], sizes = [8, 8], strides = [1, 1]} : vector<16x96xf32> to vector<8x8xf32>
    %319 = vector.extract_strided_slice %286 {offsets = [0, 80], sizes = [8, 8], strides = [1, 1]} : vector<16x96xf32> to vector<8x8xf32>
    %cst_93 = arith.constant dense<0.000000e+00> : vector<8x8xf32>
    %320 = tpu.matmul %317, %318, %cst_93 {dimension_numbers = #tpu.dot_dimension_numbers<[1], [1], [0], [0], [0, 0, 1, 0], [], []>} : vector<8x8xf32>, vector<8x8xf32>, vector<8x8xf32> -> vector<8x8xf32>
    %cst_94 = arith.constant dense<0xFF800000> : vector<8xf32>
    %321 = vector.multi_reduction <maximumf>, %320, %cst_94 [1] : vector<8x8xf32> to vector<8xf32>
    %322 = vector.shape_cast %321 : vector<8xf32> to vector<8x1xf32>
    %323 = vector.broadcast %322 : vector<8x1xf32> to vector<8x8xf32>
    %324 = arith.subf %320, %323 : vector<8x8xf32>
    %325 = math.exp %324 : vector<8x8xf32>
    %cst_95 = arith.constant dense<0.000000e+00> : vector<8xf32>
    %326 = vector.multi_reduction <add>, %325, %cst_95 [1] : vector<8x8xf32> to vector<8xf32>
    %327 = vector.shape_cast %326 : vector<8xf32> to vector<8x1xf32>
    %328 = tpu.reciprocal %327 {approx = true} : vector<8x1xf32> -> vector<8x1xf32>
    %329 = vector.broadcast %328 : vector<8x1xf32> to vector<8x8xf32>
    %330 = arith.mulf %325, %329 : vector<8x8xf32>
    %cst_96 = arith.constant dense<0.000000e+00> : vector<8x8xf32>
    %331 = tpu.matmul %330, %319, %cst_96 {dimension_numbers = #tpu.dot_dimension_numbers<[1], [0], [0], [1], [0, 0, 1, 1], [], []>} : vector<8x8xf32>, vector<8x8xf32>, vector<8x8xf32> -> vector<8x8xf32>
    %332 = vector.extract_strided_slice %286 {offsets = [0, 24], sizes = [8, 8], strides = [1, 1]} : vector<16x96xf32> to vector<8x8xf32>
    %333 = vector.extract_strided_slice %286 {offsets = [0, 56], sizes = [8, 8], strides = [1, 1]} : vector<16x96xf32> to vector<8x8xf32>
    %334 = vector.extract_strided_slice %286 {offsets = [0, 88], sizes = [8, 8], strides = [1, 1]} : vector<16x96xf32> to vector<8x8xf32>
    %cst_97 = arith.constant dense<0.000000e+00> : vector<8x8xf32>
    %335 = tpu.matmul %332, %333, %cst_97 {dimension_numbers = #tpu.dot_dimension_numbers<[1], [1], [0], [0], [0, 0, 1, 0], [], []>} : vector<8x8xf32>, vector<8x8xf32>, vector<8x8xf32> -> vector<8x8xf32>
    %cst_98 = arith.constant dense<0xFF800000> : vector<8xf32>
    %336 = vector.multi_reduction <maximumf>, %335, %cst_98 [1] : vector<8x8xf32> to vector<8xf32>
    %337 = vector.shape_cast %336 : vector<8xf32> to vector<8x1xf32>
    %338 = vector.broadcast %337 : vector<8x1xf32> to vector<8x8xf32>
    %339 = arith.subf %335, %338 : vector<8x8xf32>
    %340 = math.exp %339 : vector<8x8xf32>
    %cst_99 = arith.constant dense<0.000000e+00> : vector<8xf32>
    %341 = vector.multi_reduction <add>, %340, %cst_99 [1] : vector<8x8xf32> to vector<8xf32>
    %342 = vector.shape_cast %341 : vector<8xf32> to vector<8x1xf32>
    %343 = tpu.reciprocal %342 {approx = true} : vector<8x1xf32> -> vector<8x1xf32>
    %344 = vector.broadcast %343 : vector<8x1xf32> to vector<8x8xf32>
    %345 = arith.mulf %340, %344 : vector<8x8xf32>
    %cst_100 = arith.constant dense<0.000000e+00> : vector<8x8xf32>
    %346 = tpu.matmul %345, %334, %cst_100 {dimension_numbers = #tpu.dot_dimension_numbers<[1], [0], [0], [1], [0, 0, 1, 1], [], []>} : vector<8x8xf32>, vector<8x8xf32>, vector<8x8xf32> -> vector<8x8xf32>
    %347 = tpu.concatenate %301, %316, %331, %346 in 1 : vector<8x8xf32>, vector<8x8xf32>, vector<8x8xf32>, vector<8x8xf32> -> vector<8x32xf32>
    %348 = vector.extract_strided_slice %286 {offsets = [8, 0], sizes = [8, 8], strides = [1, 1]} : vector<16x96xf32> to vector<8x8xf32>
    %349 = vector.extract_strided_slice %286 {offsets = [8, 32], sizes = [8, 8], strides = [1, 1]} : vector<16x96xf32> to vector<8x8xf32>
    %350 = vector.extract_strided_slice %286 {offsets = [8, 64], sizes = [8, 8], strides = [1, 1]} : vector<16x96xf32> to vector<8x8xf32>
    %cst_101 = arith.constant dense<0.000000e+00> : vector<8x8xf32>
    %351 = tpu.matmul %348, %349, %cst_101 {dimension_numbers = #tpu.dot_dimension_numbers<[1], [1], [0], [0], [0, 0, 1, 0], [], []>} : vector<8x8xf32>, vector<8x8xf32>, vector<8x8xf32> -> vector<8x8xf32>
    %cst_102 = arith.constant dense<0xFF800000> : vector<8xf32>
    %352 = vector.multi_reduction <maximumf>, %351, %cst_102 [1] : vector<8x8xf32> to vector<8xf32>
    %353 = vector.shape_cast %352 : vector<8xf32> to vector<8x1xf32>
    %354 = vector.broadcast %353 : vector<8x1xf32> to vector<8x8xf32>
    %355 = arith.subf %351, %354 : vector<8x8xf32>
    %356 = math.exp %355 : vector<8x8xf32>
    %cst_103 = arith.constant dense<0.000000e+00> : vector<8xf32>
    %357 = vector.multi_reduction <add>, %356, %cst_103 [1] : vector<8x8xf32> to vector<8xf32>
    %358 = vector.shape_cast %357 : vector<8xf32> to vector<8x1xf32>
    %359 = tpu.reciprocal %358 {approx = true} : vector<8x1xf32> -> vector<8x1xf32>
    %360 = vector.broadcast %359 : vector<8x1xf32> to vector<8x8xf32>
    %361 = arith.mulf %356, %360 : vector<8x8xf32>
    %cst_104 = arith.constant dense<0.000000e+00> : vector<8x8xf32>
    %362 = tpu.matmul %361, %350, %cst_104 {dimension_numbers = #tpu.dot_dimension_numbers<[1], [0], [0], [1], [0, 0, 1, 1], [], []>} : vector<8x8xf32>, vector<8x8xf32>, vector<8x8xf32> -> vector<8x8xf32>
    %363 = vector.extract_strided_slice %286 {offsets = [8, 8], sizes = [8, 8], strides = [1, 1]} : vector<16x96xf32> to vector<8x8xf32>
    %364 = vector.extract_strided_slice %286 {offsets = [8, 40], sizes = [8, 8], strides = [1, 1]} : vector<16x96xf32> to vector<8x8xf32>
    %365 = vector.extract_strided_slice %286 {offsets = [8, 72], sizes = [8, 8], strides = [1, 1]} : vector<16x96xf32> to vector<8x8xf32>
    %cst_105 = arith.constant dense<0.000000e+00> : vector<8x8xf32>
    %366 = tpu.matmul %363, %364, %cst_105 {dimension_numbers = #tpu.dot_dimension_numbers<[1], [1], [0], [0], [0, 0, 1, 0], [], []>} : vector<8x8xf32>, vector<8x8xf32>, vector<8x8xf32> -> vector<8x8xf32>
    %cst_106 = arith.constant dense<0xFF800000> : vector<8xf32>
    %367 = vector.multi_reduction <maximumf>, %366, %cst_106 [1] : vector<8x8xf32> to vector<8xf32>
    %368 = vector.shape_cast %367 : vector<8xf32> to vector<8x1xf32>
    %369 = vector.broadcast %368 : vector<8x1xf32> to vector<8x8xf32>
    %370 = arith.subf %366, %369 : vector<8x8xf32>
    %371 = math.exp %370 : vector<8x8xf32>
    %cst_107 = arith.constant dense<0.000000e+00> : vector<8xf32>
    %372 = vector.multi_reduction <add>, %371, %cst_107 [1] : vector<8x8xf32> to vector<8xf32>
    %373 = vector.shape_cast %372 : vector<8xf32> to vector<8x1xf32>
    %374 = tpu.reciprocal %373 {approx = true} : vector<8x1xf32> -> vector<8x1xf32>
    %375 = vector.broadcast %374 : vector<8x1xf32> to vector<8x8xf32>
    %376 = arith.mulf %371, %375 : vector<8x8xf32>
    %cst_108 = arith.constant dense<0.000000e+00> : vector<8x8xf32>
    %377 = tpu.matmul %376, %365, %cst_108 {dimension_numbers = #tpu.dot_dimension_numbers<[1], [0], [0], [1], [0, 0, 1, 1], [], []>} : vector<8x8xf32>, vector<8x8xf32>, vector<8x8xf32> -> vector<8x8xf32>
    %378 = vector.extract_strided_slice %286 {offsets = [8, 16], sizes = [8, 8], strides = [1, 1]} : vector<16x96xf32> to vector<8x8xf32>
    %379 = vector.extract_strided_slice %286 {offsets = [8, 48], sizes = [8, 8], strides = [1, 1]} : vector<16x96xf32> to vector<8x8xf32>
    %380 = vector.extract_strided_slice %286 {offsets = [8, 80], sizes = [8, 8], strides = [1, 1]} : vector<16x96xf32> to vector<8x8xf32>
    %cst_109 = arith.constant dense<0.000000e+00> : vector<8x8xf32>
    %381 = tpu.matmul %378, %379, %cst_109 {dimension_numbers = #tpu.dot_dimension_numbers<[1], [1], [0], [0], [0, 0, 1, 0], [], []>} : vector<8x8xf32>, vector<8x8xf32>, vector<8x8xf32> -> vector<8x8xf32>
    %cst_110 = arith.constant dense<0xFF800000> : vector<8xf32>
    %382 = vector.multi_reduction <maximumf>, %381, %cst_110 [1] : vector<8x8xf32> to vector<8xf32>
    %383 = vector.shape_cast %382 : vector<8xf32> to vector<8x1xf32>
    %384 = vector.broadcast %383 : vector<8x1xf32> to vector<8x8xf32>
    %385 = arith.subf %381, %384 : vector<8x8xf32>
    %386 = math.exp %385 : vector<8x8xf32>
    %cst_111 = arith.constant dense<0.000000e+00> : vector<8xf32>
    %387 = vector.multi_reduction <add>, %386, %cst_111 [1] : vector<8x8xf32> to vector<8xf32>
    %388 = vector.shape_cast %387 : vector<8xf32> to vector<8x1xf32>
    %389 = tpu.reciprocal %388 {approx = true} : vector<8x1xf32> -> vector<8x1xf32>
    %390 = vector.broadcast %389 : vector<8x1xf32> to vector<8x8xf32>
    %391 = arith.mulf %386, %390 : vector<8x8xf32>
    %cst_112 = arith.constant dense<0.000000e+00> : vector<8x8xf32>
    %392 = tpu.matmul %391, %380, %cst_112 {dimension_numbers = #tpu.dot_dimension_numbers<[1], [0], [0], [1], [0, 0, 1, 1], [], []>} : vector<8x8xf32>, vector<8x8xf32>, vector<8x8xf32> -> vector<8x8xf32>
    %393 = vector.extract_strided_slice %286 {offsets = [8, 24], sizes = [8, 8], strides = [1, 1]} : vector<16x96xf32> to vector<8x8xf32>
    %394 = vector.extract_strided_slice %286 {offsets = [8, 56], sizes = [8, 8], strides = [1, 1]} : vector<16x96xf32> to vector<8x8xf32>
    %395 = vector.extract_strided_slice %286 {offsets = [8, 88], sizes = [8, 8], strides = [1, 1]} : vector<16x96xf32> to vector<8x8xf32>
    %cst_113 = arith.constant dense<0.000000e+00> : vector<8x8xf32>
    %396 = tpu.matmul %393, %394, %cst_113 {dimension_numbers = #tpu.dot_dimension_numbers<[1], [1], [0], [0], [0, 0, 1, 0], [], []>} : vector<8x8xf32>, vector<8x8xf32>, vector<8x8xf32> -> vector<8x8xf32>
    %cst_114 = arith.constant dense<0xFF800000> : vector<8xf32>
    %397 = vector.multi_reduction <maximumf>, %396, %cst_114 [1] : vector<8x8xf32> to vector<8xf32>
    %398 = vector.shape_cast %397 : vector<8xf32> to vector<8x1xf32>
    %399 = vector.broadcast %398 : vector<8x1xf32> to vector<8x8xf32>
    %400 = arith.subf %396, %399 : vector<8x8xf32>
    %401 = math.exp %400 : vector<8x8xf32>
    %cst_115 = arith.constant dense<0.000000e+00> : vector<8xf32>
    %402 = vector.multi_reduction <add>, %401, %cst_115 [1] : vector<8x8xf32> to vector<8xf32>
    %403 = vector.shape_cast %402 : vector<8xf32> to vector<8x1xf32>
    %404 = tpu.reciprocal %403 {approx = true} : vector<8x1xf32> -> vector<8x1xf32>
    %405 = vector.broadcast %404 : vector<8x1xf32> to vector<8x8xf32>
    %406 = arith.mulf %401, %405 : vector<8x8xf32>
    %cst_116 = arith.constant dense<0.000000e+00> : vector<8x8xf32>
    %407 = tpu.matmul %406, %395, %cst_116 {dimension_numbers = #tpu.dot_dimension_numbers<[1], [0], [0], [1], [0, 0, 1, 1], [], []>} : vector<8x8xf32>, vector<8x8xf32>, vector<8x8xf32> -> vector<8x8xf32>
    %408 = tpu.concatenate %362, %377, %392, %407 in 1 : vector<8x8xf32>, vector<8x8xf32>, vector<8x8xf32>, vector<8x8xf32> -> vector<8x32xf32>
    %409 = tpu.concatenate %347, %408 in 0 : vector<8x32xf32>, vector<8x32xf32> -> vector<16x32xf32>
    %c1_117 = arith.constant 1 : index
    %c0_118 = arith.constant 0 : index
    %c0_119 = arith.constant 0 : index
    %410 = vector.load %arg3[%c1_117, %c0_118, %c0_119] : memref<2x32x32xf32, #tpu.memory_space<vmem>>, vector<1x32x32xf32>
    %411 = vector.shape_cast %410 : vector<1x32x32xf32> to vector<32x32xf32>
    %cst_120 = arith.constant dense<0.000000e+00> : vector<16x32xf32>
    %412 = tpu.matmul %409, %411, %cst_120 {dimension_numbers = #tpu.dot_dimension_numbers<[1], [0], [0], [1], [0, 0, 1, 1], [], []>} : vector<16x32xf32>, vector<32x32xf32>, vector<16x32xf32> -> vector<16x32xf32>
    %413 = vector.extract_strided_slice %0 {offsets = [3, 0], sizes = [1, 32], strides = [1, 1]} : vector<19x96xf32> to vector<1x32xf32>
    %414 = vector.broadcast %413 : vector<1x32xf32> to vector<16x32xf32>
    %415 = arith.addf %412, %414 : vector<16x32xf32>
    %416 = arith.addf %280, %415 : vector<16x32xf32>
    %cst_121 = arith.constant dense<0.000000e+00> : vector<16xf32>
    %417 = vector.multi_reduction <add>, %416, %cst_121 [1] : vector<16x32xf32> to vector<16xf32>
    %418 = vector.shape_cast %417 : vector<16xf32> to vector<16x1xf32>
    %cst_122 = arith.constant 3.200000e+01 : f32
    %419 = vector.broadcast %cst_122 : f32 to vector<16x1xf32>
    %420 = arith.divf %418, %419 : vector<16x1xf32>
    %421 = vector.broadcast %420 : vector<16x1xf32> to vector<16x32xf32>
    %422 = arith.subf %416, %421 : vector<16x32xf32>
    %423 = arith.mulf %422, %422 : vector<16x32xf32>
    %cst_123 = arith.constant dense<0.000000e+00> : vector<16xf32>
    %424 = vector.multi_reduction <add>, %423, %cst_123 [1] : vector<16x32xf32> to vector<16xf32>
    %425 = vector.shape_cast %424 : vector<16xf32> to vector<16x1xf32>
    %cst_124 = arith.constant 3.200000e+01 : f32
    %426 = vector.broadcast %cst_124 : f32 to vector<16x1xf32>
    %427 = arith.divf %425, %426 : vector<16x1xf32>
    %428 = vector.broadcast %420 : vector<16x1xf32> to vector<16x32xf32>
    %429 = arith.subf %416, %428 : vector<16x32xf32>
    %cst_125 = arith.constant 9.99999974E-6 : f32
    %430 = vector.broadcast %cst_125 : f32 to vector<16x1xf32>
    %431 = arith.addf %427, %430 : vector<16x1xf32>
    %432 = math.rsqrt %431 : vector<16x1xf32>
    %433 = vector.broadcast %432 : vector<16x1xf32> to vector<16x32xf32>
    %434 = arith.mulf %429, %433 : vector<16x32xf32>
    %435 = vector.extract_strided_slice %0 {offsets = [12, 0], sizes = [1, 32], strides = [1, 1]} : vector<19x96xf32> to vector<1x32xf32>
    %436 = vector.broadcast %435 : vector<1x32xf32> to vector<16x32xf32>
    %437 = arith.mulf %434, %436 : vector<16x32xf32>
    %438 = vector.extract_strided_slice %0 {offsets = [13, 0], sizes = [1, 32], strides = [1, 1]} : vector<19x96xf32> to vector<1x32xf32>
    %439 = vector.broadcast %438 : vector<1x32xf32> to vector<16x32xf32>
    %440 = arith.addf %437, %439 : vector<16x32xf32>
    %c1_126 = arith.constant 1 : index
    %c0_127 = arith.constant 0 : index
    %c0_128 = arith.constant 0 : index
    %441 = vector.load %arg4[%c1_126, %c0_127, %c0_128] : memref<2x32x64xf32, #tpu.memory_space<vmem>>, vector<1x32x64xf32>
    %442 = vector.shape_cast %441 : vector<1x32x64xf32> to vector<32x64xf32>
    %cst_129 = arith.constant dense<0.000000e+00> : vector<16x64xf32>
    %443 = tpu.matmul %440, %442, %cst_129 {dimension_numbers = #tpu.dot_dimension_numbers<[1], [0], [0], [1], [0, 0, 1, 1], [], []>} : vector<16x32xf32>, vector<32x64xf32>, vector<16x64xf32> -> vector<16x64xf32>
    %444 = vector.extract_strided_slice %0 {offsets = [5, 0], sizes = [1, 64], strides = [1, 1]} : vector<19x96xf32> to vector<1x64xf32>
    %445 = vector.broadcast %444 : vector<1x64xf32> to vector<16x64xf32>
    %446 = arith.addf %443, %445 : vector<16x64xf32>
    %cst_130 = arith.constant 0.000000e+00 : f32
    %447 = vector.broadcast %cst_130 : f32 to vector<16x64xf32>
    %448 = arith.maximumf %446, %447 : vector<16x64xf32>
    %c1_131 = arith.constant 1 : index
    %c0_132 = arith.constant 0 : index
    %c0_133 = arith.constant 0 : index
    %449 = vector.load %arg5[%c1_131, %c0_132, %c0_133] : memref<2x64x32xf32, #tpu.memory_space<vmem>>, vector<1x64x32xf32>
    %450 = vector.shape_cast %449 : vector<1x64x32xf32> to vector<64x32xf32>
    %cst_134 = arith.constant dense<0.000000e+00> : vector<16x32xf32>
    %451 = tpu.matmul %448, %450, %cst_134 {dimension_numbers = #tpu.dot_dimension_numbers<[1], [0], [0], [1], [0, 0, 1, 1], [], []>} : vector<16x64xf32>, vector<64x32xf32>, vector<16x32xf32> -> vector<16x32xf32>
    %452 = vector.extract_strided_slice %0 {offsets = [7, 0], sizes = [1, 32], strides = [1, 1]} : vector<19x96xf32> to vector<1x32xf32>
    %453 = vector.broadcast %452 : vector<1x32xf32> to vector<16x32xf32>
    %454 = arith.addf %451, %453 : vector<16x32xf32>
    %455 = arith.addf %440, %454 : vector<16x32xf32>
    %cst_135 = arith.constant dense<0.000000e+00> : vector<16xf32>
    %456 = vector.multi_reduction <add>, %455, %cst_135 [1] : vector<16x32xf32> to vector<16xf32>
    %457 = vector.shape_cast %456 : vector<16xf32> to vector<16x1xf32>
    %cst_136 = arith.constant 3.200000e+01 : f32
    %458 = vector.broadcast %cst_136 : f32 to vector<16x1xf32>
    %459 = arith.divf %457, %458 : vector<16x1xf32>
    %460 = vector.broadcast %459 : vector<16x1xf32> to vector<16x32xf32>
    %461 = arith.subf %455, %460 : vector<16x32xf32>
    %462 = arith.mulf %461, %461 : vector<16x32xf32>
    %cst_137 = arith.constant dense<0.000000e+00> : vector<16xf32>
    %463 = vector.multi_reduction <add>, %462, %cst_137 [1] : vector<16x32xf32> to vector<16xf32>
    %464 = vector.shape_cast %463 : vector<16xf32> to vector<16x1xf32>
    %cst_138 = arith.constant 3.200000e+01 : f32
    %465 = vector.broadcast %cst_138 : f32 to vector<16x1xf32>
    %466 = arith.divf %464, %465 : vector<16x1xf32>
    %467 = vector.broadcast %459 : vector<16x1xf32> to vector<16x32xf32>
    %468 = arith.subf %455, %467 : vector<16x32xf32>
    %cst_139 = arith.constant 9.99999974E-6 : f32
    %469 = vector.broadcast %cst_139 : f32 to vector<16x1xf32>
    %470 = arith.addf %466, %469 : vector<16x1xf32>
    %471 = math.rsqrt %470 : vector<16x1xf32>
    %472 = vector.broadcast %471 : vector<16x1xf32> to vector<16x32xf32>
    %473 = arith.mulf %468, %472 : vector<16x32xf32>
    %474 = vector.extract_strided_slice %0 {offsets = [14, 0], sizes = [1, 32], strides = [1, 1]} : vector<19x96xf32> to vector<1x32xf32>
    %475 = vector.broadcast %474 : vector<1x32xf32> to vector<16x32xf32>
    %476 = arith.mulf %473, %475 : vector<16x32xf32>
    %477 = vector.extract_strided_slice %0 {offsets = [15, 0], sizes = [1, 32], strides = [1, 1]} : vector<19x96xf32> to vector<1x32xf32>
    %478 = vector.broadcast %477 : vector<1x32xf32> to vector<16x32xf32>
    %479 = arith.addf %476, %478 : vector<16x32xf32>
    %cst_140 = arith.constant dense<0.000000e+00> : vector<16xf32>
    %480 = vector.multi_reduction <add>, %479, %cst_140 [1] : vector<16x32xf32> to vector<16xf32>
    %481 = vector.shape_cast %480 : vector<16xf32> to vector<16x1xf32>
    %cst_141 = arith.constant 3.200000e+01 : f32
    %482 = vector.broadcast %cst_141 : f32 to vector<16x1xf32>
    %483 = arith.divf %481, %482 : vector<16x1xf32>
    %484 = vector.broadcast %483 : vector<16x1xf32> to vector<16x32xf32>
    %485 = arith.subf %479, %484 : vector<16x32xf32>
    %486 = arith.mulf %485, %485 : vector<16x32xf32>
    %cst_142 = arith.constant dense<0.000000e+00> : vector<16xf32>
    %487 = vector.multi_reduction <add>, %486, %cst_142 [1] : vector<16x32xf32> to vector<16xf32>
    %488 = vector.shape_cast %487 : vector<16xf32> to vector<16x1xf32>
    %cst_143 = arith.constant 3.200000e+01 : f32
    %489 = vector.broadcast %cst_143 : f32 to vector<16x1xf32>
    %490 = arith.divf %488, %489 : vector<16x1xf32>
    %491 = vector.broadcast %483 : vector<16x1xf32> to vector<16x32xf32>
    %492 = arith.subf %479, %491 : vector<16x32xf32>
    %cst_144 = arith.constant 9.99999974E-6 : f32
    %493 = vector.broadcast %cst_144 : f32 to vector<16x1xf32>
    %494 = arith.addf %490, %493 : vector<16x1xf32>
    %495 = math.rsqrt %494 : vector<16x1xf32>
    %496 = vector.broadcast %495 : vector<16x1xf32> to vector<16x32xf32>
    %497 = arith.mulf %492, %496 : vector<16x32xf32>
    %498 = vector.extract_strided_slice %0 {offsets = [17, 0], sizes = [1, 32], strides = [1, 1]} : vector<19x96xf32> to vector<1x32xf32>
    %499 = vector.broadcast %498 : vector<1x32xf32> to vector<16x32xf32>
    %500 = arith.mulf %497, %499 : vector<16x32xf32>
    %501 = vector.extract_strided_slice %0 {offsets = [18, 0], sizes = [1, 32], strides = [1, 1]} : vector<19x96xf32> to vector<1x32xf32>
    %502 = vector.broadcast %501 : vector<1x32xf32> to vector<16x32xf32>
    %503 = arith.addf %500, %502 : vector<16x32xf32>
    %c0_145 = arith.constant 0 : index
    %c0_146 = arith.constant 0 : index
    %504 = vector.load %arg8[%c0_145, %c0_146] : memref<16x32xf32, #tpu.memory_space<vmem>>, vector<16x32xf32>
    tpu.vector_store %arg8[%c0_145, %c0_146], %503 {strides = array<i32>} : memref<16x32xf32, #tpu.memory_space<vmem>>, vector<16x32xf32>,
    return
  }
  func.func @transform_0(%arg0: i32) -> (i32, i32) {
    %c0_i32 = arith.constant 0 : i32
    %c0_i32_0 = arith.constant 0 : i32
    %c0_i32_1 = arith.constant 0 : i32
    return %c0_i32, %c0_i32_0 : i32, i32
  }
  func.func @transform_1(%arg0: i32) -> (i32, i32, i32) {
    %c0_i32 = arith.constant 0 : i32
    %c0_i32_0 = arith.constant 0 : i32
    %c0_i32_1 = arith.constant 0 : i32
    %c0_i32_2 = arith.constant 0 : i32
    return %c0_i32, %c0_i32_0, %c0_i32_1 : i32, i32, i32
  }
  func.func @transform_2(%arg0: i32) -> (i32, i32, i32) {
    %c0_i32 = arith.constant 0 : i32
    %c0_i32_0 = arith.constant 0 : i32
    %c0_i32_1 = arith.constant 0 : i32
    %c0_i32_2 = arith.constant 0 : i32
    return %c0_i32, %c0_i32_0, %c0_i32_1 : i32, i32, i32
  }
  func.func @transform_3(%arg0: i32) -> (i32, i32, i32) {
    %c0_i32 = arith.constant 0 : i32
    %c0_i32_0 = arith.constant 0 : i32
    %c0_i32_1 = arith.constant 0 : i32
    %c0_i32_2 = arith.constant 0 : i32
    return %c0_i32, %c0_i32_0, %c0_i32_1 : i32, i32, i32
  }
  func.func @transform_4(%arg0: i32) -> (i32, i32, i32) {
    %c0_i32 = arith.constant 0 : i32
    %c0_i32_0 = arith.constant 0 : i32
    %c0_i32_1 = arith.constant 0 : i32
    %c0_i32_2 = arith.constant 0 : i32
    return %c0_i32, %c0_i32_0, %c0_i32_1 : i32, i32, i32
  }
  func.func @transform_5(%arg0: i32) -> (i32, i32) {
    %c0_i32 = arith.constant 0 : i32
    %c0_i32_0 = arith.constant 0 : i32
    %c0_i32_1 = arith.constant 0 : i32
    return %c0_i32, %c0_i32_0 : i32, i32
  }
  func.func @transform_6(%arg0: i32) -> (i32, i32) {
    %c0_i32 = arith.constant 0 : i32
    %c0_i32_0 = arith.constant 0 : i32
    %c0_i32_1 = arith.constant 0 : i32
    return %c0_i32, %c0_i32_0 : i32, i32
  }
  func.func @transform_7(%arg0: i32) -> (i32, i32) {
    %c0_i32 = arith.constant 0 : i32
    %c0_i32_0 = arith.constant 0 : i32
    %c0_i32_1 = arith.constant 0 : i32
    return %c0_i32, %c0_i32_0 : i32, i32
  }
}

</mosaic_0001>

<bundles_post_ra>
// kernel: mul.16
= control target key start
LH: loop header
LB: loop body
LE: loop exit
PB: predicated region body
PF: predicated region fallthrough
CT: control target
= control target key end

     0   :  { %s30_s8 = smov 32   ;;  %vm7_vm0 = vcmask 261120   ;;  %vm13_vm1 = vcmask 785920   ;;  %vm19_vm2 = vcmask 523520   ;;  %s47_s0 = inlined_call_operand.vmem [shape: f32[3,32], index: 0, kind: input, shape index: {}]   ;;  %s48_s1 = inlined_call_operand.vmem [shape: f32[96], index: 1, kind: output, shape index: {}]  }
   0x1   :  { %v4_v0 = vld [vmem:[%s47_s0] sm:$0xf]  ;;  %s29_s0 = smov 64  }
   0x2   :  { %5 = vst [vmem:[#allocation1] sm:$0xf] %v4_v0 }
   0x9   :  { %v10_v1 = vld [vmem:[#allocation1 + $0x2] sm:$0x1]   ;;  %v16_v2 = vld [vmem:[#allocation1 + $0x1] sm:$0x1]   ;;  %v6_v3 = vld [vmem:[#allocation1] sm:$0x1]  }
   0xa   :  { %11 = vrot.lane.b32.xlu0 %v10_v1, %s29_s0  ;;  %8 = vst.msk [vmem:[#allocation0] sm:$0x1] %vm7_vm0, %v6_v3  }
  0x12   :  { %17 = vrot.lane.b32.xlu0 %v16_v2, %s30_s8 }
  0x7c   :  { %v12_v4 = vpop.permute.xlu0 %11  }
  0x7d   :  { %14 = vst.msk [vmem:[#allocation0] sm:$0x1] %vm13_vm1, %v12_v4  }
  0x84   :  { %v18_v5 = vpop.permute.xlu0 %17  }
  0x85   :  { %20 = vst.msk [vmem:[#allocation0] sm:$0x1] %vm19_vm2, %v18_v5  }
  0x8c   :  { %v23_v6 = vld [vmem:[#allocation0] sm:$0x1] }
  0x8d   :  { %26 = vst [vmem:[%s48_s1] sm:$0x1] %v23_v6 }

// kernel: tile.8
= control target key start
LH: loop header
LB: loop body
LE: loop exit
PB: predicated region body
PF: predicated region fallthrough
CT: control target
= control target key end

     0   :  { %s22_s0 = inlined_call_operand.vmem [shape: f32[32], index: 0, kind: input, shape index: {}]   ;;  %s23_s1 = inlined_call_operand.vmem [shape: f32[3,32], index: 1, kind: output, shape index: {}]  }
   0x1   :  { %v4_v0 = vld [vmem:[%s22_s0] ss:$0 sm:$0xff] }
   0x2   :  { %5 = vst [vmem:[%s23_s1] sm:$0xf] %v4_v0 }

// kernel: encoder_forward.1
= control target key start
LH: loop header
LB: loop body
LE: loop exit
PB: predicated region body
PF: predicated region fallthrough
CT: control target
= control target key end

     0   :  { %s3642_s0 = inlined_call_operand.vmem [shape: f32[32,32], index: 0, kind: input, shape index: {}]   ;;  %s3643_s1 = inlined_call_operand.vmem [shape: f32[2,32,96], index: 1, kind: input, shape index: {}]   ;;  %s3644_s2 = inlined_call_operand.vmem [shape: f32[2,32,32], index: 2, kind: input, shape index: {}]   ;;  %s3645_s3 = inlined_call_operand.vmem [shape: f32[2,32,64], index: 3, kind: input, shape index: {}]   ;;  %s3646_s4 = inlined_call_operand.vmem [shape: f32[2,64,32], index: 4, kind: input, shape index: {}]   ;;  %s3647_s5 = inlined_call_operand.vmem [shape: f32[32,96], index: 5, kind: input, shape index: {}]   ;;  %s3648_s6 = inlined_call_operand.vmem [shape: f32[19,96], index: 6, kind: input, shape index: {}]   ;;  %s3649_s7 = inlined_call_operand.hbm [shape: f32[16,32], index: 7, kind: output, shape index: {}]  }
   0x1   :  { %v37_v0 = vld [vmem:[%s3643_s1 + $0x18] sm:$0xff]  ;;  %v36_v1 = vld [vmem:[%s3643_s1 + $0x10] sm:$0xff]  ;;  %v35_v2 = vld [vmem:[%s3643_s1 + $0x8] sm:$0xff] }
   0x2   :  { %64 = vmatpush.msra.mxu0 %v37_v0 }
   0x3   :  { %12 = vsyncpa [#allocation3], 0  ;;  %v34_v3 = vld [vmem:[%s3643_s1] sm:$0xff]  ;;  %vm39_vm0 = vcmask 261120   ;;  %v2849_v5 = vld [vmem:[%s3642_s0 + $0x8] sm:$0xff]  ;;  %s2769_s15 = smov 120  }
   0x4   :  { %65 = vmatpush.msra.mxu0 %v36_v1  ;;  %v2842_v4 = vld [vmem:[%s3642_s0] sm:$0xff]  ;;  %s2770_s16 = smov 88   ;;  %s2771_s17 = smov 96   ;;  %vm87_vm1 = vcmask 64512   ;;  %v2878_v15 = vld [vmem:[%s3642_s0 + $0x10] sm:$0xff]  ;;  %v2887_v17 = vld [vmem:[%s3642_s0 + $0x18] sm:$0xff] }
   0x5   :  { %v2856_v6 = vld [vmem:[%s3648_s6] sm:$0xff]  ;;  %s2772_s18 = smov 56   ;;  %s2773_s19 = smov 72   ;;  %vm119_vm2 = vcmask 130048   ;;  %vm493_vm3 = vcmask 195584  }
   0x6   :  { %66 = vmatpush.msra.mxu0 %v35_v2  ;;  %v2859_v7 = vperm.slane %v2856_v6, 0  ;;  %s2774_s0 = smov 80   ;;  %s2775_s24 = smov 104  }
   0x7   :  { %s2776_s25 = smov 64   ;;  %s2777_s26 = smov 112  }
   0x8   :  { %67 = vmatpush.msra.mxu0 %v34_v3  ;;  %s2778_s27 = smov 40   ;;  %s2779_s28 = smov 48  }
   0x9   :  { %2414 = vmatmul.msk.f32.vlgmr.msra.gmra.mxu0 %vm39_vm0, %v2842_v4  ;;  %s2780_s29 = smov 8   ;;  %s2781_s30 = smov 16  }
   0xa   :  { %s2782_s8 = smov 24  }
  0x11   :  { %2415 = vmatmul.msk.f32.gmra.mxu0 %vm39_vm0, %v2849_v5 }
  0x19   :  { %2416 = vmatmul.msk.f32.gmra.mxu0 %vm39_vm0, %v2878_v15 }
  0x21   :  { %2417 = vmatmul.msk.f32.gmra.mxu0 %vm39_vm0, %v2887_v17 }
  0x86   :  { %v69_v8 = vpop.f32.mrf.mxu0 }
  0x87   :  { %v70_v9 = vadd.f32 %v69_v8, %v2859_v7 }
  0x89   :  { %177 = vrot.lane.b32.xlu2 %v70_v9, %s2769_s15 }
  0x8e   :  { %v72_v10 = vpop.f32.mrf.mxu0 }
  0x8f   :  { %v73_v11 = vadd.f32 %v72_v10, %v2859_v7 }
  0x91   :  { %183 = vrot.lane.b32.xlu1 %v73_v11, %s2770_s16  ;;  %85 = vrot.lane.b32.xlu0 %v73_v11, %s2771_s17  ;;  %v2867_v12 = vpack.i.bf16 %v70_v9, %v73_v11 }
  0x92   :  { %179 = vrot.lane.b32.xlu2 %v73_v11, %s2769_s15 }
  0x96   :  { %v75_v29 = vpop.f32.mrf.mxu0 }
  0x97   :  { %v2921_v32 = vadd.f32 %v75_v29, %v2859_v7 }
  0x99   :  { %181 = vrot.lane.b32.xlu1 %v70_v9, %s2770_s16  ;;  %83 = vrot.lane.b32.xlu0 %v70_v9, %s2771_s17 }
  0x9a   :  { %2566 = vrot.lane.b32.xlu2 %v2867_v12, %s2772_s18 }
  0x9e   :  { %v78_v30 = vpop.f32.mrf.mxu0 }
  0x9f   :  { %v2911_v31 = vadd.f32 %v78_v30, %v2859_v7 }
  0xa2   :  { %373 = vrot.lane.b32.xlu2 %v70_v9, %s2773_s19 }
  0xe3   :  { %v178_v19 = vpop.permute.xlu2 %177 }
  0xec   :  { %v180_v20 = vpop.permute.xlu2 %179 }
  0xf4   :  { %v2567_v44 = vpop.permute.xlu2 %2566 }
  0xf5   :  { %v2568_v49 = vunpack.i.l.bf16 %v2567_v44  ;;  %v2569_v50 = vunpack.i.h.bf16 %v2567_v44 }
  0xfc   :  { %v374_v48 = vpop.permute.xlu2 %373 }
 0x103   :  { %v86_v13 = vpop.permute.xlu0 %85  ;;  %v184_v14 = vpop.permute.xlu1 %183 }
 0x104   :  { %2418 = vmatpush.xpose.msk.msra.mxu3 %vm87_vm1, %v86_v13 }
 0x10b   :  { %v84_v16 = vpop.permute.xlu0 %83  ;;  %v182_v18 = vpop.permute.xlu1 %181 }
 0x10c   :  { %2419 = vmatpush.xpose.msk.msra.mxu3 %vm87_vm1, %v84_v16 }
 0x10f   :  { %2420 = vmatmul.msk.f32.vlgmr.msra.gmra.mxu3 %vm87_vm1, %v70_v9 }
 0x110   :  { %2424 = vmatpush.xpose.msk.msrb.mxu3 %vm87_vm1, %v184_v14 }
 0x114   :  { %2425 = vmatpush.xpose.msk.msrb.mxu3 %vm87_vm1, %v182_v18 }
 0x117   :  { %2421 = vmatmul.msk.f32.gmra.mxu3 %vm87_vm1, %v73_v11 }
 0x11f   :  { %2426 = vmatmul.msk.f32.vlgmr.msrb.gmra.mxu3 %vm87_vm1, %v178_v19 }
 0x127   :  { %2427 = vmatmul.msk.f32.gmra.mxu3 %vm87_vm1, %v180_v20 }
 0x192   :  { %v113_v21 = vpop.f32.mrf.mxu3 }
 0x193   :  { %v120_v22 = vsel %vm119_vm2, %v113_v21, -inf }
 0x194   :  { %121 = vmax.xlane.f32.xlu0 %v120_v22 }
 0x19a   :  { %v116_v23 = vpop.f32.mrf.mxu3 }
 0x19b   :  { %v123_v24 = vsel %vm119_vm2, %v116_v23, -inf }
 0x19c   :  { %124 = vmax.xlane.f32.xlu1 %v123_v24 }
 0x1a2   :  { %v2898_v25 = vpop.f32.mrf.mxu3 }
 0x1a3   :  { %v216_v26 = vsel %vm119_vm2, %v2898_v25, -inf }
 0x1a4   :  { %217 = vmax.xlane.f32.xlu2 %v216_v26 }
 0x1a8   :  { %279 = vrot.lane.b32.xlu0 %v73_v11, %s2774_s0 }
 0x1aa   :  { %v2903_v27 = vpop.f32.mrf.mxu3 }
 0x1ab   :  { %v219_v28 = vsel %vm119_vm2, %v2903_v27, -inf }
 0x1ac   :  { %220 = vmax.xlane.f32.xlu2 %v219_v28 }
 0x1b0   :  { %369 = vrot.lane.b32.xlu0 %v70_v9, %s2775_s24 }
 0x1b5   :  { %2561 = vrot.lane.b32.xlu1 %v2867_v12, %s2776_s25 }
 0x1b8   :  { %500 = vrot.lane.b32.xlu0 %v2911_v31, %s2771_s17 }
 0x1bd   :  { %375 = vrot.lane.b32.xlu1 %v73_v11, %s2773_s19 }
 0x1c4   :  { %275 = vrot.lane.b32.xlu2 %v73_v11, %s2777_s26 }
 0x1c5   :  { %277 = vrot.lane.b32.xlu1 %v70_v9, %s2774_s0 }
 0x1cd   :  { %273 = vrot.lane.b32.xlu1 %v70_v9, %s2777_s26 }
 0x1d5   :  { %371 = vrot.lane.b32.xlu1 %v73_v11, %s2775_s24 }
 0x1dd   :  { %498 = vrot.lane.b32.xlu1 %v2921_v32, %s2771_s17 }
 0x1e5   :  { %592 = vrot.lane.b32.xlu1 %v2911_v31, %s2769_s15 }
 0x1ed   :  { %690 = vrot.lane.b32.xlu1 %v2921_v32, %s2774_s0 }
 0x1f5   :  { %782 = vrot.lane.b32.xlu1 %v2921_v32, %s2775_s24 }
 0x207   :  { %v122_v33 = vpop.xlane.xlu0 %121 }
 0x208   :  { %v126_v34 = vsub.f32 %v113_v21, %v122_v33 }
 0x20a   :  { %v128_v35 = vmul.f32 1.442695, %v126_v34 }
 0x20c   :  { %2605 = vpow2.f32 %v128_v35 }
 0x20f   :  { %v125_v36 = vpop.xlane.xlu1 %124 }
 0x210   :  { %v127_v37 = vsub.f32 %v116_v23, %v125_v36 }
 0x212   :  { %v2931_v38 = vpop.eup %2605  ;;  %v130_v39 = vmul.f32 1.442695, %v127_v37 }
 0x213   :  { %v132_v40 = vsel %vm119_vm2, %v2931_v38, 0.0 }
 0x214   :  { %2607 = vpow2.f32 %v130_v39  ;;  %133 = vadd.xlane.f32.xlu0 %v132_v40 }
 0x217   :  { %v218_v53 = vpop.xlane.xlu2 %217 }
 0x218   :  { %v222_v58 = vsub.f32 %v2898_v25, %v218_v53 }
 0x21a   :  { %v2935_v41 = vpop.eup %2607  ;;  %v280_v42 = vpop.permute.xlu0 %279  ;;  %v224_v59 = vmul.f32 1.442695, %v222_v58 }
 0x21b   :  { %2430 = vmatpush.xpose.msk.msra.mxu1 %vm87_vm1, %v280_v42  ;;  %v135_v43 = vsel %vm119_vm2, %v2935_v41, 0.0 }
 0x21c   :  { %136 = vadd.xlane.f32.xlu2 %v135_v43  ;;  %2609 = vpow2.f32 %v224_v59 }
 0x21f   :  { %v221_v56 = vpop.xlane.xlu2 %220 }
 0x220   :  { %v223_v62 = vsub.f32 %v2903_v27, %v221_v56 }
 0x222   :  { %v2942_v51 = vpop.permute.xlu0 %369  ;;  %v226_v63 = vmul.f32 1.442695, %v223_v62  ;;  %v2610_v0 = vpop.eup %2609 }
 0x223   :  { %v228_v2 = vsel %vm119_vm2, %v2610_v0, 0.0 }
 0x224   :  { %2611 = vpow2.f32 %v226_v63 }
 0x227   :  { %v2562_v45 = vpop.permute.xlu1 %2561  ;;  %v276_v60 = vpop.permute.xlu2 %275 }
 0x228   :  { %594 = vrot.lane.b32.xlu0 %v2921_v32, %s2770_s16  ;;  %v2563_v46 = vunpack.i.l.bf16 %v2562_v45  ;;  %v2564_v47 = vunpack.i.h.bf16 %v2562_v45 }
 0x22a   :  { %168 = vmatpush.msra.mxu2 %v2563_v46  ;;  %v501_v54 = vpop.permute.xlu0 %500  ;;  %v2612_v3 = vpop.eup %2611 }
 0x22b   :  { %v231_v7 = vsel %vm119_vm2, %v2612_v3, 0.0 }
 0x22c   :  { %169 = vmatpush.msra.mxu2 %v2564_v47 }
 0x22e   :  { %264 = vmatpush.msrb.mxu2 %v2568_v49 }
 0x22f   :  { %v376_v52 = vpop.permute.xlu1 %375 }
 0x230   :  { %265 = vmatpush.msrb.mxu2 %v2569_v50 }
 0x234   :  { %596 = vrot.lane.b32.xlu2 %v2911_v31, %s2770_s16 }
 0x237   :  { %v278_v55 = vpop.permute.xlu1 %277 }
 0x238   :  { %2431 = vmatpush.xpose.msk.msra.mxu1 %vm87_vm1, %v278_v55 }
 0x23c   :  { %2442 = vmatpush.xpose.msk.msrb.mxu1 %vm87_vm1, %v501_v54  ;;  %590 = vrot.lane.b32.xlu2 %v2921_v32, %s2769_s15 }
 0x23f   :  { %v274_v57 = vpop.permute.xlu1 %273 }
 0x240   :  { %2432 = vmatmul.msk.f32.vlgmr.msra.gmra.mxu1 %vm87_vm1, %v274_v57 }
 0x244   :  { %788 = vrot.lane.b32.xlu2 %v2911_v31, %s2773_s19 }
 0x247   :  { %v2954_v61 = vpop.permute.xlu1 %371 }
 0x248   :  { %2433 = vmatmul.msk.f32.gmra.mxu1 %vm87_vm1, %v276_v60 }
 0x24c   :  { %686 = vrot.lane.b32.xlu2 %v2921_v32, %s2777_s26 }
 0x24f   :  { %v499_v1 = vpop.permute.xlu1 %498 }
 0x250   :  { %2443 = vmatpush.xpose.msk.msrb.mxu1 %vm87_vm1, %v499_v1 }
 0x252   :  { %229 = vadd.xlane.f32.xlu0 %v228_v2  ;;  %v3037_v2 = vpack.i.bf16 %v2921_v32, %v2911_v31 }
 0x253   :  { %2444 = vmatmul.msk.f32.vlgmr.msrb.gmra.mxu1 %vm87_vm1, %v2921_v32 }
 0x254   :  { %784 = vrot.lane.b32.xlu2 %v2911_v31, %s2775_s24 }
 0x257   :  { %v593_v36 = vpop.permute.xlu1 %592 }
 0x25a   :  { %232 = vadd.xlane.f32.xlu0 %v231_v7 }
 0x25b   :  { %2445 = vmatmul.msk.f32.gmra.mxu1 %vm87_vm1, %v2911_v31 }
 0x25f   :  { %v691_v39 = vpop.permute.xlu1 %690 }
 0x267   :  { %v783_v43 = vpop.permute.xlu1 %782 }
 0x26e   :  { %692 = vrot.lane.b32.xlu0 %v2911_v31, %s2774_s0 }
 0x276   :  { %786 = vrot.lane.b32.xlu0 %v2921_v32, %s2773_s19 }
 0x27e   :  { %688 = vrot.lane.b32.xlu0 %v2911_v31, %s2777_s26 }
 0x287   :  { %v134_v8 = vpop.xlane.xlu0 %133 }
 0x288   :  { %2613 = vrcp.f32 %v134_v8 }
 0x28e   :  { %v2614_v9 = vpop.eup %2613 }
 0x28f   :  { %v137_v10 = vpop.xlane.xlu2 %136  ;;  %v140_v11 = vmul.f32 %v2614_v9, %v2931_v38 }
 0x290   :  { %2615 = vrcp.f32 %v137_v10 }
 0x291   :  { %2422 = vmatmul.msk.f32.vlgmr.msra.gmra.mxu2 %vm119_vm2, %v140_v11 }
 0x292   :  { %2436 = vmatpush.xpose.msk.msra.mxu2 %vm87_vm1, %v376_v52 }
 0x296   :  { %v2616_v13 = vpop.eup %2615  ;;  %2437 = vmatpush.xpose.msk.msra.mxu2 %vm87_vm1, %v374_v48 }
 0x297   :  { %v141_v14 = vmul.f32 %v2616_v13, %v2935_v41  ;;  %v597_v23 = vpop.permute.xlu2 %596 }
 0x299   :  { %2423 = vmatmul.msk.f32.gmra.mxu2 %vm119_vm2, %v141_v14 }
 0x29a   :  { %v595_v16 = vpop.permute.xlu0 %594 }
 0x29f   :  { %v591_v29 = vpop.permute.xlu2 %590 }
 0x2a7   :  { %v789_v37 = vpop.permute.xlu2 %788 }
 0x2af   :  { %v687_v40 = vpop.permute.xlu2 %686 }
 0x2b7   :  { %v785_v44 = vpop.permute.xlu2 %784 }
 0x2bd   :  { %v306_v18 = vpop.f32.mrf.mxu1 }
 0x2be   :  { %v312_v19 = vsel %vm119_vm2, %v306_v18, -inf }
 0x2bf   :  { %313 = vmax.xlane.f32.xlu1 %v312_v19 }
 0x2c5   :  { %v230_v20 = vpop.xlane.xlu0 %229  ;;  %v309_v21 = vpop.f32.mrf.mxu1 }
 0x2c6   :  { %2617 = vrcp.f32 %v230_v20  ;;  %v315_v22 = vsel %vm119_vm2, %v309_v21, -inf }
 0x2c7   :  { %316 = vmax.xlane.f32.xlu2 %v315_v22 }
 0x2cc   :  { %v2618_v24 = vpop.eup %2617 }
 0x2cd   :  { %v233_v25 = vpop.xlane.xlu0 %232  ;;  %v236_v26 = vmul.f32 %v2618_v24, %v2610_v0 }
 0x2ce   :  { %2619 = vrcp.f32 %v233_v25 }
 0x2cf   :  { %2428 = vmatmul.msk.f32.vlgmr.msrb.gmra.mxu2 %vm119_vm2, %v236_v26 }
 0x2d0   :  { %2448 = vmatpush.xpose.msk.msrb.mxu2 %vm87_vm1, %v597_v23  ;;  %v2985_v27 = vpop.f32.mrf.mxu1 }
 0x2d1   :  { %v533_v28 = vsel %vm119_vm2, %v2985_v27, -inf }
 0x2d2   :  { %534 = vmax.xlane.f32.xlu0 %v533_v28 }
 0x2d4   :  { %v2620_v30 = vpop.eup %2619  ;;  %2449 = vmatpush.xpose.msk.msrb.mxu2 %vm87_vm1, %v595_v16 }
 0x2d5   :  { %v237_v33 = vmul.f32 %v2620_v30, %v2612_v3 }
 0x2d7   :  { %2429 = vmatmul.msk.f32.gmra.mxu2 %vm119_vm2, %v237_v33 }
 0x2d8   :  { %v2991_v34 = vpop.f32.mrf.mxu1 }
 0x2d9   :  { %v536_v35 = vsel %vm119_vm2, %v2991_v34, -inf }
 0x2da   :  { %537 = vmax.xlane.f32.xlu1 %v536_v35 }
 0x2df   :  { %2438 = vmatmul.msk.f32.vlgmr.msra.gmra.mxu2 %vm87_vm1, %v2942_v51 }
 0x2e0   :  { %2460 = vmatpush.xpose.msk.msra.mxu2 %vm87_vm1, %v789_v37  ;;  %v693_v38 = vpop.permute.xlu0 %692 }
 0x2e1   :  { %2454 = vmatpush.xpose.msk.msra.mxu1 %vm87_vm1, %v693_v38 }
 0x2e5   :  { %2455 = vmatpush.xpose.msk.msra.mxu1 %vm87_vm1, %v691_v39 }
 0x2e7   :  { %2439 = vmatmul.msk.f32.gmra.mxu2 %vm87_vm1, %v2954_v61 }
 0x2e8   :  { %v787_v41 = vpop.permute.xlu0 %786  ;;  %2456 = vmatmul.msk.f32.vlgmr.msra.gmra.mxu1 %vm87_vm1, %v687_v40 }
 0x2e9   :  { %2461 = vmatpush.xpose.msk.msra.mxu2 %vm87_vm1, %v787_v41 }
 0x2ef   :  { %2450 = vmatmul.msk.f32.vlgmr.msrb.gmra.mxu2 %vm87_vm1, %v591_v29 }
 0x2f0   :  { %v689_v42 = vpop.permute.xlu0 %688 }
 0x2f1   :  { %2457 = vmatmul.msk.f32.gmra.mxu1 %vm87_vm1, %v689_v42 }
 0x2f7   :  { %2451 = vmatmul.msk.f32.gmra.mxu2 %vm87_vm1, %v593_v36 }
 0x2ff   :  { %2462 = vmatmul.msk.f32.vlgmr.msra.gmra.mxu2 %vm87_vm1, %v783_v43 }
 0x307   :  { %2463 = vmatmul.msk.f32.gmra.mxu2 %vm87_vm1, %v785_v44 }
 0x314   :  { %v3013_v53 = vpop.f32.mrf.mxu2 }
 0x31c   :  { %v3019_v56 = vpop.f32.mrf.mxu2 }
 0x332   :  { %v314_v45 = vpop.xlane.xlu1 %313 }
 0x333   :  { %v318_v46 = vsub.f32 %v306_v18, %v314_v45 }
 0x335   :  { %v320_v47 = vmul.f32 1.442695, %v318_v46 }
 0x337   :  { %2621 = vpow2.f32 %v320_v47 }
 0x33a   :  { %v317_v48 = vpop.xlane.xlu2 %316 }
 0x33b   :  { %v319_v49 = vsub.f32 %v309_v21, %v317_v48 }
 0x33d   :  { %v3009_v50 = vpop.eup %2621  ;;  %v322_v51 = vmul.f32 1.442695, %v319_v49 }
 0x33e   :  { %v324_v52 = vsel %vm119_vm2, %v3009_v50, 0.0 }
 0x33f   :  { %2623 = vpow2.f32 %v322_v51  ;;  %325 = vadd.xlane.f32.xlu1 %v324_v52 }
 0x345   :  { %v3015_v54 = vpop.eup %2623  ;;  %v535_v10 = vpop.xlane.xlu0 %534 }
 0x346   :  { %v327_v55 = vsel %vm119_vm2, %v3015_v54, 0.0  ;;  %v539_v31 = vsub.f32 %v2985_v27, %v535_v10 }
 0x347   :  { %328 = vadd.xlane.f32.xlu1 %v327_v55 }
 0x348   :  { %v541_v32 = vmul.f32 1.442695, %v539_v31 }
 0x34d   :  { %v538_v8 = vpop.xlane.xlu1 %537 }
 0x34e   :  { %v540_v9 = vsub.f32 %v2991_v34, %v538_v8 }
 0x350   :  { %v543_v11 = vmul.f32 1.442695, %v540_v9 }
 0x352   :  { %v3021_v57 = vpop.f32.mrf.mxu2  ;;  %2625 = vpow2.f32 %v543_v11 }
 0x353   :  { %2627 = vpow2.f32 %v541_v32 }
 0x358   :  { %v3053_v14 = vpop.eup %2625 }
 0x359   :  { %v548_v19 = vsel %vm119_vm2, %v3053_v14, 0.0  ;;  %v3063_v21 = vpop.eup %2627 }
 0x35a   :  { %v3023_v58 = vpop.f32.mrf.mxu2  ;;  %v545_v22 = vsel %vm119_vm2, %v3063_v21, 0.0 }
 0x362   :  { %v3025_v59 = vpop.f32.mrf.mxu2 }
 0x363   :  { %v408_v18 = vsel %vm119_vm2, %v3025_v59, -inf }
 0x365   :  { %v3027_v60 = vpop.f32.mrf.mxu1 }
 0x366   :  { %v725_v61 = vsel %vm119_vm2, %v3027_v60, -inf }
 0x367   :  { %726 = vmax.xlane.f32.xlu2 %v725_v61 }
 0x36a   :  { %v405_v62 = vpop.f32.mrf.mxu2 }
 0x36b   :  { %v411_v63 = vsel %vm119_vm2, %v405_v62, -inf }
 0x36c   :  { %412 = vmax.xlane.f32.xlu1 %v411_v63 }
 0x36e   :  { %v722_v0 = vpop.f32.mrf.mxu1 }
 0x36f   :  { %v728_v1 = vsel %vm119_vm2, %v722_v0, -inf }
 0x370   :  { %729 = vmax.xlane.f32.xlu0 %v728_v1 }
 0x372   :  { %v3043_v3 = vpop.f32.mrf.mxu2 }
 0x37a   :  { %v3045_v7 = vpop.f32.mrf.mxu2 }
 0x37b   :  { %v632_v24 = vsel %vm119_vm2, %v3045_v7, -inf }
 0x37f   :  { %2576 = vrot.lane.b32.xlu2 %v2867_v12, %s2778_s27 }
 0x382   :  { %v3048_v13 = vpop.f32.mrf.mxu2 }
 0x383   :  { %v821_v23 = vsel %vm119_vm2, %v3048_v13, -inf }
 0x384   :  { %2571 = vrot.lane.b32.xlu0 %v2867_v12, %s2779_s28  ;;  %v629_v12 = vsel %vm119_vm2, %v3043_v3, -inf }
 0x385   :  { %2581 = vrot.lane.b32.xlu1 %v3037_v2, %s2776_s25 }
 0x38a   :  { %v3055_v16 = vpop.f32.mrf.mxu2 }
 0x38b   :  { %v824_v20 = vsel %vm119_vm2, %v3055_v16, -inf }
 0x3a8   :  { %630 = vmax.xlane.f32.xlu2 %v629_v12 }
 0x3ae   :  { %409 = vmax.xlane.f32.xlu0 %v408_v18 }
 0x3af   :  { %549 = vadd.xlane.f32.xlu1 %v548_v19 }
 0x3b0   :  { %825 = vmax.xlane.f32.xlu2 %v824_v20 }
 0x3b2   :  { %v326_v25 = vpop.xlane.xlu1 %325 }
 0x3b6   :  { %546 = vadd.xlane.f32.xlu0 %v545_v22 }
 0x3b7   :  { %822 = vmax.xlane.f32.xlu1 %v821_v23 }
 0x3ba   :  { %v329_v26 = vpop.xlane.xlu1 %328 }
 0x3be   :  { %633 = vmax.xlane.f32.xlu0 %v632_v24 }
 0x3d2   :  { %2586 = vrot.lane.b32.xlu0 %v3037_v2, %s2772_s18 }
 0x3da   :  { %v727_v27 = vpop.xlane.xlu2 %726 }
 0x3db   :  { %v731_v40 = vsub.f32 %v3027_v60, %v727_v27 }
 0x3dd   :  { %v733_v42 = vmul.f32 1.442695, %v731_v40 }
 0x3df   :  { %v413_v28 = vpop.xlane.xlu1 %412 }
 0x3e0   :  { %v415_v29 = vsub.f32 %v405_v62, %v413_v28 }
 0x3e2   :  { %v418_v30 = vmul.f32 1.442695, %v415_v29  ;;  %v2577_v33 = vpop.permute.xlu2 %2576 }
 0x3e3   :  { %v730_v34 = vpop.xlane.xlu0 %729  ;;  %v2578_v35 = vunpack.i.l.bf16 %v2577_v33  ;;  %v2579_v37 = vunpack.i.h.bf16 %v2577_v33 }
 0x3e4   :  { %2629 = vpow2.f32 %v418_v30  ;;  %v732_v36 = vsub.f32 %v722_v0, %v730_v34 }
 0x3e5   :  { %456 = vmatpush.msrb.mxu0 %v2578_v35 }
 0x3e6   :  { %v735_v38 = vmul.f32 1.442695, %v732_v36 }
 0x3e7   :  { %457 = vmatpush.msrb.mxu0 %v2579_v37 }
 0x3e8   :  { %2631 = vpow2.f32 %v735_v38 }
 0x3e9   :  { %2633 = vrcp.f32 %v326_v25 }
 0x3ea   :  { %v3073_v39 = vpop.eup %2629  ;;  %2635 = vpow2.f32 %v733_v42 }
 0x3eb   :  { %v423_v41 = vsel %vm119_vm2, %v3073_v39, 0.0  ;;  %2637 = vrcp.f32 %v329_v26 }
 0x3ec   :  { %424 = vadd.xlane.f32.xlu1 %v423_v41 }
 0x3ee   :  { %v3078_v43 = vpop.eup %2631 }
 0x3ef   :  { %v740_v44 = vsel %vm119_vm2, %v3078_v43, 0.0  ;;  %v2634_v46 = vpop.eup %2633 }
 0x3f0   :  { %v3082_v48 = vpop.eup %2635  ;;  %v332_v52 = vmul.f32 %v2634_v46, %v3009_v50 }
 0x3f1   :  { %v737_v60 = vsel %vm119_vm2, %v3082_v48, 0.0  ;;  %v2638_v62 = vpop.eup %2637 }
 0x3f2   :  { %v333_v63 = vmul.f32 %v2638_v62, %v3015_v54 }
 0x3f4   :  { %741 = vadd.xlane.f32.xlu1 %v740_v44 }
 0x3f6   :  { %v2572_v45 = vpop.permute.xlu0 %2571 }
 0x3f7   :  { %v2573_v47 = vunpack.i.l.bf16 %v2572_v45  ;;  %v2582_v49 = vpop.permute.xlu1 %2581  ;;  %v2574_v51 = vunpack.i.h.bf16 %v2572_v45 }
 0x3f8   :  { %v2583_v55 = vunpack.i.l.bf16 %v2582_v49  ;;  %v2584_v61 = vunpack.i.h.bf16 %v2582_v49 }
 0x3f9   :  { %360 = vmatpush.msra.mxu3 %v2573_v47 }
 0x3fb   :  { %361 = vmatpush.msra.mxu3 %v2574_v51 }
 0x3fc   :  { %2434 = vmatmul.msk.f32.vlgmr.msra.gmra.mxu3 %vm119_vm2, %v332_v52  ;;  %738 = vadd.xlane.f32.xlu0 %v737_v60 }
 0x3fd   :  { %581 = vmatpush.msrb.mxu3 %v2583_v55 }
 0x3ff   :  { %582 = vmatpush.msrb.mxu3 %v2584_v61 }
 0x404   :  { %2435 = vmatmul.msk.f32.gmra.mxu3 %vm119_vm2, %v333_v63 }
 0x410   :  { %467 = vrot.lane.b32.xlu0 %v3021_v57, %s2780_s29 }
 0x418   :  { %469 = vrot.lane.b32.xlu0 %v3023_v58, %s2780_s29 }
 0x41b   :  { %v631_v50 = vpop.xlane.xlu2 %630 }
 0x41c   :  { %v635_v9 = vsub.f32 %v3043_v3, %v631_v50 }
 0x41e   :  { %v637_v11 = vmul.f32 1.442695, %v635_v9 }
 0x421   :  { %v410_v0 = vpop.xlane.xlu0 %409 }
 0x422   :  { %v414_v1 = vsub.f32 %v3025_v59, %v410_v0  ;;  %v550_v8 = vpop.xlane.xlu1 %549 }
 0x423   :  { %v826_v30 = vpop.xlane.xlu2 %825 }
 0x424   :  { %v416_v10 = vmul.f32 1.442695, %v414_v1 }
 0x426   :  { %2639 = vpow2.f32 %v416_v10 }
 0x429   :  { %v547_v54 = vpop.xlane.xlu0 %546 }
 0x42a   :  { %2641 = vrcp.f32 %v547_v54  ;;  %v823_v31 = vpop.xlane.xlu1 %822 }
 0x42b   :  { %v827_v12 = vsub.f32 %v3048_v13, %v823_v31  ;;  %2643 = vpow2.f32 %v637_v11 }
 0x42c   :  { %v2640_v32 = vpop.eup %2639 }
 0x42d   :  { %v829_v57 = vmul.f32 1.442695, %v827_v12  ;;  %v420_v58 = vsel %vm119_vm2, %v2640_v32, 0.0 }
 0x42e   :  { %421 = vadd.xlane.f32.xlu2 %v420_v58 }
 0x42f   :  { %2645 = vpow2.f32 %v829_v57 }
 0x430   :  { %v2642_v18 = vpop.eup %2641  ;;  %2647 = vrcp.f32 %v550_v8 }
 0x431   :  { %v553_v59 = vmul.f32 %v2642_v18, %v3063_v21  ;;  %v634_v3 = vpop.xlane.xlu0 %633  ;;  %v2644_v19 = vpop.eup %2643 }
 0x432   :  { %v636_v20 = vsub.f32 %v3045_v7, %v634_v3  ;;  %v641_v13 = vsel %vm119_vm2, %v2644_v19, 0.0 }
 0x433   :  { %2446 = vmatmul.msk.f32.vlgmr.msrb.gmra.mxu3 %vm119_vm2, %v553_v59 }
 0x434   :  { %v639_v22 = vmul.f32 1.442695, %v636_v20 }
 0x435   :  { %v3101_v23 = vpop.eup %2645 }
 0x436   :  { %v2648_v24 = vpop.eup %2647  ;;  %2649 = vpow2.f32 %v639_v22  ;;  %642 = vadd.xlane.f32.xlu2 %v641_v13  ;;  %v833_v25 = vsel %vm119_vm2, %v3101_v23, 0.0  ;;  %v911_v22 = vld [vmem:[%s3644_s2 + $0x18] sm:$0xff]  ;;  %v909_v13 = vld [vmem:[%s3644_s2 + $0x8] sm:$0xff] }
 0x437   :  { %834 = vadd.xlane.f32.xlu1 %v833_v25  ;;  %v554_v21 = vmul.f32 %v2648_v24, %v3053_v14  ;;  %v828_v14 = vsub.f32 %v3055_v16, %v826_v30  ;;  %937 = vmatpush.msrb.mxu1 %v911_v22  ;;  %v908_v25 = vld [vmem:[%s3644_s2] sm:$0xff] }
 0x439   :  { %v831_v33 = vmul.f32 1.442695, %v828_v14 }
 0x43b   :  { %2447 = vmatmul.msk.f32.gmra.mxu3 %vm119_vm2, %v554_v21  ;;  %2651 = vpow2.f32 %v831_v33 }
 0x43c   :  { %v2650_v26 = vpop.eup %2649 }
 0x43d   :  { %v644_v7 = vsel %vm119_vm2, %v2650_v26, 0.0 }
 0x43e   :  { %645 = vadd.xlane.f32.xlu2 %v644_v7 }
 0x441   :  { %v2652_v34 = vpop.eup %2651 }
 0x442   :  { %v836_v35 = vsel %vm119_vm2, %v2652_v34, 0.0 }
 0x444   :  { %v2587_v27 = vpop.permute.xlu0 %2586 }
 0x445   :  { %v2588_v28 = vunpack.i.l.bf16 %v2587_v27  ;;  %v2589_v29 = vunpack.i.h.bf16 %v2587_v27 }
 0x447   :  { %677 = vmatpush.msra.mxu0 %v2588_v28 }
 0x449   :  { %678 = vmatpush.msra.mxu0 %v2589_v29 }
 0x450   :  { %2596 = vrot.lane.b32.xlu1 %v3037_v2, %s2778_s27 }
 0x456   :  { %2591 = vrot.lane.b32.xlu2 %v3037_v2, %s2779_s28 }
 0x45f   :  { %v425_v40 = vpop.xlane.xlu1 %424 }
 0x467   :  { %v742_v47 = vpop.xlane.xlu1 %741 }
 0x46f   :  { %v739_v44 = vpop.xlane.xlu0 %738 }
 0x47f   :  { %v363_v36 = vpop.f32.mrf.mxu3  ;;  %837 = vadd.xlane.f32.xlu2 %v836_v35 }
 0x480   :  { %475 = vrot.lane.b32.xlu1 %v363_v36, %s2781_s30 }
 0x482   :  { %v468_v7 = vpop.permute.xlu0 %467 }
 0x483   :  { %v489_v27 = vsel %vm87_vm1, %v3013_v53, %v468_v7 }
 0x487   :  { %v366_v37 = vpop.f32.mrf.mxu3 }
 0x488   :  { %477 = vrot.lane.b32.xlu1 %v366_v37, %s2781_s30 }
 0x48a   :  { %v470_v14 = vpop.permute.xlu0 %469 }
 0x4a1   :  { %v422_v38 = vpop.xlane.xlu2 %421 }
 0x4a2   :  { %2653 = vrcp.f32 %v422_v38 }
 0x4a3   :  { %2655 = vrcp.f32 %v425_v40 }
 0x4a8   :  { %v2654_v2 = vpop.eup %2653 }
 0x4a9   :  { %v643_v41 = vpop.xlane.xlu2 %642  ;;  %v428_v16 = vmul.f32 %v2654_v2, %v2640_v32  ;;  %v2656_v42 = vpop.eup %2655 }
 0x4aa   :  { %2657 = vrcp.f32 %v643_v41  ;;  %v429_v46 = vmul.f32 %v2656_v42, %v3073_v39  ;;  %v835_v60 = vpop.xlane.xlu1 %834 }
 0x4ab   :  { %2440 = vmatmul.msk.f32.vlgmr.msrb.gmra.mxu0 %vm119_vm2, %v428_v16  ;;  %2659 = vrcp.f32 %v739_v44 }
 0x4b0   :  { %v2658_v49 = vpop.eup %2657 }
 0x4b1   :  { %v646_v45 = vpop.xlane.xlu2 %645  ;;  %v649_v51 = vmul.f32 %v2658_v49, %v2644_v19  ;;  %v2660_v55 = vpop.eup %2659 }
 0x4b2   :  { %2661 = vrcp.f32 %v646_v45  ;;  %v745_v63 = vmul.f32 %v2660_v55, %v3082_v48 }
 0x4b3   :  { %2441 = vmatmul.msk.f32.gmra.mxu0 %vm119_vm2, %v429_v46  ;;  %2663 = vrcp.f32 %v742_v47  ;;  %v912_v47 = vperm.slane %v2856_v6, 2 }
 0x4b4   :  { %2665 = vrcp.f32 %v835_v60 }
 0x4b6   :  { %v584_v57 = vpop.f32.mrf.mxu3 }
 0x4b8   :  { %v2662_v50 = vpop.eup %2661 }
 0x4b9   :  { %v2592_v52 = vpop.permute.xlu2 %2591  ;;  %v650_v39 = vmul.f32 %v2662_v50, %v2650_v26  ;;  %v2664_v0 = vpop.eup %2663 }
 0x4ba   :  { %v2593_v61 = vunpack.i.l.bf16 %v2592_v52  ;;  %v2594_v62 = vunpack.i.h.bf16 %v2592_v52  ;;  %v746_v10 = vmul.f32 %v2664_v0, %v3078_v43  ;;  %v2666_v11 = vpop.eup %2665 }
 0x4bb   :  { %2452 = vmatmul.msk.f32.vlgmr.msra.gmra.mxu0 %vm119_vm2, %v649_v51  ;;  %v841_v48 = vmul.f32 %v2666_v11, %v3101_v23  ;;  %v910_v23 = vld [vmem:[%s3644_s2 + $0x10] sm:$0xff] }
 0x4bc   :  { %773 = vmatpush.msra.mxu3 %v2593_v61  ;;  %938 = vmatpush.msrb.mxu1 %v910_v23 }
 0x4be   :  { %774 = vmatpush.msra.mxu3 %v2594_v62  ;;  %v587_v18 = vpop.f32.mrf.mxu3  ;;  %939 = vmatpush.msrb.mxu1 %v909_v13 }
 0x4bf   :  { %2458 = vmatmul.msk.f32.vlgmr.msra.gmra.mxu3 %vm119_vm2, %v745_v63 }
 0x4c0   :  { %940 = vmatpush.msrb.mxu1 %v908_v25 }
 0x4c2   :  { %v2597_v1 = vpop.permute.xlu1 %2596 }
 0x4c3   :  { %v2598_v8 = vunpack.i.l.bf16 %v2597_v1  ;;  %2453 = vmatmul.msk.f32.gmra.mxu0 %vm119_vm2, %v650_v39  ;;  %v2599_v9 = vunpack.i.h.bf16 %v2597_v1 }
 0x4c5   :  { %869 = vmatpush.msrb.mxu0 %v2598_v8 }
 0x4c7   :  { %2459 = vmatmul.msk.f32.gmra.mxu3 %vm119_vm2, %v746_v10  ;;  %870 = vmatpush.msrb.mxu0 %v2599_v9  ;;  %v2783_v10 = vmov 32.0  }
 0x4cb   :  { %2464 = vmatmul.msk.f32.vlgmr.msrb.gmra.mxu0 %vm119_vm2, %v841_v48 }
 0x4f2   :  { %v838_v54 = vpop.xlane.xlu2 %837  ;;  %v476_v21 = vpop.permute.xlu1 %475 }
 0x4f3   :  { %2667 = vrcp.f32 %v838_v54  ;;  %v491_v28 = vsel %vm119_vm2, %v489_v27, %v476_v21 }
 0x4f4   :  { %2669 = vrcp.f32 %v2783_v10 }
 0x4f9   :  { %v2668_v31 = vpop.eup %2667 }
 0x4fa   :  { %v842_v12 = vmul.f32 %v2668_v31, %v2652_v34  ;;  %v478_v26 = vpop.permute.xlu1 %477  ;;  %v490_v34 = vsel %vm87_vm1, %v3019_v56, %v470_v14  ;;  %v1063_v14 = vld [vmem:[%s3645_s3] sm:$0xff] }
 0x4fb   :  { %v492_v35 = vsel %vm119_vm2, %v490_v34, %v478_v26 }
 0x4fc   :  { %2465 = vmatmul.msk.f32.gmra.mxu0 %vm119_vm2, %v842_v12 }
 0x528   :  { %v459_v32 = vpop.f32.mrf.mxu0 }
 0x529   :  { %483 = vrot.lane.b32.xlu1 %v459_v32, %s2782_s8 }
 0x530   :  { %v462_v43 = vpop.f32.mrf.mxu0 }
 0x531   :  { %485 = vrot.lane.b32.xlu2 %v462_v43, %s2782_s8 }
 0x538   :  { %v680_v58 = vpop.f32.mrf.mxu0 }
 0x539   :  { %880 = vrot.lane.b32.xlu0 %v680_v58, %s2780_s29 }
 0x540   :  { %v683_v59 = vpop.f32.mrf.mxu0 }
 0x542   :  { %v776_v3 = vpop.f32.mrf.mxu3 }
 0x543   :  { %888 = vrot.lane.b32.xlu1 %v776_v3, %s2781_s30 }
 0x548   :  { %v872_v19 = vpop.f32.mrf.mxu0 }
 0x549   :  { %896 = vrot.lane.b32.xlu0 %v872_v19, %s2782_s8 }
 0x54a   :  { %v779_v20 = vpop.f32.mrf.mxu3 }
 0x54b   :  { %882 = vrot.lane.b32.xlu1 %v683_v59, %s2780_s29 }
 0x551   :  { %890 = vrot.lane.b32.xlu0 %v779_v20, %s2781_s30 }
 0x579   :  { %v875_v24 = vpop.f32.mrf.mxu0 }
 0x57a   :  { %898 = vrot.lane.b32.xlu1 %v875_v24, %s2782_s8 }
 0x58b   :  { %v486_v33 = vpop.permute.xlu2 %485 }
 0x58c   :  { %v495_v36 = vsel %vm493_vm3, %v492_v35, %v486_v33 }
 0x59b   :  { %v484_v29 = vpop.permute.xlu1 %483 }
 0x59c   :  { %v494_v30 = vsel %vm493_vm3, %v491_v28, %v484_v29  ;;  %v1066_v28 = vld [vmem:[%s3645_s3 + $0x18] sm:$0xff]  ;;  %v1065_v29 = vld [vmem:[%s3645_s3 + $0x10] sm:$0xff] }
 0x59d   :  { %2466 = vmatmul.msk.f32.vlgmr.msrb.gmra.mxu1 %vm39_vm0, %v494_v30  ;;  %1092 = vmatpush.msrb.mxu3 %v1066_v28  ;;  %v1064_v30 = vld [vmem:[%s3645_s3 + $0x8] sm:$0xff] }
 0x59f   :  { %1093 = vmatpush.msrb.mxu3 %v1065_v29 }
 0x5a1   :  { %1094 = vmatpush.msrb.mxu3 %v1064_v30  ;;  %v1115_v30 = vld [vmem:[%s3646_s4 + $0x10] sm:$0xff] }
 0x5a3   :  { %1095 = vmatpush.msrb.mxu3 %v1063_v14  ;;  %v1114_v14 = vld [vmem:[%s3646_s4 + $0x8] sm:$0xff] }
 0x5a5   :  { %2467 = vmatmul.msk.f32.gmra.mxu1 %vm39_vm0, %v495_v36 }
 0x5ab   :  { %v881_v53 = vpop.permute.xlu0 %880 }
 0x5ac   :  { %v902_v38 = vsel %vm87_vm1, %v584_v57, %v881_v53 }
 0x5b5   :  { %v889_v37 = vpop.permute.xlu1 %888 }
 0x5b6   :  { %v904_v40 = vsel %vm119_vm2, %v902_v38, %v889_v37 }
 0x5bb   :  { %v897_v2 = vpop.permute.xlu0 %896 }
 0x5bc   :  { %v906_v41 = vsel %vm493_vm3, %v904_v40, %v897_v2 }
 0x5bd   :  { %2468 = vmatmul.msk.f32.gmra.mxu1 %vm39_vm0, %v906_v41  ;;  %v883_v16 = vpop.permute.xlu1 %882 }
 0x5be   :  { %v903_v56 = vsel %vm87_vm1, %v587_v18, %v883_v16  ;;  %v3211_v16 = vld [vmem:[%s3648_s6 + $0x8] sm:$0xff] }
 0x5c3   :  { %v891_v42 = vpop.permute.xlu0 %890 }
 0x5c4   :  { %v905_v44 = vsel %vm119_vm2, %v903_v56, %v891_v42 }
 0x5ec   :  { %v899_v45 = vpop.permute.xlu1 %898 }
 0x5ed   :  { %v907_v46 = vsel %vm493_vm3, %v905_v44, %v899_v45 }
 0x5ee   :  { %2469 = vmatmul.msk.f32.gmra.mxu1 %vm39_vm0, %v907_v46  ;;  %v3214_v46 = vperm.slane %v3211_v16, 0 }
 0x61a   :  { %v942_v49 = vpop.f32.mrf.mxu1 }
 0x61b   :  { %v943_v51 = vadd.f32 %v942_v49, %v912_v47 }
 0x61d   :  { %v954_v52 = vadd.f32 %v943_v51, %v2842_v4 }
 0x61f   :  { %v958_v55 = vsel %vm39_vm0, %v954_v52, 0.0 }
 0x620   :  { %959 = vadd.xlane.f32.xlu2 %v958_v55 }
 0x622   :  { %v945_v60 = vpop.f32.mrf.mxu1 }
 0x623   :  { %v946_v61 = vadd.f32 %v945_v60, %v912_v47 }
 0x625   :  { %v955_v62 = vadd.f32 %v946_v61, %v2849_v5  ;;  %v2670_v5 = vpop.eup %2669 }
 0x626   :  { %v971_v11 = vmul.f32 32.0, %v2670_v5  ;;  %vm975_vm4 = vweird.f32 %v2670_v5 }
 0x627   :  { %v961_v63 = vsel %vm39_vm0, %v955_v62, 0.0 }
 0x628   :  { %962 = vadd.xlane.f32.xlu0 %v961_v63  ;;  %v972_v48 = vsub.f32 1.0, %v971_v11 }
 0x62a   :  { %v973_v54 = vmul.f32 %v2670_v5, %v972_v48 }
 0x62c   :  { %v974_v31 = vadd.f32 %v2670_v5, %v973_v54 }
 0x62e   :  { %v3176_v12 = vsel %vm975_vm4, %v2670_v5, %v974_v31 }
 0x63a   :  { %v948_v50 = vpop.f32.mrf.mxu1 }
 0x63b   :  { %v949_v39 = vadd.f32 %v948_v50, %v912_v47 }
 0x63d   :  { %v956_v0 = vadd.f32 %v949_v39, %v2878_v15 }
 0x63f   :  { %v964_v6 = vsel %vm39_vm0, %v956_v0, 0.0 }
 0x640   :  { %965 = vadd.xlane.f32.xlu1 %v964_v6 }
 0x66b   :  { %v951_v1 = vpop.f32.mrf.mxu1 }
 0x66c   :  { %v952_v8 = vadd.f32 %v951_v1, %v912_v47 }
 0x66e   :  { %v957_v4 = vadd.f32 %v952_v8, %v2887_v17 }
 0x670   :  { %v967_v9 = vsel %vm39_vm0, %v957_v4, 0.0 }
 0x671   :  { %968 = vadd.xlane.f32.xlu2 %v967_v9 }
 0x693   :  { %v960_v15 = vpop.xlane.xlu2 %959 }
 0x694   :  { %v977_v32 = vmul.f32 %v3176_v12, %v960_v15 }
 0x696   :  { %v981_v57 = vsub.f32 %v954_v52, %v977_v32  ;;  %v1058_v52 = vperm.slane %v3211_v16, 1 }
 0x698   :  { %v985_v43 = vmul.f32 %v981_v57, %v981_v57 }
 0x69a   :  { %v989_v17 = vsel %vm39_vm0, %v985_v43, 0.0  ;;  %v1120_v43 = vld [vmem:[%s3646_s4 + $0x38] sm:$0xff] }
 0x69b   :  { %990 = vadd.xlane.f32.xlu0 %v989_v17  ;;  %v963_v58 = vpop.xlane.xlu0 %962  ;;  %v1119_v17 = vld [vmem:[%s3646_s4 + $0x30] sm:$0xff]  ;;  %1143 = vmatpush.msrb.mxu2 %v1120_v43 }
 0x69c   :  { %v978_v18 = vmul.f32 %v3176_v12, %v963_v58  ;;  %v1118_v58 = vld [vmem:[%s3646_s4 + $0x28] sm:$0xff] }
 0x69d   :  { %1144 = vmatpush.msrb.mxu2 %v1119_v17 }
 0x69e   :  { %v982_v59 = vsub.f32 %v955_v62, %v978_v18 }
 0x69f   :  { %1145 = vmatpush.msrb.mxu2 %v1118_v58 }
 0x6a0   :  { %v986_v3 = vmul.f32 %v982_v59, %v982_v59 }
 0x6a2   :  { %v992_v19 = vsel %vm39_vm0, %v986_v3, 0.0  ;;  %v1117_v3 = vld [vmem:[%s3646_s4 + $0x20] sm:$0xff] }
 0x6a3   :  { %993 = vadd.xlane.f32.xlu1 %v992_v19  ;;  %1146 = vmatpush.msrb.mxu2 %v1117_v3 }
 0x6b3   :  { %v966_v20 = vpop.xlane.xlu1 %965 }
 0x6b4   :  { %v979_v22 = vmul.f32 %v3176_v12, %v966_v20  ;;  %v1116_v20 = vld [vmem:[%s3646_s4 + $0x18] sm:$0xff] }
 0x6b5   :  { %1147 = vmatpush.msrb.mxu2 %v1116_v20 }
 0x6b6   :  { %v3183_v23 = vsub.f32 %v956_v0, %v979_v22 }
 0x6b7   :  { %1148 = vmatpush.msrb.mxu2 %v1115_v30 }
 0x6b8   :  { %v987_v13 = vmul.f32 %v3183_v23, %v3183_v23 }
 0x6b9   :  { %1149 = vmatpush.msrb.mxu2 %v1114_v14 }
 0x6ba   :  { %v995_v24 = vsel %vm39_vm0, %v987_v13, 0.0 }
 0x6bb   :  { %996 = vadd.xlane.f32.xlu2 %v995_v24 }
 0x6e4   :  { %v969_v25 = vpop.xlane.xlu2 %968 }
 0x6e5   :  { %v980_v21 = vmul.f32 %v3176_v12, %v969_v25 }
 0x6e7   :  { %v3189_v26 = vsub.f32 %v957_v4, %v980_v21 }
 0x6e9   :  { %v988_v7 = vmul.f32 %v3189_v26, %v3189_v26 }
 0x6eb   :  { %v998_v27 = vsel %vm39_vm0, %v988_v7, 0.0 }
 0x6ec   :  { %999 = vadd.xlane.f32.xlu0 %v998_v27 }
 0x70e   :  { %v991_v33 = vpop.xlane.xlu0 %990 }
 0x70f   :  { %v1001_v34 = vmul.f32 %v991_v33, %v3176_v12  ;;  %v1113_v33 = vld [vmem:[%s3646_s4] sm:$0xff] }
 0x710   :  { %1150 = vmatpush.msrb.mxu2 %v1113_v33 }
 0x711   :  { %v1005_v35 = vadd.f32 1e-05, %v1001_v34 }
 0x713   :  { %2671 = vrsqrt.f32 %v1005_v35  ;;  %vm1015_vm6 = vweird.f32 %v1005_v35 }
 0x716   :  { %v994_v36 = vpop.xlane.xlu1 %993 }
 0x717   :  { %v1002_v53 = vmul.f32 %v994_v36, %v3176_v12 }
 0x719   :  { %v2672_v37 = vpop.eup %2671  ;;  %v1006_v38 = vadd.f32 1e-05, %v1002_v53 }
 0x71a   :  { %v1010_v40 = vmul.f32 %v2672_v37, %v1005_v35  ;;  %vm1016_vm5 = vweird.f32 %v2672_v37 }
 0x71b   :  { %2673 = vrsqrt.f32 %v1006_v38  ;;  %vm1017_vm7 = vmor %vm1015_vm6, %vm1016_vm5  ;;  %vm1025_vm9 = vweird.f32 %v1006_v38  ;;  %vm1122_vm5 = vcmask 523264  }
 0x71c   :  { %v1011_v2 = vmul.f32 %v2672_v37, %v1010_v40 }
 0x71e   :  { %v1012_v41 = vmul.f32 0.5, %v1011_v2 }
 0x720   :  { %v1013_v42 = vsub.f32 1.5, %v1012_v41 }
 0x721   :  { %v2674_v56 = vpop.eup %2673 }
 0x722   :  { %v1014_v44 = vmul.f32 %v2672_v37, %v1013_v42  ;;  %v1020_v45 = vmul.f32 %v2674_v56, %v1006_v38  ;;  %vm1026_vm8 = vweird.f32 %v2674_v56 }
 0x723   :  { %vm1027_vm10 = vmor %vm1025_vm9, %vm1026_vm8 }
 0x724   :  { %v1018_v47 = vsel %vm1017_vm7, %v2672_v37, %v1014_v44  ;;  %v1021_v49 = vmul.f32 %v2674_v56, %v1020_v45 }
 0x725   :  { %v1049_v51 = vmul.f32 %v1018_v47, %v981_v57 }
 0x726   :  { %v1022_v55 = vmul.f32 0.5, %v1021_v49 }
 0x727   :  { %v1054_v60 = vmul.f32 %v3214_v46, %v1049_v51 }
 0x728   :  { %v1023_v61 = vsub.f32 1.5, %v1022_v55 }
 0x729   :  { %v3218_v62 = vadd.f32 %v1058_v52, %v1054_v60 }
 0x72a   :  { %v1024_v63 = vmul.f32 %v2674_v56, %v1023_v61 }
 0x72b   :  { %2470 = vmatmul.msk.f32.vlgmr.msrb.gmra.mxu3 %vm39_vm0, %v3218_v62 }
 0x72c   :  { %v1028_v50 = vsel %vm1027_vm10, %v2674_v56, %v1024_v63 }
 0x72d   :  { %v1050_v39 = vmul.f32 %v1028_v50, %v982_v59 }
 0x72e   :  { %v997_v0 = vpop.xlane.xlu2 %996 }
 0x72f   :  { %v1003_v6 = vmul.f32 %v997_v0, %v3176_v12  ;;  %v1055_v1 = vmul.f32 %v3214_v46, %v1050_v39 }
 0x731   :  { %v1007_v8 = vadd.f32 1e-05, %v1003_v6  ;;  %v3224_v4 = vadd.f32 %v1058_v52, %v1055_v1 }
 0x733   :  { %2675 = vrsqrt.f32 %v1007_v8  ;;  %2471 = vmatmul.msk.f32.gmra.mxu3 %vm39_vm0, %v3224_v4  ;;  %vm1035_vm12 = vweird.f32 %v1007_v8 }
 0x739   :  { %v2676_v9 = vpop.eup %2675 }
 0x73a   :  { %v1030_v10 = vmul.f32 %v2676_v9, %v1007_v8  ;;  %vm1036_vm11 = vweird.f32 %v2676_v9 }
 0x73b   :  { %vm1037_vm13 = vmor %vm1035_vm12, %vm1036_vm11 }
 0x73c   :  { %v1031_v5 = vmul.f32 %v2676_v9, %v1030_v10 }
 0x73e   :  { %v1032_v11 = vmul.f32 0.5, %v1031_v5 }
 0x740   :  { %v1033_v48 = vsub.f32 1.5, %v1032_v11 }
 0x742   :  { %v1034_v54 = vmul.f32 %v2676_v9, %v1033_v48 }
 0x744   :  { %v1038_v31 = vsel %vm1037_vm13, %v2676_v9, %v1034_v54 }
 0x745   :  { %v1051_v15 = vmul.f32 %v1038_v31, %v3183_v23 }
 0x747   :  { %v1056_v32 = vmul.f32 %v3214_v46, %v1051_v15 }
 0x749   :  { %v3230_v57 = vadd.f32 %v1058_v52, %v1056_v32 }
 0x74b   :  { %2472 = vmatmul.msk.f32.gmra.mxu3 %vm39_vm0, %v3230_v57 }
 0x75f   :  { %v1000_v18 = vpop.xlane.xlu0 %999 }
 0x760   :  { %v1004_v59 = vmul.f32 %v1000_v18, %v3176_v12 }
 0x762   :  { %v1008_v19 = vadd.f32 1e-05, %v1004_v59 }
 0x764   :  { %2677 = vrsqrt.f32 %v1008_v19  ;;  %vm1045_vm15 = vweird.f32 %v1008_v19 }
 0x76a   :  { %v2678_v22 = vpop.eup %2677 }
 0x76b   :  { %v1040_v23 = vmul.f32 %v2678_v22, %v1008_v19  ;;  %vm1046_vm14 = vweird.f32 %v2678_v22 }
 0x76c   :  { %vm1047_vm4 = vmor %vm1045_vm15, %vm1046_vm14 }
 0x76d   :  { %v1041_v13 = vmul.f32 %v2678_v22, %v1040_v23 }
 0x76f   :  { %v1042_v24 = vmul.f32 0.5, %v1041_v13  ;;  %v1269_v13 = vld [vmem:[%s3647_s5 + $0x18] sm:$0xff] }
 0x770   :  { %1294 = vmatpush.msra.mxu0 %v1269_v13 }
 0x771   :  { %v1043_v25 = vsub.f32 1.5, %v1042_v24  ;;  %v1268_v24 = vld [vmem:[%s3647_s5 + $0x10] sm:$0xff] }
 0x772   :  { %1295 = vmatpush.msra.mxu0 %v1268_v24 }
 0x773   :  { %v1044_v21 = vmul.f32 %v2678_v22, %v1043_v25  ;;  %v1267_v25 = vld [vmem:[%s3647_s5 + $0x8] sm:$0xff] }
 0x774   :  { %1296 = vmatpush.msra.mxu0 %v1267_v25 }
 0x775   :  { %v1048_v7 = vsel %vm1047_vm4, %v2678_v22, %v1044_v21  ;;  %v1266_v21 = vld [vmem:[%s3647_s5] sm:$0xff] }
 0x776   :  { %v1052_v27 = vmul.f32 %v1048_v7, %v3189_v26  ;;  %v3265_v26 = vld [vmem:[%s3648_s6] sm:$0xff]  ;;  %1297 = vmatpush.msra.mxu0 %v1266_v21 }
 0x777   :  { %v1067_v34 = vperm.slane %v3265_v26, 4 }
 0x778   :  { %v1057_v28 = vmul.f32 %v3214_v46, %v1052_v27  ;;  %v1121_v46 = vperm.slane %v3265_v26, 6 }
 0x77a   :  { %v1062_v29 = vadd.f32 %v1058_v52, %v1057_v28 }
 0x77c   :  { %2473 = vmatmul.msk.f32.gmra.mxu3 %vm39_vm0, %v1062_v29 }
 0x7ae   :  { %v1097_v35 = vpop.f32.mrf.mxu3 }
 0x7af   :  { %v1098_v36 = vadd.f32 %v1097_v35, %v1067_v34 }
 0x7b1   :  { %v1109_v53 = vmax.f32 %v1098_v36, 0.0 }
 0x7b3   :  { %2474 = vmatmul.msk.f32.vlgmr.msrb.gmra.mxu2 %vm1122_vm5, %v1109_v53 }
 0x7b6   :  { %v1100_v37 = vpop.f32.mrf.mxu3 }
 0x7b7   :  { %v1101_v38 = vadd.f32 %v1100_v37, %v1067_v34 }
 0x7b9   :  { %v1110_v40 = vmax.f32 %v1101_v38, 0.0 }
 0x7bb   :  { %2475 = vmatmul.msk.f32.gmra.mxu2 %vm1122_vm5, %v1110_v40 }
 0x7ce   :  { %v1103_v2 = vpop.f32.mrf.mxu3 }
 0x7cf   :  { %v1104_v41 = vadd.f32 %v1103_v2, %v1067_v34  ;;  %v1256_v2 = vperm.slane %v3211_v16, 2 }
 0x7d1   :  { %v1111_v42 = vmax.f32 %v1104_v41, 0.0 }
 0x7d3   :  { %2476 = vmatmul.msk.f32.gmra.mxu2 %vm1122_vm5, %v1111_v42 }
 0x7ff   :  { %v1106_v56 = vpop.f32.mrf.mxu3 }
 0x800   :  { %v1107_v44 = vadd.f32 %v1106_v56, %v1067_v34 }
 0x802   :  { %v1112_v45 = vmax.f32 %v1107_v44, 0.0  ;;  %v1261_v44 = vperm.slane %v3211_v16, 3 }
 0x804   :  { %2477 = vmatmul.msk.f32.gmra.mxu2 %vm1122_vm5, %v1112_v45 }
 0x836   :  { %v1152_v47 = vpop.f32.mrf.mxu2 }
 0x837   :  { %v1153_v49 = vadd.f32 %v1152_v47, %v1121_v46 }
 0x839   :  { %v1164_v51 = vadd.f32 %v1153_v49, %v3218_v62 }
 0x83b   :  { %v1168_v52 = vsel %vm39_vm0, %v1164_v51, 0.0 }
 0x83c   :  { %1169 = vadd.xlane.f32.xlu1 %v1168_v52 }
 0x83e   :  { %v1155_v55 = vpop.f32.mrf.mxu2 }
 0x83f   :  { %v1156_v60 = vadd.f32 %v1155_v55, %v1121_v46 }
 0x841   :  { %v1165_v61 = vadd.f32 %v1156_v60, %v3224_v4 }
 0x843   :  { %v1171_v63 = vsel %vm39_vm0, %v1165_v61, 0.0 }
 0x844   :  { %1172 = vadd.xlane.f32.xlu2 %v1171_v63 }
 0x856   :  { %v1158_v50 = vpop.f32.mrf.mxu2 }
 0x857   :  { %v1159_v39 = vadd.f32 %v1158_v50, %v1121_v46 }
 0x859   :  { %v1166_v0 = vadd.f32 %v1159_v39, %v3230_v57 }
 0x85b   :  { %v1174_v6 = vsel %vm39_vm0, %v1166_v0, 0.0 }
 0x85c   :  { %1175 = vadd.xlane.f32.xlu0 %v1174_v6 }
 0x887   :  { %v1161_v1 = vpop.f32.mrf.mxu2 }
 0x888   :  { %v1162_v8 = vadd.f32 %v1161_v1, %v1121_v46 }
 0x88a   :  { %v1167_v62 = vadd.f32 %v1162_v8, %v1062_v29 }
 0x88c   :  { %v1177_v9 = vsel %vm39_vm0, %v1167_v62, 0.0 }
 0x88d   :  { %1178 = vadd.xlane.f32.xlu1 %v1177_v9 }
 0x8af   :  { %v1170_v10 = vpop.xlane.xlu1 %1169 }
 0x8b0   :  { %v1180_v5 = vmul.f32 %v1170_v10, %v3176_v12 }
 0x8b2   :  { %v1184_v4 = vsub.f32 %v1164_v51, %v1180_v5 }
 0x8b4   :  { %v1188_v11 = vmul.f32 %v1184_v4, %v1184_v4 }
 0x8b6   :  { %v1192_v48 = vsel %vm39_vm0, %v1188_v11, 0.0 }
 0x8b7   :  { %v1173_v54 = vpop.xlane.xlu2 %1172  ;;  %1193 = vadd.xlane.f32.xlu2 %v1192_v48 }
 0x8b8   :  { %v1181_v31 = vmul.f32 %v1173_v54, %v3176_v12 }
 0x8ba   :  { %v1185_v15 = vsub.f32 %v1165_v61, %v1181_v31 }
 0x8bc   :  { %v1189_v32 = vmul.f32 %v1185_v15, %v1185_v15 }
 0x8be   :  { %v1195_v57 = vsel %vm39_vm0, %v1189_v32, 0.0 }
 0x8bf   :  { %1196 = vadd.xlane.f32.xlu0 %v1195_v57 }
 0x8cf   :  { %v1176_v43 = vpop.xlane.xlu0 %1175 }
 0x8d0   :  { %v1182_v17 = vmul.f32 %v1176_v43, %v3176_v12 }
 0x8d2   :  { %v3285_v58 = vsub.f32 %v1166_v0, %v1182_v17 }
 0x8d4   :  { %v1190_v18 = vmul.f32 %v3285_v58, %v3285_v58 }
 0x8d6   :  { %v1198_v59 = vsel %vm39_vm0, %v1190_v18, 0.0 }
 0x8d7   :  { %1199 = vadd.xlane.f32.xlu1 %v1198_v59 }
 0x900   :  { %v1179_v3 = vpop.xlane.xlu1 %1178 }
 0x901   :  { %v1183_v19 = vmul.f32 %v1179_v3, %v3176_v12 }
 0x903   :  { %v3291_v20 = vsub.f32 %v1167_v62, %v1183_v19 }
 0x905   :  { %v1191_v22 = vmul.f32 %v3291_v20, %v3291_v20 }
 0x907   :  { %v1201_v23 = vsel %vm39_vm0, %v1191_v22, 0.0 }
 0x908   :  { %1202 = vadd.xlane.f32.xlu2 %v1201_v23 }
 0x92a   :  { %v1194_v7 = vpop.xlane.xlu2 %1193 }
 0x92b   :  { %v1204_v27 = vmul.f32 %v1194_v7, %v3176_v12 }
 0x92d   :  { %v1208_v28 = vadd.f32 1e-05, %v1204_v27 }
 0x92f   :  { %2679 = vrsqrt.f32 %v1208_v28  ;;  %vm1218_vm7 = vweird.f32 %v1208_v28 }
 0x932   :  { %v1197_v29 = vpop.xlane.xlu0 %1196 }
 0x933   :  { %v1205_v30 = vmul.f32 %v1197_v29, %v3176_v12 }
 0x935   :  { %v2680_v14 = vpop.eup %2679  ;;  %v1209_v33 = vadd.f32 1e-05, %v1205_v30 }
 0x936   :  { %v1213_v34 = vmul.f32 %v2680_v14, %v1208_v28  ;;  %vm1219_vm6 = vweird.f32 %v2680_v14 }
 0x937   :  { %2681 = vrsqrt.f32 %v1209_v33  ;;  %vm1220_vm8 = vmor %vm1218_vm7, %vm1219_vm6  ;;  %vm1228_vm10 = vweird.f32 %v1209_v33 }
 0x938   :  { %v1214_v35 = vmul.f32 %v2680_v14, %v1213_v34 }
 0x93a   :  { %v1215_v36 = vmul.f32 0.5, %v1214_v35 }
 0x93c   :  { %v1216_v53 = vsub.f32 1.5, %v1215_v36 }
 0x93d   :  { %v2682_v37 = vpop.eup %2681 }
 0x93e   :  { %v1217_v38 = vmul.f32 %v2680_v14, %v1216_v53  ;;  %v1223_v40 = vmul.f32 %v2682_v37, %v1209_v33  ;;  %vm1229_vm9 = vweird.f32 %v2682_v37 }
 0x93f   :  { %vm1230_vm11 = vmor %vm1228_vm10, %vm1229_vm9 }
 0x940   :  { %v1221_v41 = vsel %vm1220_vm8, %v2680_v14, %v1217_v38  ;;  %v1224_v42 = vmul.f32 %v2682_v37, %v1223_v40 }
 0x941   :  { %v1252_v56 = vmul.f32 %v1221_v41, %v1184_v4 }
 0x942   :  { %v1225_v45 = vmul.f32 0.5, %v1224_v42 }
 0x943   :  { %v1257_v46 = vmul.f32 %v1256_v2, %v1252_v56 }
 0x944   :  { %v1226_v47 = vsub.f32 1.5, %v1225_v45 }
 0x945   :  { %v1262_v49 = vadd.f32 %v1261_v44, %v1257_v46 }
 0x946   :  { %v1227_v51 = vmul.f32 %v2682_v37, %v1226_v47 }
 0x947   :  { %2478 = vmatmul.msk.f32.vlgmr.msra.gmra.mxu0 %vm39_vm0, %v1262_v49 }
 0x948   :  { %v1231_v52 = vsel %vm1230_vm11, %v2682_v37, %v1227_v51 }
 0x949   :  { %v1253_v55 = vmul.f32 %v1231_v52, %v1185_v15 }
 0x94a   :  { %v1200_v60 = vpop.xlane.xlu1 %1199 }
 0x94b   :  { %v1206_v61 = vmul.f32 %v1200_v60, %v3176_v12  ;;  %v1258_v63 = vmul.f32 %v1256_v2, %v1253_v55 }
 0x94d   :  { %v1210_v50 = vadd.f32 1e-05, %v1206_v61  ;;  %v1263_v39 = vadd.f32 %v1261_v44, %v1258_v63 }
 0x94f   :  { %2683 = vrsqrt.f32 %v1210_v50  ;;  %2479 = vmatmul.msk.f32.gmra.mxu0 %vm39_vm0, %v1263_v39  ;;  %vm1238_vm13 = vweird.f32 %v1210_v50 }
 0x955   :  { %v2684_v16 = vpop.eup %2683 }
 0x956   :  { %v1233_v0 = vmul.f32 %v2684_v16, %v1210_v50  ;;  %vm1239_vm12 = vweird.f32 %v2684_v16 }
 0x957   :  { %vm1240_vm14 = vmor %vm1238_vm13, %vm1239_vm12 }
 0x958   :  { %v1234_v6 = vmul.f32 %v2684_v16, %v1233_v0 }
 0x95a   :  { %v1235_v1 = vmul.f32 0.5, %v1234_v6 }
 0x95c   :  { %v1236_v8 = vsub.f32 1.5, %v1235_v1 }
 0x95e   :  { %v1237_v62 = vmul.f32 %v2684_v16, %v1236_v8 }
 0x960   :  { %v1241_v9 = vsel %vm1240_vm14, %v2684_v16, %v1237_v62 }
 0x961   :  { %v1254_v10 = vmul.f32 %v1241_v9, %v3285_v58 }
 0x963   :  { %v1259_v5 = vmul.f32 %v1256_v2, %v1254_v10 }
 0x965   :  { %v1264_v4 = vadd.f32 %v1261_v44, %v1259_v5 }
 0x967   :  { %2480 = vmatmul.msk.f32.gmra.mxu0 %vm39_vm0, %v1264_v4 }
 0x97b   :  { %v1203_v11 = vpop.xlane.xlu2 %1202 }
 0x97c   :  { %v1207_v48 = vmul.f32 %v1203_v11, %v3176_v12 }
 0x97e   :  { %v1211_v54 = vadd.f32 1e-05, %v1207_v48 }
 0x980   :  { %2685 = vrsqrt.f32 %v1211_v54  ;;  %vm1248_vm4 = vweird.f32 %v1211_v54 }
 0x986   :  { %v2686_v31 = vpop.eup %2685 }
 0x987   :  { %v1243_v15 = vmul.f32 %v2686_v31, %v1211_v54  ;;  %vm1249_vm15 = vweird.f32 %v2686_v31 }
 0x988   :  { %vm1250_vm6 = vmor %vm1248_vm4, %vm1249_vm15 }
 0x989   :  { %v1244_v32 = vmul.f32 %v2686_v31, %v1243_v15 }
 0x98b   :  { %v1245_v57 = vmul.f32 0.5, %v1244_v32 }
 0x98d   :  { %v1246_v43 = vsub.f32 1.5, %v1245_v57 }
 0x98f   :  { %v1247_v17 = vmul.f32 %v2686_v31, %v1246_v43 }
 0x991   :  { %v1251_v18 = vsel %vm1250_vm6, %v2686_v31, %v1247_v17 }
 0x992   :  { %v1255_v58 = vmul.f32 %v1251_v18, %v3291_v20  ;;  %v1311_v20 = vlaneseq }
 0x994   :  { %v1260_v59 = vmul.f32 %v1256_v2, %v1255_v58  ;;  %v3333_v13 = vshrl.u32 %v1311_v20, 7 }
 0x996   :  { %v1265_v3 = vadd.f32 %v1261_v44, %v1260_v59  ;;  %v1314_v24 = vadd.s32 16, %v3333_v13  ;;  %v1320_v21 = vand.u32 15, %v3333_v13  ;;  %vm1376_vm9 = vcmp.lt.s32.totalorder %v3333_v13, 1  ;;  %v29_v44 = vld [vmem:[%s3648_s6 + $0x10] sm:$0x7] }
 0x997   :  { %vm1413_vm10 = vcmp.lt.s32.totalorder %v3333_v13, 7  ;;  %v1450_v46 = vperm.slane %v29_v44, 0  ;;  %v1315_v51 = vadd.s32 24, %v3333_v13  ;;  %v3368_v63 = vadd.s32 8, %v3333_v13 }
 0x998   :  { %2481 = vmatmul.msk.f32.gmra.mxu0 %vm39_vm0, %v1265_v3  ;;  %v1334_v25 = vand.u32 15, %v1314_v24  ;;  %vm3345_vm8 = vcmp.eq.s32.totalorder %v1320_v21, 0 }
 0x999   :  { %v1341_v55 = vand.u32 15, %v1315_v51  ;;  %v1327_v5 = vand.u32 15, %v3368_v63 }
 0x99a   :  { %vm3341_vm7 = vcmp.eq.s32.totalorder %v1334_v25, 0 }
 0x99b   :  { %vm1371_vm11 = vcmp.eq.s32.totalorder %v1341_v55, 15  ;;  %vm1369_vm12 = vcmp.eq.s32.totalorder %v1327_v5, 15 }
 0x9c4   :  { %v3320_v19 = vpop.f32.mrf.mxu0 }
 0x9c5   :  { %1397 = vrot.lane.b32.xlu0 %v3320_v19, %s2776_s25  ;;  %v1372_v27 = vrot.slane %v3320_v19, 7 }
 0x9cc   :  { %v3324_v22 = vpop.f32.mrf.mxu0 }
 0x9cd   :  { %1399 = vrot.lane.b32.xlu1 %v3324_v22, %s2776_s25  ;;  %v1373_v29 = vrot.slane %v3324_v22, 7 }
 0x9cf   :  { %v1379_v32 = vsel %vm1376_vm9, %v1372_v27, %v1373_v29 }
 0x9e4   :  { %v1305_v23 = vpop.f32.mrf.mxu0 }
 0x9e5   :  { %1434 = vrot.lane.b32.xlu1 %v1305_v23, %s2771_s17  ;;  %1401 = vrot.lane.b32.xlu2 %v1305_v23, %s2776_s25  ;;  %v1374_v7 = vrot.slane %v1305_v23, 7 }
 0x9e7   :  { %v1378_v34 = vsel %vm1376_vm9, %v1373_v29, %v1374_v7 }
 0x9ed   :  { %1430 = vrot.lane.b32.xlu1 %v3320_v19, %s2771_s17 }
 0xa15   :  { %v1308_v28 = vpop.f32.mrf.mxu0 }
 0xa16   :  { %v1375_v30 = vrot.slane %v1308_v28, 7  ;;  %1436 = vrot.lane.b32.xlu2 %v1308_v28, %s2771_s17  ;;  %1403 = vrot.lane.b32.xlu0 %v1308_v28, %s2776_s25 }
 0xa18   :  { %v1380_v35 = vsel %vm1376_vm9, %v1375_v30, %v1372_v27  ;;  %v1377_v8 = vsel %vm1376_vm9, %v1374_v7, %v1375_v30  ;;  %v2493_v7 = vld [vmem:[%s3643_s1 + $0x38] sm:$0xff]  ;;  %v2492_v27 = vld [vmem:[%s3643_s1 + $0x30] sm:$0xff] }
 0xa19   :  { %v1391_v36 = vsel %vm3341_vm7, %v1380_v35, %v1378_v34  ;;  %v1389_v53 = vsel %vm3345_vm8, %v1378_v34, %v1380_v35  ;;  %1570 = vmatpush.msra.mxu3 %v2493_v7  ;;  %v2491_v35 = vld [vmem:[%s3643_s1 + $0x28] sm:$0xff] }
 0xa1b   :  { %1571 = vmatpush.msra.mxu3 %v2492_v27 }
 0xa1d   :  { %1572 = vmatpush.msra.mxu3 %v2491_v35 }
 0xa1e   :  { %1432 = vrot.lane.b32.xlu0 %v3324_v22, %s2771_s17 }
 0xa37   :  { %v1398_v2 = vpop.permute.xlu0 %1397 }
 0xa38   :  { %v1409_v56 = vrot.slane %v1398_v2, 1 }
 0xa3f   :  { %v1400_v37 = vpop.permute.xlu1 %1399  ;;  %v1402_v49 = vpop.permute.xlu2 %1401 }
 0xa40   :  { %v1410_v41 = vrot.slane %v1400_v37, 1  ;;  %v1411_v60 = vrot.slane %v1402_v49, 1 }
 0xa42   :  { %v1416_v45 = vsel %vm1413_vm10, %v1409_v56, %v1410_v41  ;;  %v1415_v0 = vsel %vm1413_vm10, %v1410_v41, %v1411_v60 }
 0xa57   :  { %v1435_v38 = vpop.permute.xlu1 %1434 }
 0xa58   :  { %v1444_v6 = vadd.f32 %v1435_v38, %v1391_v36 }
 0xa5f   :  { %v1431_v40 = vpop.permute.xlu1 %1430 }
 0xa60   :  { %v1442_v42 = vadd.f32 %v1431_v40, %v1389_v53 }
 0xa62   :  { %v1446_v47 = vadd.f32 %v1442_v42, %v1416_v45 }
 0xa64   :  { %v1451_v52 = vadd.f32 %v1450_v46, %v1446_v47 }
 0xa66   :  { %v1459_v61 = vmin.f32 %v1451_v52, 0.0  ;;  %vm1455_vm13 = vcmp.gt.f32.partialorder %v1451_v52, 0.0 }
 0xa68   :  { %v1463_v1 = vmul.f32 1.442695, %v1459_v61 }
 0xa6a   :  { %2687 = vpow2.f32 %v1463_v1 }
 0xa70   :  { %v1437_v50 = vpop.permute.xlu2 %1436  ;;  %v2688_v19 = vpop.eup %2687 }
 0xa71   :  { %v1445_v62 = vadd.f32 %v1437_v50, %v1377_v8  ;;  %v2482_v24 = vadd.f32 -1.0, %v2688_v19 }
 0xa73   :  { %v1475_v30 = vsel %vm1455_vm13, %v1451_v52, %v2482_v24 }
 0xa74   :  { %v1491_v2 = vrot.slane %v1475_v30, 1  ;;  %v1479_v42 = vrot.slane %v1475_v30, 7 }
 0xa88   :  { %v1404_v39 = vpop.permute.xlu0 %1403 }
 0xa89   :  { %v1412_v16 = vrot.slane %v1404_v39, 1 }
 0xa8b   :  { %v1414_v9 = vsel %vm1413_vm10, %v1411_v60, %v1412_v16  ;;  %v1417_v10 = vsel %vm1413_vm10, %v1412_v16, %v1409_v56  ;;  %v1508_v16 = vand.u32 127, %v1311_v20 }
 0xa8c   :  { %v1429_v4 = vsel %vm1371_vm11, %v1415_v0, %v1417_v10  ;;  %v1448_v11 = vadd.f32 %v1444_v6, %v1414_v9  ;;  %v1427_v58 = vsel %vm1369_vm12, %v1417_v10, %v1415_v0  ;;  %v1509_v10 = vmul.u32 2, %v3333_v13  ;;  %v2490_v13 = vld [vmem:[%s3643_s1 + $0x20] sm:$0xff] }
 0xa8d   :  { %v1449_v48 = vadd.f32 %v1445_v62, %v1429_v4  ;;  %1573 = vmatpush.msra.mxu3 %v2490_v13 }
 0xa8e   :  { %v1453_v54 = vadd.f32 %v1450_v46, %v1448_v11  ;;  %vm1511_vm6 = vcmp.eq.s32.totalorder %v1508_v16, %v1509_v10  ;;  %v2784_v11 = vmov 0.0  }
 0xa8f   :  { %v1454_v31 = vadd.f32 %v1450_v46, %v1449_v48  ;;  %v2486_v48 = vsel %vm1511_vm6, 1.0, %v2784_v11 }
 0xa90   :  { %v1461_v15 = vmin.f32 %v1453_v54, 0.0  ;;  %v1433_v57 = vpop.permute.xlu0 %1432  ;;  %vm1457_vm14 = vcmp.gt.f32.partialorder %v1453_v54, 0.0 }
 0xa91   :  { %v1462_v43 = vmin.f32 %v1454_v31, 0.0  ;;  %v1443_v17 = vadd.f32 %v1433_v57, %v1379_v32  ;;  %vm1458_vm15 = vcmp.gt.f32.partialorder %v1454_v31, 0.0 }
 0xa92   :  { %v1467_v18 = vmul.f32 1.442695, %v1461_v15 }
 0xa93   :  { %v1469_v59 = vmul.f32 1.442695, %v1462_v43  ;;  %v1447_v3 = vadd.f32 %v1443_v17, %v1427_v58 }
 0xa94   :  { %2689 = vpow2.f32 %v1467_v18 }
 0xa95   :  { %2691 = vpow2.f32 %v1469_v59  ;;  %v1452_v22 = vadd.f32 %v1450_v46, %v1447_v3 }
 0xa97   :  { %v1460_v23 = vmin.f32 %v1452_v22, 0.0  ;;  %vm1456_vm4 = vcmp.gt.f32.partialorder %v1452_v22, 0.0 }
 0xa99   :  { %v1465_v25 = vmul.f32 1.442695, %v1460_v23 }
 0xa9a   :  { %v2690_v21 = vpop.eup %2689 }
 0xa9b   :  { %v2692_v28 = vpop.eup %2691  ;;  %v2484_v29 = vadd.f32 -1.0, %v2690_v21  ;;  %2693 = vpow2.f32 %v1465_v25 }
 0xa9c   :  { %v2485_v34 = vadd.f32 -1.0, %v2692_v28 }
 0xa9d   :  { %v1477_v36 = vsel %vm1457_vm14, %v1453_v54, %v2484_v29  ;;  %v1510_v54 = vmul.u32 2, %v3368_v63  ;;  %v1551_v63 = vperm.slane %v3265_v26, 1 }
 0xa9e   :  { %v1478_v53 = vsel %vm1458_vm15, %v1454_v31, %v2485_v34  ;;  %v1481_v37 = vrot.slane %v1477_v36, 7  ;;  %v1493_v38 = vrot.slane %v1477_v36, 1 }
 0xa9f   :  { %v1482_v40 = vrot.slane %v1478_v53, 7  ;;  %v1494_v41 = vrot.slane %v1478_v53, 1 }
 0xaa1   :  { %v2694_v56 = vpop.eup %2693  ;;  %v1483_v44 = vsel %vm1376_vm9, %v1481_v37, %v1482_v40  ;;  %v1498_v45 = vsel %vm1413_vm10, %v1494_v41, %v1491_v2  ;;  %v1495_v46 = vsel %vm1413_vm10, %v1493_v38, %v1494_v41  ;;  %v1486_v47 = vsel %vm1376_vm9, %v1482_v40, %v1479_v42 }
 0xaa2   :  { %v2483_v49 = vadd.f32 -1.0, %v2694_v56  ;;  %v1502_v51 = vmax.f32 %v1483_v44, %v1478_v53  ;;  %v1487_v52 = vsel %vm3345_vm8, %v1475_v30, %v1486_v47  ;;  %vm1512_vm8 = vcmp.eq.s32.totalorder %v1508_v16, %v1510_v54 }
 0xaa3   :  { %v1499_v55 = vmax.f32 %v1487_v52, %v1475_v30  ;;  %v2487_v14 = vsel %vm1512_vm8, 1.0, %v2784_v11 }
 0xaa4   :  { %v1476_v60 = vsel %vm1456_vm4, %v1452_v22, %v2483_v49  ;;  %v1506_v61 = vmax.f32 %v1502_v51, %v1498_v45 }
 0xaa5   :  { %v1480_v50 = vrot.slane %v1476_v60, 7  ;;  %v1492_v39 = vrot.slane %v1476_v60, 1 }
 0xaa6   :  { %1535 = vmatpush.msra.mxu1 %v1506_v61 }
 0xaa7   :  { %v1484_v0 = vsel %vm1376_vm9, %v1480_v50, %v1481_v37  ;;  %v1485_v6 = vsel %vm1376_vm9, %v1479_v42, %v1480_v50  ;;  %v1496_v1 = vsel %vm1413_vm10, %v1492_v39, %v1493_v38  ;;  %v1497_v33 = vsel %vm1413_vm10, %v1491_v2, %v1492_v39 }
 0xaa8   :  { %v1489_v8 = vsel %vm3341_vm7, %v1477_v36, %v1484_v0  ;;  %v1500_v62 = vmax.f32 %v1485_v6, %v1476_v60  ;;  %v1503_v9 = vmax.f32 %v1499_v55, %v1497_v33 }
 0xaa9   :  { %v1501_v20 = vmax.f32 %v1489_v8, %v1477_v36 }
 0xaaa   :  { %v1504_v5 = vmax.f32 %v1500_v62, %v1496_v1 }
 0xaab   :  { %v1505_v4 = vmax.f32 %v1501_v20, %v1495_v46 }
 0xaad   :  { %1536 = vmatpush.msra.mxu1 %v1505_v4 }
 0xaaf   :  { %1537 = vmatpush.msra.mxu1 %v1504_v5 }
 0xab1   :  { %1538 = vmatpush.msra.mxu1 %v1503_v9 }
 0xab2   :  { %2488 = vmatmul.msk.f32.vlgmr.msra.gmra.mxu1 %vm39_vm0, %v2486_v48 }
 0xaba   :  { %2489 = vmatmul.msk.f32.gmra.mxu1 %vm39_vm0, %v2487_v14 }
 0xb2f   :  { %v3418_v31 = vpop.f32.mrf.mxu1 }
 0xb30   :  { %2494 = vmatmul.msk.f32.vlgmr.msra.gmra.mxu3 %vm39_vm0, %v3418_v31 }
 0xb37   :  { %v3422_v15 = vpop.f32.mrf.mxu1 }
 0xb38   :  { %2495 = vmatmul.msk.f32.gmra.mxu3 %vm39_vm0, %v3422_v15 }
 0xbb3   :  { %v1575_v32 = vpop.f32.mrf.mxu3 }
 0xbb4   :  { %v3427_v57 = vadd.f32 %v1575_v32, %v1551_v63 }
 0xbb6   :  { %1645 = vrot.lane.b32.xlu1 %v3427_v57, %s2769_s15  ;;  %1647 = vrot.lane.b32.xlu0 %v3427_v57, %s2770_s16 }
 0xbb7   :  { %1582 = vrot.lane.b32.xlu2 %v3427_v57, %s2771_s17 }
 0xbbb   :  { %v1578_v26 = vpop.f32.mrf.mxu3 }
 0xbbc   :  { %v3441_v43 = vadd.f32 %v1578_v26, %v1551_v63 }
 0xbbe   :  { %1710 = vrot.lane.b32.xlu1 %v3427_v57, %s2777_s26  ;;  %1777 = vrot.lane.b32.xlu0 %v3427_v57, %s2773_s19  ;;  %v2600_v17 = vpack.i.bf16 %v3441_v43, %v3427_v57 }
 0xbbf   :  { %1712 = vrot.lane.b32.xlu2 %v3427_v57, %s2774_s0 }
 0xbc6   :  { %1921 = vrot.lane.b32.xlu1 %v3441_v43, %s2770_s16  ;;  %1856 = vrot.lane.b32.xlu0 %v3441_v43, %s2771_s17 }
 0xbc7   :  { %1775 = vrot.lane.b32.xlu2 %v3427_v57, %s2775_s24 }
 0xbce   :  { %1986 = vrot.lane.b32.xlu0 %v3441_v43, %s2774_s0  ;;  %2051 = vrot.lane.b32.xlu1 %v3441_v43, %s2773_s19 }
 0xbcf   :  { %1919 = vrot.lane.b32.xlu2 %v3441_v43, %s2769_s15 }
 0xbd6   :  { %2049 = vrot.lane.b32.xlu0 %v3441_v43, %s2775_s24 }
 0xbd7   :  { %1984 = vrot.lane.b32.xlu2 %v3441_v43, %s2777_s26 }
 0xbde   :  { %2601 = vrot.lane.b32.xlu0 %v2600_v17, %s2772_s18 }
 0xc11   :  { %v1583_v18 = vpop.permute.xlu2 %1582 }
 0xc12   :  { %2496 = vmatpush.xpose.msk.msra.mxu2 %vm87_vm1, %v1583_v18 }
 0xc15   :  { %2497 = vmatmul.msk.f32.vlgmr.msra.gmra.mxu2 %vm87_vm1, %v3427_v57 }
 0xc19   :  { %v1713_v58 = vpop.permute.xlu2 %1712 }
 0xc1a   :  { %2502 = vmatpush.xpose.msk.msrb.mxu2 %vm87_vm1, %v1713_v58 }
 0xc21   :  { %v1776_v19 = vpop.permute.xlu2 %1775 }
 0xc28   :  { %v1646_v59 = vpop.permute.xlu1 %1645  ;;  %v1648_v3 = vpop.permute.xlu0 %1647 }
 0xc29   :  { %2499 = vmatpush.xpose.msk.msrb.mxu1 %vm87_vm1, %v1648_v3  ;;  %v1920_v24 = vpop.permute.xlu2 %1919 }
 0xc2c   :  { %2500 = vmatmul.msk.f32.vlgmr.msrb.gmra.mxu1 %vm87_vm1, %v1646_v59 }
 0xc30   :  { %v1711_v22 = vpop.permute.xlu1 %1710  ;;  %v1778_v23 = vpop.permute.xlu0 %1777 }
 0xc31   :  { %2503 = vmatmul.msk.f32.vlgmr.msrb.gmra.mxu2 %vm87_vm1, %v1711_v22  ;;  %2505 = vmatpush.xpose.msk.msra.mxu1 %vm87_vm1, %v1778_v23  ;;  %v1985_v28 = vpop.permute.xlu2 %1984 }
 0xc34   :  { %2506 = vmatmul.msk.f32.vlgmr.msra.gmra.mxu1 %vm87_vm1, %v1776_v19 }
 0xc38   :  { %v1922_v25 = vpop.permute.xlu1 %1921  ;;  %v1857_v21 = vpop.permute.xlu0 %1856 }
 0xc39   :  { %2508 = vmatpush.xpose.msk.msra.mxu2 %vm87_vm1, %v1857_v21  ;;  %2511 = vmatpush.xpose.msk.msrb.mxu1 %vm87_vm1, %v1922_v25 }
 0xc3c   :  { %2509 = vmatmul.msk.f32.vlgmr.msra.gmra.mxu2 %vm87_vm1, %v3441_v43  ;;  %2512 = vmatmul.msk.f32.vlgmr.msrb.gmra.mxu1 %vm87_vm1, %v1920_v24 }
 0xc40   :  { %v1987_v7 = vpop.permute.xlu0 %1986  ;;  %v2052_v27 = vpop.permute.xlu1 %2051 }
 0xc41   :  { %2514 = vmatpush.xpose.msk.msrb.mxu2 %vm87_vm1, %v1987_v7  ;;  %2517 = vmatpush.xpose.msk.msra.mxu1 %vm87_vm1, %v2052_v27 }
 0xc44   :  { %2515 = vmatmul.msk.f32.vlgmr.msrb.gmra.mxu2 %vm87_vm1, %v1985_v28 }
 0xc48   :  { %v2050_v29 = vpop.permute.xlu0 %2049 }
 0xc49   :  { %2518 = vmatmul.msk.f32.vlgmr.msra.gmra.mxu1 %vm87_vm1, %v2050_v29 }
 0xc50   :  { %v3480_v30 = vpop.permute.xlu0 %2601 }
 0xc51   :  { %v2603_v34 = vunpack.i.l.bf16 %v3480_v30 }
 0xc53   :  { %1705 = vmatpush.msrb.mxu3 %v2603_v34 }
 0xc98   :  { %v1605_v35 = vpop.f32.mrf.mxu2 }
 0xc99   :  { %v1608_v36 = vsel %vm87_vm1, %v1605_v35, -inf }
 0xc9a   :  { %1609 = vmax.xlane.f32.xlu2 %v1608_v36 }
 0xca9   :  { %v1670_v53 = vpop.f32.mrf.mxu1 }
 0xcaa   :  { %v1673_v37 = vsel %vm87_vm1, %v1670_v53, -inf }
 0xcab   :  { %1674 = vmax.xlane.f32.xlu1 %v1673_v37 }
 0xcb1   :  { %v1800_v38 = vpop.f32.mrf.mxu1 }
 0xcb2   :  { %v1803_v40 = vsel %vm87_vm1, %v1800_v38, -inf }
 0xcb3   :  { %1804 = vmax.xlane.f32.xlu0 %v1803_v40 }
 0xcb4   :  { %v1735_v2 = vpop.f32.mrf.mxu2 }
 0xcb5   :  { %v1738_v41 = vsel %vm87_vm1, %v1735_v2, -inf }
 0xcb6   :  { %1739 = vmax.xlane.f32.xlu1 %v1738_v41 }
 0xcb9   :  { %v1944_v42 = vpop.f32.mrf.mxu1 }
 0xcba   :  { %v1947_v56 = vsel %vm87_vm1, %v1944_v42, -inf }
 0xcbb   :  { %1948 = vmax.xlane.f32.xlu2 %v1947_v56  ;;  %v2604_v56 = vunpack.i.h.bf16 %v3480_v30 }
 0xcbf   :  { %v1879_v44 = vpop.f32.mrf.mxu2 }
 0xcc0   :  { %v1882_v45 = vsel %vm87_vm1, %v1879_v44, -inf }
 0xcc1   :  { %1883 = vmax.xlane.f32.xlu0 %v1882_v45 }
 0xcc6   :  { %v2074_v46 = vpop.f32.mrf.mxu1 }
 0xcc7   :  { %v2009_v47 = vpop.f32.mrf.mxu2  ;;  %v2077_v49 = vsel %vm87_vm1, %v2074_v46, -inf }
 0xcc8   :  { %2078 = vmax.xlane.f32.xlu1 %v2077_v49  ;;  %v2012_v51 = vsel %vm87_vm1, %v2009_v47, -inf }
 0xcc9   :  { %2013 = vmax.xlane.f32.xlu2 %v2012_v51 }
 0xd0d   :  { %v1610_v52 = vpop.xlane.xlu2 %1609 }
 0xd0e   :  { %v1611_v55 = vsub.f32 %v1605_v35, %v1610_v52 }
 0xd10   :  { %v1612_v60 = vmul.f32 1.442695, %v1611_v55 }
 0xd12   :  { %2695 = vpow2.f32 %v1612_v60 }
 0xd18   :  { %v3491_v61 = vpop.eup %2695 }
 0xd19   :  { %v1614_v50 = vsel %vm87_vm1, %v3491_v61, 0.0 }
 0xd1a   :  { %1615 = vadd.xlane.f32.xlu1 %v1614_v50 }
 0xd1e   :  { %v1675_v39 = vpop.xlane.xlu1 %1674 }
 0xd1f   :  { %v1676_v16 = vsub.f32 %v1670_v53, %v1675_v39 }
 0xd21   :  { %v1677_v0 = vmul.f32 1.442695, %v1676_v16 }
 0xd23   :  { %2697 = vpow2.f32 %v1677_v0 }
 0xd26   :  { %v1805_v6 = vpop.xlane.xlu0 %1804 }
 0xd27   :  { %v1806_v1 = vsub.f32 %v1800_v38, %v1805_v6 }
 0xd29   :  { %v2698_v33 = vpop.eup %2697  ;;  %v1807_v8 = vmul.f32 1.442695, %v1806_v1  ;;  %v1740_v62 = vpop.xlane.xlu1 %1739 }
 0xd2a   :  { %v1741_v9 = vsub.f32 %v1735_v2, %v1740_v62  ;;  %v1679_v10 = vsel %vm87_vm1, %v2698_v33, 0.0 }
 0xd2b   :  { %2699 = vpow2.f32 %v1807_v8  ;;  %1680 = vadd.xlane.f32.xlu0 %v1679_v10 }
 0xd2c   :  { %v1742_v20 = vmul.f32 1.442695, %v1741_v9 }
 0xd2e   :  { %2701 = vpow2.f32 %v1742_v20  ;;  %v1949_v5 = vpop.xlane.xlu2 %1948 }
 0xd2f   :  { %v1950_v4 = vsub.f32 %v1944_v42, %v1949_v5 }
 0xd31   :  { %v2700_v11 = vpop.eup %2699  ;;  %v1951_v48 = vmul.f32 1.442695, %v1950_v4 }
 0xd32   :  { %v1809_v54 = vsel %vm87_vm1, %v2700_v11, 0.0 }
 0xd33   :  { %1810 = vadd.xlane.f32.xlu2 %v1809_v54  ;;  %2703 = vpow2.f32 %v1951_v48  ;;  %v2522_v48 = vld [vmem:[%s3644_s2 + $0x30] sm:$0xff]  ;;  %v2521_v54 = vld [vmem:[%s3644_s2 + $0x28] sm:$0xff] }
 0xd34   :  { %v2702_v14 = vpop.eup %2701  ;;  %v1884_v13 = vpop.xlane.xlu0 %1883 }
 0xd35   :  { %v1885_v63 = vsub.f32 %v1879_v44, %v1884_v13  ;;  %v1744_v32 = vsel %vm87_vm1, %v2702_v14, 0.0 }
 0xd36   :  { %1745 = vadd.xlane.f32.xlu1 %v1744_v32 }
 0xd37   :  { %v1886_v26 = vmul.f32 1.442695, %v1885_v63 }
 0xd39   :  { %v2704_v17 = vpop.eup %2703  ;;  %2705 = vpow2.f32 %v1886_v26 }
 0xd3a   :  { %v1953_v59 = vsel %vm87_vm1, %v2704_v17, 0.0 }
 0xd3b   :  { %v2079_v18 = vpop.xlane.xlu1 %2078 }
 0xd3c   :  { %v2080_v58 = vsub.f32 %v2074_v46, %v2079_v18  ;;  %v2014_v25 = vpop.xlane.xlu2 %2013 }
 0xd3d   :  { %v2015_v21 = vsub.f32 %v2009_v47, %v2014_v25 }
 0xd3e   :  { %1954 = vadd.xlane.f32.xlu1 %v1953_v59  ;;  %v2081_v3 = vmul.f32 1.442695, %v2080_v58 }
 0xd3f   :  { %1814 = vrot.lane.b32.xlu0 %v3427_v57, %s2778_s27  ;;  %v2706_v19 = vpop.eup %2705  ;;  %v2016_v7 = vmul.f32 1.442695, %v2015_v21 }
 0xd40   :  { %2707 = vpow2.f32 %v2081_v3  ;;  %v1888_v22 = vsel %vm87_vm1, %v2706_v19, 0.0 }
 0xd41   :  { %2709 = vpow2.f32 %v2016_v7 }
 0xd46   :  { %1889 = vadd.xlane.f32.xlu1 %v1888_v22  ;;  %v2708_v23 = vpop.eup %2707 }
 0xd47   :  { %1749 = vrot.lane.b32.xlu0 %v3427_v57, %s2779_s28  ;;  %v2083_v24 = vsel %vm87_vm1, %v2708_v23, 0.0  ;;  %v2710_v27 = vpop.eup %2709 }
 0xd48   :  { %v2018_v28 = vsel %vm87_vm1, %v2710_v27, 0.0 }
 0xd4b   :  { %1619 = vrot.lane.b32.xlu2 %v3427_v57, %s2776_s25 }
 0xd4e   :  { %2084 = vadd.xlane.f32.xlu1 %v2083_v24  ;;  %v3553_v24 = vld [vmem:[%s3648_s6] sm:$0xff] }
 0xd4f   :  { %1893 = vrot.lane.b32.xlu0 %v3441_v43, %s2776_s25  ;;  %v2134_v25 = vperm.slane %v3553_v24, 3 }
 0xd57   :  { %2023 = vrot.lane.b32.xlu0 %v3441_v43, %s2779_s28 }
 0xd67   :  { %2088 = vrot.lane.b32.xlu1 %v3441_v43, %s2778_s27 }
 0xd74   :  { %2019 = vadd.xlane.f32.xlu2 %v2018_v28 }
 0xd8d   :  { %v1616_v29 = vpop.xlane.xlu1 %1615 }
 0xd9e   :  { %v1681_v57 = vpop.xlane.xlu0 %1680 }
 0xd9f   :  { %2711 = vrcp.f32 %v1681_v57 }
 0xda0   :  { %2713 = vrcp.f32 %v1616_v29 }
 0xda5   :  { %v2712_v34 = vpop.eup %2711 }
 0xda6   :  { %v1683_v35 = vmul.f32 %v2712_v34, %v2698_v33  ;;  %v1811_v36 = vpop.xlane.xlu2 %1810  ;;  %v2714_v37 = vpop.eup %2713 }
 0xda7   :  { %2715 = vrcp.f32 %v1811_v36  ;;  %v1618_v43 = vmul.f32 %v2714_v37, %v3491_v61 }
 0xda8   :  { %2501 = vmatmul.msk.f32.vlgmr.msrb.gmra.mxu3 %vm87_vm1, %v1683_v35 }
 0xda9   :  { %v1746_v53 = vpop.xlane.xlu1 %1745 }
 0xdaa   :  { %2717 = vrcp.f32 %v1746_v53 }
 0xdad   :  { %v2716_v38 = vpop.eup %2715 }
 0xdae   :  { %v1620_v40 = vpop.permute.xlu2 %1619  ;;  %v1813_v2 = vmul.f32 %v2716_v38, %v2700_v11  ;;  %v2523_v11 = vld [vmem:[%s3644_s2 + $0x38] sm:$0xff] }
 0xdaf   :  { %1640 = vmatpush.msrb.mxu0 %v1620_v40  ;;  %2153 = vmatpush.msra.mxu2 %v2523_v11  ;;  %v2535_v11 = vld [vmem:[%s3646_s4 + $0x58] sm:$0xff] }
 0xdb0   :  { %2498 = vmatmul.msk.f32.vlgmr.msrb.gmra.mxu0 %vm87_vm1, %v1618_v43  ;;  %v2718_v44 = vpop.eup %2717 }
 0xdb1   :  { %v1955_v41 = vpop.xlane.xlu1 %1954  ;;  %v1815_v42 = vpop.permute.xlu0 %1814  ;;  %v1748_v46 = vmul.f32 %v2718_v44, %v2702_v14  ;;  %2154 = vmatpush.msra.mxu2 %v2522_v48  ;;  %v2520_v14 = vld [vmem:[%s3644_s2 + $0x20] sm:$0xff]  ;;  %v2527_v44 = vld [vmem:[%s3645_s3 + $0x28] sm:$0xff] }
 0xdb2   :  { %2719 = vrcp.f32 %v1955_v41  ;;  %1835 = vmatpush.msra.mxu3 %v1815_v42 }
 0xdb3   :  { %2507 = vmatmul.msk.f32.vlgmr.msra.gmra.mxu3 %vm87_vm1, %v1813_v2  ;;  %2155 = vmatpush.msra.mxu2 %v2521_v54 }
 0xdb4   :  { %1979 = vmatpush.msrb.mxu3 %v2604_v56  ;;  %v2528_v56 = vld [vmem:[%s3645_s3 + $0x30] sm:$0xff] }
 0xdb5   :  { %2156 = vmatpush.msra.mxu2 %v2520_v14 }
 0xdb8   :  { %v2720_v45 = vpop.eup %2719 }
 0xdb9   :  { %v1957_v47 = vmul.f32 %v2720_v45, %v2704_v17  ;;  %v1890_v49 = vpop.xlane.xlu1 %1889  ;;  %v1750_v51 = vpop.permute.xlu0 %1749  ;;  %v2526_v45 = vld [vmem:[%s3645_s3 + $0x20] sm:$0xff] }
 0xdba   :  { %2721 = vrcp.f32 %v1890_v49  ;;  %1770 = vmatpush.msra.mxu0 %v1750_v51 }
 0xdbb   :  { %2504 = vmatmul.msk.f32.vlgmr.msra.gmra.mxu0 %vm87_vm1, %v1748_v46  ;;  %2513 = vmatmul.msk.f32.vlgmr.msrb.gmra.mxu3 %vm87_vm1, %v1957_v47 }
 0xdc0   :  { %v2722_v52 = vpop.eup %2721 }
 0xdc1   :  { %v1892_v55 = vmul.f32 %v2722_v52, %v2706_v19  ;;  %v1894_v30 = vpop.permute.xlu0 %1893  ;;  %v2085_v61 = vpop.xlane.xlu1 %2084 }
 0xdc2   :  { %1914 = vmatpush.msrb.mxu0 %v1894_v30  ;;  %2723 = vrcp.f32 %v2085_v61 }
 0xdc3   :  { %2510 = vmatmul.msk.f32.vlgmr.msrb.gmra.mxu0 %vm87_vm1, %v1892_v55 }
 0xdc8   :  { %v2724_v50 = vpop.eup %2723 }
 0xdc9   :  { %v2024_v60 = vpop.permute.xlu0 %2023  ;;  %v2087_v39 = vmul.f32 %v2724_v50, %v2708_v23  ;;  %v3580_v50 = vld [vmem:[%s3648_s6 + $0x8] sm:$0xff] }
 0xdca   :  { %2044 = vmatpush.msra.mxu0 %v2024_v60 }
 0xdd9   :  { %v2089_v16 = vpop.permute.xlu1 %2088 }
 0xdda   :  { %2109 = vmatpush.msra.mxu3 %v2089_v16 }
 0xddb   :  { %2519 = vmatmul.msk.f32.vlgmr.msra.gmra.mxu3 %vm87_vm1, %v2087_v39  ;;  %v2210_v39 = vperm.slane %v3580_v50, 4 }
 0xde7   :  { %v2020_v0 = vpop.xlane.xlu2 %2019 }
 0xde8   :  { %2725 = vrcp.f32 %v2020_v0 }
 0xdee   :  { %v2726_v6 = vpop.eup %2725 }
 0xdef   :  { %v2022_v1 = vmul.f32 %v2726_v6, %v2710_v27  ;;  %v2213_v6 = vperm.slane %v3580_v50, 5 }
 0xdf1   :  { %2516 = vmatmul.msk.f32.vlgmr.msra.gmra.mxu0 %vm87_vm1, %v2022_v1 }
 0xe2b   :  { %v1707_v33 = vpop.f32.mrf.mxu3 }
 0xe2c   :  { %1841 = vrot.lane.b32.xlu0 %v1707_v33, %s2780_s29 }
 0xe2d   :  { %v1642_v8 = vpop.f32.mrf.mxu0 }
 0xe36   :  { %v1837_v62 = vpop.f32.mrf.mxu3 }
 0xe37   :  { %1849 = vrot.lane.b32.xlu1 %v1837_v62, %s2782_s8  ;;  %v2538_v62 = vld [vmem:[%s3646_s4 + $0x70] sm:$0xff] }
 0xe38   :  { %v1772_v9 = vpop.f32.mrf.mxu0 }
 0xe39   :  { %1845 = vrot.lane.b32.xlu0 %v1772_v9, %s2781_s30  ;;  %v2537_v9 = vld [vmem:[%s3646_s4 + $0x68] sm:$0xff] }
 0xe3e   :  { %v1981_v10 = vpop.f32.mrf.mxu3 }
 0xe40   :  { %v1916_v5 = vpop.f32.mrf.mxu0 }
 0xe41   :  { %2115 = vrot.lane.b32.xlu0 %v1981_v10, %s2780_s29 }
 0xe5e   :  { %v2111_v20 = vpop.f32.mrf.mxu3 }
 0xe5f   :  { %2123 = vrot.lane.b32.xlu2 %v2111_v20, %s2782_s8  ;;  %s2786_s8 = smov 128  }
 0xe6e   :  { %v2046_v4 = vpop.f32.mrf.mxu0 }
 0xe6f   :  { %2119 = vrot.lane.b32.xlu1 %v2046_v4, %s2781_s30  ;;  %s2402_s30 = sshll.u32 %s3649_s7, 4  ;;  %s2403_s30 = int_to_ptr.hbm [resolvable:$true] %s2402_s30 }
 0xe9e   :  { %v1842_v13 = vpop.permute.xlu0 %1841 }
 0xe9f   :  { %v1852_v63 = vsel %vm87_vm1, %v1642_v8, %v1842_v13  ;;  %v2539_v8 = vld [vmem:[%s3646_s4 + $0x78] sm:$0xff] }
 0xea0   :  { %2277 = vmatpush.msrb.mxu1 %v2539_v8 }
 0xea2   :  { %2278 = vmatpush.msrb.mxu1 %v2538_v62 }
 0xea4   :  { %2279 = vmatpush.msrb.mxu1 %v2537_v9 }
 0xea9   :  { %v1850_v26 = vpop.permute.xlu1 %1849 }
 0xeab   :  { %v1846_v32 = vpop.permute.xlu0 %1845 }
 0xeac   :  { %v1853_v17 = vsel %vm119_vm2, %v1852_v63, %v1846_v32 }
 0xead   :  { %v1854_v18 = vsel %vm493_vm3, %v1853_v17, %v1850_v26 }
 0xeae   :  { %2524 = vmatmul.msk.f32.vlgmr.msra.gmra.mxu2 %vm39_vm0, %v1854_v18 }
 0xeb3   :  { %v2116_v58 = vpop.permute.xlu0 %2115 }
 0xeb4   :  { %v2126_v59 = vsel %vm87_vm1, %v1916_v5, %v2116_v58  ;;  %v2536_v5 = vld [vmem:[%s3646_s4 + $0x60] sm:$0xff] }
 0xeb5   :  { %2280 = vmatpush.msrb.mxu1 %v2536_v5 }
 0xeb7   :  { %2281 = vmatpush.msrb.mxu1 %v2535_v11 }
 0xeb9   :  { %v2124_v19 = vpop.permute.xlu2 %2123 }
 0xee1   :  { %v2120_v3 = vpop.permute.xlu1 %2119 }
 0xee2   :  { %v2127_v22 = vsel %vm119_vm2, %v2126_v59, %v2120_v3  ;;  %v2534_v59 = vld [vmem:[%s3646_s4 + $0x50] sm:$0xff]  ;;  %v2533_v3 = vld [vmem:[%s3646_s4 + $0x48] sm:$0xff] }
 0xee3   :  { %v2128_v23 = vsel %vm493_vm3, %v2127_v22, %v2124_v19  ;;  %2282 = vmatpush.msrb.mxu1 %v2534_v59  ;;  %v2532_v19 = vld [vmem:[%s3646_s4 + $0x40] sm:$0xff]  ;;  %v2221_v22 = vperm.slane %v3553_v24, 5 }
 0xee4   :  { %2525 = vmatmul.msk.f32.gmra.mxu2 %vm39_vm0, %v2128_v23 }
 0xee5   :  { %2283 = vmatpush.msrb.mxu1 %v2533_v3 }
 0xee7   :  { %2284 = vmatpush.msrb.mxu1 %v2532_v19 }
 0xf31   :  { %v2158_v21 = vpop.f32.mrf.mxu2 }
 0xf32   :  { %v2159_v7 = vadd.f32 %v2158_v21, %v2134_v25 }
 0xf34   :  { %v2164_v27 = vadd.f32 %v2159_v7, %v3418_v31 }
 0xf36   :  { %v2166_v28 = vsel %vm39_vm0, %v2164_v27, 0.0 }
 0xf37   :  { %2167 = vadd.xlane.f32.xlu0 %v2166_v28 }
 0xf67   :  { %v2161_v57 = vpop.f32.mrf.mxu2 }
 0xf68   :  { %v2162_v29 = vadd.f32 %v2161_v57, %v2134_v25  ;;  %v2262_v57 = vperm.slane %v3553_v24, 7 }
 0xf6a   :  { %v2165_v34 = vadd.f32 %v2162_v29, %v3422_v15  ;;  %v2529_v15 = vld [vmem:[%s3645_s3 + $0x38] sm:$0xff] }
 0xf6b   :  { %2240 = vmatpush.msrb.mxu0 %v2529_v15 }
 0xf6c   :  { %v2169_v35 = vsel %vm39_vm0, %v2165_v34, 0.0 }
 0xf6d   :  { %2170 = vadd.xlane.f32.xlu1 %v2169_v35  ;;  %2241 = vmatpush.msrb.mxu0 %v2528_v56 }
 0xf6f   :  { %2242 = vmatpush.msrb.mxu0 %v2527_v44 }
 0xf71   :  { %2243 = vmatpush.msrb.mxu0 %v2526_v45 }
 0xfaa   :  { %v2168_v36 = vpop.xlane.xlu0 %2167 }
 0xfab   :  { %v2172_v53 = vmul.f32 %v2168_v36, %v3176_v12 }
 0xfad   :  { %v2174_v37 = vsub.f32 %v2164_v27, %v2172_v53 }
 0xfaf   :  { %v2176_v38 = vmul.f32 %v2174_v37, %v2174_v37 }
 0xfb1   :  { %v2178_v43 = vsel %vm39_vm0, %v2176_v38, 0.0 }
 0xfb2   :  { %2179 = vadd.xlane.f32.xlu2 %v2178_v43 }
 0xfe0   :  { %v2171_v40 = vpop.xlane.xlu1 %2170 }
 0xfe1   :  { %v2173_v31 = vmul.f32 %v2171_v40, %v3176_v12 }
 0xfe3   :  { %v2175_v2 = vsub.f32 %v2165_v34, %v2173_v31 }
 0xfe5   :  { %v2177_v41 = vmul.f32 %v2175_v2, %v2175_v2 }
 0xfe7   :  { %v2181_v42 = vsel %vm39_vm0, %v2177_v41, 0.0 }
 0xfe8   :  { %2182 = vadd.xlane.f32.xlu0 %v2181_v42 }
0x1025   :  { %v2180_v46 = vpop.xlane.xlu2 %2179 }
0x1026   :  { %v2184_v47 = vmul.f32 %v2180_v46, %v3176_v12 }
0x1028   :  { %v2186_v49 = vadd.f32 1e-05, %v2184_v47 }
0x102a   :  { %2727 = vrsqrt.f32 %v2186_v49  ;;  %vm2194_vm2 = vweird.f32 %v2186_v49 }
0x1030   :  { %v2728_v51 = vpop.eup %2727 }
0x1031   :  { %v2189_v52 = vmul.f32 %v2728_v51, %v2186_v49  ;;  %vm2195_vm1 = vweird.f32 %v2728_v51 }
0x1032   :  { %vm2196_vm3 = vmor %vm2194_vm2, %vm2195_vm1 }
0x1033   :  { %v2190_v55 = vmul.f32 %v2728_v51, %v2189_v52 }
0x1035   :  { %v2191_v30 = vmul.f32 0.5, %v2190_v55 }
0x1037   :  { %v2192_v60 = vsub.f32 1.5, %v2191_v30 }
0x1039   :  { %v2193_v61 = vmul.f32 %v2728_v51, %v2192_v60 }
0x103b   :  { %v2197_v16 = vsel %vm2196_vm3, %v2728_v51, %v2193_v61 }
0x103c   :  { %v2208_v0 = vmul.f32 %v2197_v16, %v2174_v37 }
0x103e   :  { %v2211_v1 = vmul.f32 %v2210_v39, %v2208_v0 }
0x1040   :  { %v2214_v33 = vadd.f32 %v2213_v6, %v2211_v1 }
0x1042   :  { %2530 = vmatmul.msk.f32.vlgmr.msrb.gmra.mxu0 %vm39_vm0, %v2214_v33 }
0x105b   :  { %v2183_v10 = vpop.xlane.xlu0 %2182 }
0x105c   :  { %v2185_v20 = vmul.f32 %v2183_v10, %v3176_v12 }
0x105e   :  { %v2187_v4 = vadd.f32 1e-05, %v2185_v20 }
0x1060   :  { %2729 = vrsqrt.f32 %v2187_v4  ;;  %vm2204_vm9 = vweird.f32 %v2187_v4 }
0x1066   :  { %v2730_v48 = vpop.eup %2729 }
0x1067   :  { %v2199_v54 = vmul.f32 %v2730_v48, %v2187_v4  ;;  %vm2205_vm7 = vweird.f32 %v2730_v48 }
0x1068   :  { %vm2206_vm10 = vmor %vm2204_vm9, %vm2205_vm7 }
0x1069   :  { %v2200_v14 = vmul.f32 %v2730_v48, %v2199_v54 }
0x106b   :  { %v2201_v13 = vmul.f32 0.5, %v2200_v14 }
0x106d   :  { %v2202_v63 = vsub.f32 1.5, %v2201_v13 }
0x106f   :  { %v2203_v32 = vmul.f32 %v2730_v48, %v2202_v63 }
0x1071   :  { %v2207_v26 = vsel %vm2206_vm10, %v2730_v48, %v2203_v32 }
0x1072   :  { %v2209_v17 = vmul.f32 %v2207_v26, %v2175_v2 }
0x1074   :  { %v2212_v18 = vmul.f32 %v2210_v39, %v2209_v17  ;;  %v2338_v39 = vperm.slane %v3580_v50, 6 }
0x1076   :  { %v2215_v58 = vadd.f32 %v2213_v6, %v2212_v18  ;;  %v2341_v6 = vperm.slane %v3580_v50, 7 }
0x1078   :  { %2531 = vmatmul.msk.f32.gmra.mxu0 %vm39_vm0, %v2215_v58 }
0x10bf   :  { %v2245_v23 = vpop.f32.mrf.mxu0 }
0x10c0   :  { %v2246_v25 = vadd.f32 %v2245_v23, %v2221_v22 }
0x10c2   :  { %v2251_v21 = vmax.f32 %v2246_v25, 0.0 }
0x10c4   :  { %2540 = vmatmul.msk.f32.vlgmr.msrb.gmra.mxu1 %vm1122_vm5, %v2251_v21 }
0x10f5   :  { %v2248_v7 = vpop.f32.mrf.mxu0 }
0x10f6   :  { %v2249_v27 = vadd.f32 %v2248_v7, %v2221_v22 }
0x10f8   :  { %v2252_v28 = vmax.f32 %v2249_v27, 0.0 }
0x10fa   :  { %2541 = vmatmul.msk.f32.gmra.mxu1 %vm1122_vm5, %v2252_v28 }
0x1141   :  { %v2286_v29 = vpop.f32.mrf.mxu1 }
0x1142   :  { %v2287_v34 = vadd.f32 %v2286_v29, %v2262_v57 }
0x1144   :  { %v2292_v35 = vadd.f32 %v2287_v34, %v2214_v33 }
0x1146   :  { %v2294_v36 = vsel %vm39_vm0, %v2292_v35, 0.0 }
0x1147   :  { %2295 = vadd.xlane.f32.xlu1 %v2294_v36 }
0x1177   :  { %v2289_v53 = vpop.f32.mrf.mxu1 }
0x1178   :  { %v2290_v37 = vadd.f32 %v2289_v53, %v2262_v57  ;;  %v2742_v53 = vld [vmem:[%s3648_s6 + $0x10] sm:$0x7]  ;;  %s2785_s6 = smov [#allocation2]  }
0x1179   :  { %s2400_s26 = sshll.u32 %s2785_s6, 4  ;;  %s2401_s26 = int_to_ptr.vmem [resolvable:$true] %s2400_s26 }
0x117a   :  { %v2293_v38 = vadd.f32 %v2290_v37, %v2215_v58  ;;  %v2388_v37 = vperm.slane %v2742_v53, 1 }
0x117c   :  { %v2297_v43 = vsel %vm39_vm0, %v2293_v38, 0.0 }
0x117d   :  { %2298 = vadd.xlane.f32.xlu0 %v2297_v43 }
0x11ba   :  { %v2296_v40 = vpop.xlane.xlu1 %2295 }
0x11bb   :  { %v2300_v31 = vmul.f32 %v2296_v40, %v3176_v12  ;;  %v2391_v40 = vperm.slane %v2742_v53, 2 }
0x11bd   :  { %v2302_v2 = vsub.f32 %v2292_v35, %v2300_v31 }
0x11bf   :  { %v2304_v41 = vmul.f32 %v2302_v2, %v2302_v2 }
0x11c1   :  { %v2306_v42 = vsel %vm39_vm0, %v2304_v41, 0.0 }
0x11c2   :  { %2307 = vadd.xlane.f32.xlu1 %v2306_v42 }
0x11f0   :  { %v2299_v24 = vpop.xlane.xlu0 %2298 }
0x11f1   :  { %v2301_v15 = vmul.f32 %v2299_v24, %v3176_v12 }
0x11f3   :  { %v2303_v56 = vsub.f32 %v2293_v38, %v2301_v15 }
0x11f5   :  { %v2305_v44 = vmul.f32 %v2303_v56, %v2303_v56 }
0x11f7   :  { %v2309_v45 = vsel %vm39_vm0, %v2305_v44, 0.0 }
0x11f8   :  { %2310 = vadd.xlane.f32.xlu0 %v2309_v45 }
0x1235   :  { %v2308_v46 = vpop.xlane.xlu1 %2307 }
0x1236   :  { %v2312_v47 = vmul.f32 %v2308_v46, %v3176_v12 }
0x1238   :  { %v2314_v49 = vadd.f32 1e-05, %v2312_v47 }
0x123a   :  { %2731 = vrsqrt.f32 %v2314_v49  ;;  %vm2322_vm11 = vweird.f32 %v2314_v49 }
0x1240   :  { %v2732_v51 = vpop.eup %2731 }
0x1241   :  { %v2317_v52 = vmul.f32 %v2732_v51, %v2314_v49  ;;  %vm2323_vm5 = vweird.f32 %v2732_v51 }
0x1242   :  { %vm2324_vm12 = vmor %vm2322_vm11, %vm2323_vm5 }
0x1243   :  { %v2318_v55 = vmul.f32 %v2732_v51, %v2317_v52 }
0x1245   :  { %v2319_v30 = vmul.f32 0.5, %v2318_v55 }
0x1247   :  { %v2320_v60 = vsub.f32 1.5, %v2319_v30 }
0x1249   :  { %v2321_v61 = vmul.f32 %v2732_v51, %v2320_v60 }
0x124b   :  { %v2325_v16 = vsel %vm2324_vm12, %v2732_v51, %v2321_v61 }
0x124c   :  { %v2336_v0 = vmul.f32 %v2325_v16, %v2302_v2 }
0x124e   :  { %v2339_v1 = vmul.f32 %v2338_v39, %v2336_v0 }
0x1250   :  { %v2342_v33 = vadd.f32 %v2341_v6, %v2339_v1 }
0x1252   :  { %v2344_v8 = vsel %vm39_vm0, %v2342_v33, 0.0 }
0x1253   :  { %2345 = vadd.xlane.f32.xlu2 %v2344_v8 }
0x126b   :  { %v2311_v62 = vpop.xlane.xlu0 %2310 }
0x126c   :  { %v2313_v9 = vmul.f32 %v2311_v62, %v3176_v12 }
0x126e   :  { %v2315_v10 = vadd.f32 1e-05, %v2313_v9 }
0x1270   :  { %2733 = vrsqrt.f32 %v2315_v10  ;;  %vm2332_vm14 = vweird.f32 %v2315_v10 }
0x1276   :  { %v2734_v20 = vpop.eup %2733 }
0x1277   :  { %v2327_v5 = vmul.f32 %v2734_v20, %v2315_v10  ;;  %vm2333_vm13 = vweird.f32 %v2734_v20 }
0x1278   :  { %vm2334_vm15 = vmor %vm2332_vm14, %vm2333_vm13 }
0x1279   :  { %v2328_v4 = vmul.f32 %v2734_v20, %v2327_v5 }
0x127b   :  { %v2329_v11 = vmul.f32 0.5, %v2328_v4 }
0x127d   :  { %v2330_v48 = vsub.f32 1.5, %v2329_v11 }
0x127f   :  { %v2331_v54 = vmul.f32 %v2734_v20, %v2330_v48 }
0x1281   :  { %v2335_v50 = vsel %vm2334_vm15, %v2734_v20, %v2331_v54 }
0x1282   :  { %v2337_v14 = vmul.f32 %v2335_v50, %v2303_v56 }
0x1284   :  { %v2340_v13 = vmul.f32 %v2338_v39, %v2337_v14 }
0x1286   :  { %v2343_v63 = vadd.f32 %v2341_v6, %v2340_v13 }
0x1288   :  { %v2347_v32 = vsel %vm39_vm0, %v2343_v63, 0.0 }
0x1289   :  { %2348 = vadd.xlane.f32.xlu1 %v2347_v32 }
0x12c6   :  { %v2346_v26 = vpop.xlane.xlu2 %2345 }
0x12c7   :  { %v2350_v17 = vmul.f32 %v2346_v26, %v3176_v12 }
0x12c9   :  { %v2352_v18 = vsub.f32 %v2342_v33, %v2350_v17 }
0x12cb   :  { %v2354_v58 = vmul.f32 %v2352_v18, %v2352_v18 }
0x12cd   :  { %v2356_v59 = vsel %vm39_vm0, %v2354_v58, 0.0 }
0x12ce   :  { %2357 = vadd.xlane.f32.xlu0 %v2356_v59 }
0x12fc   :  { %v2349_v3 = vpop.xlane.xlu1 %2348 }
0x12fd   :  { %v2351_v19 = vmul.f32 %v2349_v3, %v3176_v12 }
0x12ff   :  { %v2353_v22 = vsub.f32 %v2343_v63, %v2351_v19 }
0x1301   :  { %v2355_v23 = vmul.f32 %v2353_v22, %v2353_v22 }
0x1303   :  { %v2359_v25 = vsel %vm39_vm0, %v2355_v23, 0.0 }
0x1304   :  { %2360 = vadd.xlane.f32.xlu2 %v2359_v25 }
0x1341   :  { %v2358_v21 = vpop.xlane.xlu0 %2357 }
0x1342   :  { %v2362_v7 = vmul.f32 %v2358_v21, %v3176_v12 }
0x1344   :  { %v2364_v27 = vadd.f32 1e-05, %v2362_v7 }
0x1346   :  { %2735 = vrsqrt.f32 %v2364_v27  ;;  %vm2372_vm6 = vweird.f32 %v2364_v27 }
0x134c   :  { %v2736_v28 = vpop.eup %2735 }
0x134d   :  { %v2367_v57 = vmul.f32 %v2736_v28, %v2364_v27  ;;  %vm2373_vm4 = vweird.f32 %v2736_v28 }
0x134e   :  { %vm2374_vm8 = vmor %vm2372_vm6, %vm2373_vm4 }
0x134f   :  { %v2368_v29 = vmul.f32 %v2736_v28, %v2367_v57 }
0x1351   :  { %v2369_v34 = vmul.f32 0.5, %v2368_v29 }
0x1353   :  { %v2370_v35 = vsub.f32 1.5, %v2369_v34 }
0x1355   :  { %v2371_v36 = vmul.f32 %v2736_v28, %v2370_v35 }
0x1357   :  { %v2375_v38 = vsel %vm2374_vm8, %v2736_v28, %v2371_v36 }
0x1358   :  { %v2386_v43 = vmul.f32 %v2375_v38, %v2352_v18 }
0x135a   :  { %v2389_v31 = vmul.f32 %v2388_v37, %v2386_v43 }
0x135c   :  { %v2392_v2 = vadd.f32 %v2391_v40, %v2389_v31 }
0x135e   :  { %2394 = vst.msk [vmem:[#allocation2] sm:$0xff] %vm39_vm0, %v2392_v2 }
0x1377   :  { %v2361_v41 = vpop.xlane.xlu2 %2360 }
0x1378   :  { %v2363_v42 = vmul.f32 %v2361_v41, %v3176_v12 }
0x137a   :  { %v2365_v24 = vadd.f32 1e-05, %v2363_v42 }
0x137c   :  { %2737 = vrsqrt.f32 %v2365_v24  ;;  %vm2382_vm2 = vweird.f32 %v2365_v24 }
0x1382   :  { %v2738_v15 = vpop.eup %2737 }
0x1383   :  { %v2377_v56 = vmul.f32 %v2738_v15, %v2365_v24  ;;  %vm2383_vm1 = vweird.f32 %v2738_v15 }
0x1384   :  { %vm2384_vm3 = vmor %vm2382_vm2, %vm2383_vm1 }
0x1385   :  { %v2378_v44 = vmul.f32 %v2738_v15, %v2377_v56 }
0x1387   :  { %v2379_v45 = vmul.f32 0.5, %v2378_v44 }
0x1389   :  { %v2380_v46 = vsub.f32 1.5, %v2379_v45 }
0x138b   :  { %v2381_v47 = vmul.f32 %v2738_v15, %v2380_v46 }
0x138d   :  { %v2385_v49 = vsel %vm2384_vm3, %v2738_v15, %v2381_v47 }
0x138e   :  { %v2387_v51 = vmul.f32 %v2385_v49, %v2353_v22 }
0x1390   :  { %v2390_v12 = vmul.f32 %v2388_v37, %v2387_v51 }
0x1392   :  { %v2393_v52 = vadd.f32 %v2391_v40, %v2390_v12 }
0x1394   :  { %2395 = vst.msk [vmem:[#allocation2 + $0x8] sm:$0xff] %vm39_vm0, %v2393_v52 }
0x1395   :  { %2408 = dma.vmem_to_hbm [thread:$0]  %s2401_s26, 256, %s2403_s30, [#allocation3], %s2786_s8, %s2786_s8, %s2780_s29  }
0x1396   :  { %2767 = dma.done.wait [#allocation3], 256  }
0x1397   :  { %2768 = vsyncadd [#allocation3], 4294967040 }
0x1398   :  { %2413 = vsyncpa [#allocation3], 1 }

</bundles_post_ra>
